<compile_context>
chip_gen: v6e
topology: v6e:2x2x1
jax: 0.10.0
libtpu: 0.0.40
codegen_flags: <defaults>
</compile_context>

<pallas_src>
import functools

import numpy as np
import jax
import jax.numpy as jnp
from jax.experimental import pallas as pl
from jax.experimental.pallas import tpu as pltpu


# ----------------------------- small helpers ---------------------------------

def _cdiv(a, b):
    return -(-a // b)


def _round_up(a, b):
    return _cdiv(a, b) * b


# ----------------------------- physics / filter setup ------------------------

def get_beta2(D, Fc):
    """D [ps/nm/km], Fc [Hz] -> beta2 [s^2/km]."""
    c_kms = 299792458.0 * 1e-3
    lamb = c_kms / Fc
    return -D * lamb ** 2 / (2 * np.pi * c_kms)


def get_beta1(D, Fc, Fi):
    return 2 * np.pi * (Fi - Fc) * get_beta2(D, Fc)


def dispersion_kernel(dz, dtaps, Fs, beta2, beta1=0.0, domain="time"):
    """Chromatic-dispersion filter. dz [m], beta2 [s^2/m], beta1 [s/m]."""
    omega = 2 * np.pi * Fs * np.fft.fftfreq(dtaps)
    kern = np.exp(-1j * beta1 * omega * dz - 1j * (beta2 / 2) * omega ** 2 * dz)
    if domain == "freq":
        return kern.astype(np.complex64)
    return np.fft.fftshift(np.fft.ifft(kern)).astype(np.complex64)


# ----------------------------- Toeplitz weight builders ----------------------

def _toeplitz_np(h, n_rows, n_cols_true, n_cols_pad):
    """W[m, n] = h[m - n] when 0 <= m-n < taps and n < n_cols_true, else 0."""
    taps = h.shape[0]
    m = np.arange(n_rows)[:, None]
    n = np.arange(n_cols_pad)[None, :]
    t = m - n
    mask = (t >= 0) & (t < taps) & (n < n_cols_true)
    return np.where(mask, h[np.clip(t, 0, taps - 1)], 0).astype(np.complex64)


def _karatsuba_weights(h, n_rows, n_cols_true, n_cols_pad):
    """3-real-matmul complex matmul weights: Wr, Wi - Wr, Wr + Wi."""
    w = _toeplitz_np(np.asarray(h, np.complex64), n_rows, n_cols_true, n_cols_pad)
    wr = np.real(w).astype(np.float32)
    wi = np.imag(w).astype(np.float32)
    return jnp.asarray(wr), jnp.asarray(wi - wr), jnp.asarray(wr + wi)


def _nl_toeplitz(nk, t_mid_true, t_mid_p, t_out):
    """Wn[(q, m), (p, n)] = nk[p, q, m - n] for 0 <= m-n < ntaps, m < t_mid_true.

    Shape (Nm*t_mid_p, Nm*t_out): the q-sum of the nonlinear filter is folded
    into the matmul contraction, so phi_flat = pw_flat @ Wn in one MXU matmul.
    """
    nm, _, ntaps = nk.shape
    m = jnp.arange(t_mid_p)[:, None]
    n = jnp.arange(t_out)[None, :]
    t = m - n
    mask = (t >= 0) & (t < ntaps) & (m < t_mid_true)
    tc = jnp.clip(t, 0, ntaps - 1)
    rows = []
    for q in range(nm):
        cols = [jnp.where(mask, nk[p, q][tc], 0.0) for p in range(nm)]
        rows.append(jnp.concatenate(cols, axis=1))
    return jnp.concatenate(rows, axis=0).astype(jnp.float32)


# ----------------------------- window extraction (wrapper-side) --------------

def _extract_windows(xr, xi, t_out, t_in_p, n_chunks, row_tile):
    """[B, Nm, M] -> [B, n_ct, Nm*t_in_p]: one full halo window per chunk row.

    Built with a handful of big contiguous XLA slices (n_v = t_in_p / t_out of
    them) regardless of the number of chunks, so each sample is read/written a
    small constant number of times and the kernel reads each window once.
    """
    B, nm, M = xr.shape
    n_v = t_in_p // t_out
    n_blocks = n_chunks + n_v - 1
    m_pad = n_blocks * t_out
    if m_pad > M:
        xr = jnp.pad(xr, ((0, 0), (0, 0), (0, m_pad - M)))
        xi = jnp.pad(xi, ((0, 0), (0, 0), (0, m_pad - M)))
    n_ct = _round_up(n_chunks, row_tile)

    def win(x):
        xb = x.reshape(B, nm, n_blocks, t_out)
        w = jnp.concatenate([xb[:, :, v:v + n_chunks, :] for v in range(n_v)],
                            axis=-1)                      # [B, Nm, n_chunks, t_in_p]
        w = jnp.transpose(w, (0, 2, 1, 3)).reshape(B, n_chunks, nm * t_in_p)
        if n_ct > n_chunks:
            w = jnp.pad(w, ((0, 0), (0, n_ct - n_chunks), (0, 0)))
        return w

    return win(xr), win(xi), n_ct


def _reassemble(y, nm, t_out, m_out):
    """[B, n_ct, Nm*t_out] -> [B, Nm, m_out]."""
    B, n_ct, _ = y.shape
    y = y.reshape(B, n_ct, nm, t_out)
    y = jnp.transpose(y, (0, 2, 1, 3)).reshape(B, nm, n_ct * t_out)
    return y[:, :, :m_out]


# ----------------------------- Pallas kernels --------------------------------

def _dconv_kernel(wa_ref, wb_ref, wc_ref, xr_ref, xi_ref, yr_ref, yi_ref,
                  *, nm, t_in, t_out):
    """Complex valid correlation: one tall (R, t_in)@(t_in, t_out) Karatsuba
    complex matmul per polarisation mode (modes live in the lane axis)."""
    for q in range(nm):
        xr = xr_ref[:, q * t_in:(q + 1) * t_in]
        xi = xi_ref[:, q * t_in:(q + 1) * t_in]
        k1 = jnp.dot(xr + xi, wa_ref[...], preferred_element_type=jnp.float32)
        k2 = jnp.dot(xr, wb_ref[...], preferred_element_type=jnp.float32)
        k3 = jnp.dot(xi, wc_ref[...], preferred_element_type=jnp.float32)
        yr_ref[:, q * t_out:(q + 1) * t_out] = k1 - k3
        yi_ref[:, q * t_out:(q + 1) * t_out] = k1 + k2


def _dbp_step_kernel(wa_ref, wb_ref, wc_ref, wn_ref, sc_ref,
                     xr_ref, xi_ref, yr_ref, yi_ref,
                     ur_ref, ui_ref, pw_ref,
                     *, nm, t_in, t_mid, t_out, ntaps):
    """Fused DBP step: dconv(h_step) -> |u|^2 -> nconv(Nkernel) -> rotate."""
    # --- dispersion conv (complex Karatsuba) -> u kept in VMEM scratch -------
    for q in range(nm):
        xr = xr_ref[:, q * t_in:(q + 1) * t_in]
        xi = xi_ref[:, q * t_in:(q + 1) * t_in]
        k1 = jnp.dot(xr + xi, wa_ref[...], preferred_element_type=jnp.float32)
        k2 = jnp.dot(xr, wb_ref[...], preferred_element_type=jnp.float32)
        k3 = jnp.dot(xi, wc_ref[...], preferred_element_type=jnp.float32)
        ur_ref[:, q * t_mid:(q + 1) * t_mid] = k1 - k3
        ui_ref[:, q * t_mid:(q + 1) * t_mid] = k1 + k2

    # --- nonlinear phase: phi = |u|^2 @ Wn (mode-sum folded into K) ----------
    pw_ref[...] = ur_ref[...] * ur_ref[...] + ui_ref[...] * ui_ref[...]
    phi = jnp.dot(pw_ref[...], wn_ref[...], preferred_element_type=jnp.float32)

    sc = sc_ref[pl.program_id(0)]            # per-batch power scale (SMEM)
    theta = phi * sc
    cth = jnp.cos(theta)
    sth = jnp.sin(theta)

    # --- rotate the centered samples ------------------------------------------
    half = ntaps // 2
    for q in range(nm):
        ucr = ur_ref[:, q * t_mid + half:q * t_mid + half + t_out]
        uci = ui_ref[:, q * t_mid + half:q * t_mid + half + t_out]
        cq = cth[:, q * t_out:(q + 1) * t_out]
        sq = sth[:, q * t_out:(q + 1) * t_out]
        yr_ref[:, q * t_out:(q + 1) * t_out] = ucr * cq - uci * sq
        yi_ref[:, q * t_out:(q + 1) * t_out] = ucr * sq + uci * cq


# ----------------------------- pallas_call wrappers --------------------------

def _vmem_limit(n_elems):
    nbytes = 4 * n_elems
    return int(min(max(2 * nbytes + (8 << 20), 16 << 20), 64 << 20))


def dconv_mxu(xr, xi, wa, wb, wc, taps, t_out, row_cap=256):
    """Complex valid dconv: chunks stacked into matmul rows, window read once."""
    B, nm, M = xr.shape
    m_out = M - taps + 1
    n_chunks = _cdiv(m_out, t_out)
    row_tile = min(row_cap, _round_up(n_chunks, 8))
    t_in = wa.shape[0]

    xwr, xwi, n_ct = _extract_windows(xr, xi, t_out, t_in, n_chunks, row_tile)

    wspec = pl.BlockSpec(wa.shape, lambda b, r: (0, 0))
    xspec = pl.BlockSpec((None, row_tile, nm * t_in), lambda b, r: (b, r, 0))
    yspec = pl.BlockSpec((None, row_tile, nm * t_out), lambda b, r: (b, r, 0))

    n_elems = (3 * wa.size * 2
               + 2 * 2 * row_tile * nm * t_in
               + 2 * 2 * row_tile * nm * t_out)
    kern = functools.partial(_dconv_kernel, nm=nm, t_in=t_in, t_out=t_out)
    yr, yi = pl.pallas_call(
        kern,
        out_shape=[jax.ShapeDtypeStruct((B, n_ct, nm * t_out), jnp.float32)] * 2,
        grid=(B, n_ct // row_tile),
        in_specs=[wspec, wspec, wspec, xspec, xspec],
        out_specs=[yspec, yspec],
        compiler_params=pltpu.CompilerParams(
            dimension_semantics=("parallel", "parallel"),
            vmem_limit_bytes=_vmem_limit(n_elems)),
    )(wa, wb, wc, xwr, xwi)
    return _reassemble(yr, nm, t_out, m_out), _reassemble(yi, nm, t_out, m_out)


def dbp_step_fused(xr, xi, wa, wb, wc, wn, scale, dtaps, ntaps, t_out,
                   row_cap=256):
    """One fused DBP step (dconv + nonlinear rotation), chunk-rows on the MXU."""
    B, nm, M = xr.shape
    halo = (dtaps - 1) + (ntaps - 1)
    m_out = M - halo
    n_chunks = _cdiv(m_out, t_out)
    row_tile = min(row_cap, _round_up(n_chunks, 8))
    t_in = wa.shape[0]
    t_mid = wa.shape[1]

    xwr, xwi, n_ct = _extract_windows(xr, xi, t_out, t_in, n_chunks, row_tile)

    wspec = pl.BlockSpec(wa.shape, lambda b, r: (0, 0))
    wnspec = pl.BlockSpec(wn.shape, lambda b, r: (0, 0))
    scspec = pl.BlockSpec(memory_space=pltpu.MemorySpace.SMEM)
    xspec = pl.BlockSpec((None, row_tile, nm * t_in), lambda b, r: (b, r, 0))
    yspec = pl.BlockSpec((None, row_tile, nm * t_out), lambda b, r: (b, r, 0))

    n_elems = (3 * wa.size * 2 + wn.size * 2
               + 2 * 2 * row_tile * nm * t_in
               + 2 * 2 * row_tile * nm * t_out
               + 3 * row_tile * nm * t_mid)
    kern = functools.partial(_dbp_step_kernel, nm=nm, t_in=t_in, t_mid=t_mid,
                             t_out=t_out, ntaps=ntaps)
    yr, yi = pl.pallas_call(
        kern,
        out_shape=[jax.ShapeDtypeStruct((B, n_ct, nm * t_out), jnp.float32)] * 2,
        grid=(B, n_ct // row_tile),
        in_specs=[wspec, wspec, wspec, wnspec, scspec, xspec, xspec],
        out_specs=[yspec, yspec],
        scratch_shapes=[pltpu.VMEM((row_tile, nm * t_mid), jnp.float32)] * 3,
        compiler_params=pltpu.CompilerParams(
            dimension_semantics=("parallel", "parallel"),
            vmem_limit_bytes=_vmem_limit(n_elems)),
    )(wa, wb, wc, wn, scale.astype(jnp.float32), xwr, xwi)
    return _reassemble(yr, nm, t_out, m_out), _reassemble(yi, nm, t_out, m_out)


# ----------------------------- EqDBP forward ----------------------------------

def make_eqdbp(Nmodes, step, dtaps, ntaps, nkernels,
               Fs=80e9, D=16.5, Fc=299792458 / 1.55e-6, Fi=299792458 / 1.55e-6,
               L=2e6, gamma=0.0016567, t_out=128):
    # TODO(synk): raise t_out to 256..1024 at production tap counts (cuts halo
    # overhead and grid-step count); 128 keeps toy-size padding minimal.
    beta2 = get_beta2(D, Fc) / 1000.0      # s^2/m
    beta1 = get_beta1(D, Fc, Fi) / 1000.0  # s/m
    d_full = (dtaps - 1) * step + 1
    h_full = dispersion_kernel(L, d_full, Fs, beta2, beta1, domain="time")
    h_step = dispersion_kernel(-L / step, dtaps, Fs, beta2, beta1, domain="time")

    # ---- weight construction, hoisted: built once, reused by every step -----
    t_in1 = _round_up(t_out + d_full - 1, t_out)          # full-span window
    wf = _karatsuba_weights(h_full, t_in1, t_out, t_out)
    t_mid_true = t_out + ntaps - 1
    t_mid = _round_up(t_mid_true, 128)
    t_in2 = _round_up(t_out + ntaps + dtaps - 2, t_out)    # per-step window
    ws = _karatsuba_weights(h_step, t_in2, t_mid_true, t_mid)

    def forward(x, task_info):
        # x: [B, M, Nmodes] complex64, task_info: [B, 4] float32
        xr = jnp.transpose(jnp.real(x), (0, 2, 1)).astype(jnp.float32)
        xi = jnp.transpose(jnp.imag(x), (0, 2, 1)).astype(jnp.float32)
        P = 0.001 * 10 ** (task_info[:, 0] / 10) / Nmodes           # [B]
        scale = (gamma * L / step) * P                              # [B]

        # Nonlinear Toeplitz weights, built once per distinct Nkernel (hoisted
        # out of the step loop; shared kernels share one array).
        wns = [_nl_toeplitz(nk, t_mid_true, t_mid, t_out) for nk in nkernels]

        # whole-span dispersion (MXU Toeplitz conv)
        xr, xi = dconv_mxu(xr, xi, *wf, taps=d_full, t_out=t_out)
        # DBP steps: fused dconv(h_step) + nonlinear rotation per pallas_call
        for i in range(step):
            wn = wns[min(i, len(wns) - 1)]
            xr, xi = dbp_step_fused(xr, xi, *ws, wn, scale, dtaps, ntaps, t_out)

        y = xr.astype(jnp.complex64) + 1j * xi.astype(jnp.complex64)
        return jnp.transpose(y, (0, 2, 1))                          # [B, Mout, Nmodes]

    return forward, h_full, h_step


# ----------------------------- pure-JAX reference -----------------------------

def ref_forward(x, task_info, h_full, h_step, nkernels,
                Nmodes, step, ntaps, gamma=0.0016567, L=2e6):
    def dconv(xc, h):
        dt = h.shape[0]
        Mo = xc.shape[1] - dt + 1
        return sum(xc[:, t:t + Mo, :] * h[t] for t in range(dt))

    def nonlinear(xc, nk, scale):
        Mo = xc.shape[1] - ntaps + 1
        pw = jnp.abs(xc) ** 2
        phi = sum(jnp.einsum("bnq,pq->bnp", pw[:, t:t + Mo, :], nk[:, :, t])
                  for t in range(ntaps))
        center = xc[:, ntaps // 2: ntaps // 2 + Mo, :]
        return center * jnp.exp(1j * phi * scale[:, None, None])

    P = 0.001 * 10 ** (task_info[:, 0] / 10) / Nmodes
    scale = gamma * P * L / step
    xc = dconv(x, jnp.asarray(h_full))
    for i in range(step):
        xc = dconv(xc, jnp.asarray(h_step))
        xc = nonlinear(xc, nkernels[min(i, len(nkernels) - 1)], scale)
    return xc


# ----------------------------- main -------------------------------------------

if __name__ == "__main__":
    B, M, Nmodes = 2, 64, 2
    step, dtaps, ntaps = 2, 5, 5        # small synthetic sizes (real: 2001/401)
    n_share = True

    key = jax.random.PRNGKey(0)
    k1, k2, k3, k4 = jax.random.split(key, 4)
    xre = jax.random.normal(k1, (B, M, Nmodes), jnp.float32)
    xim = jax.random.normal(k2, (B, M, Nmodes), jnp.float32)
    x = xre.astype(jnp.complex64) + 1j * xim.astype(jnp.complex64)

    pw_dbm = jax.random.uniform(k3, (B,), jnp.float32, minval=-2.0, maxval=2.0)
    task_info = jnp.concatenate(
        [pw_dbm[:, None], jnp.zeros((B, 3), jnp.float32)], axis=1)

    # NonlinearFilter parameters (module zero-inits them; small deterministic
    # values are used so the nonlinear rotation path is actually exercised).
    n_num = 1 if n_share else step
    nkernels = [0.01 * jax.random.normal(jax.random.fold_in(k4, j),
                                         (Nmodes, Nmodes, ntaps), jnp.float32)
                for j in range(n_num)]

    fwd, h_full, h_step = make_eqdbp(Nmodes, step, dtaps, ntaps, nkernels)
    fwd_jit = jax.jit(fwd)

    y = jax.block_until_ready(fwd_jit(x, task_info))

    y_ref = jax.block_until_ready(
        ref_forward(x, task_info, h_full, h_step, nkernels, Nmodes, step, ntaps))

    overlaps = ((dtaps - 1) * 2 + ntaps - 1) * step
    assert y.shape == (B, M - overlaps, Nmodes), y.shape
    np.testing.assert_allclose(np.asarray(y), np.asarray(y_ref),
                               rtol=2e-2, atol=2e-2)
    print("KERNEL_OK")
</pallas_src>

<mosaic_0001>
module attributes {stable_mosaic.version = 11 : i64} {
  func.func @_dconv_kernel(%arg0: i32, %arg1: i32, %arg2: memref<256x128xf32, #tpu.memory_space<vmem>>, %arg3: memref<256x128xf32, #tpu.memory_space<vmem>>, %arg4: memref<256x128xf32, #tpu.memory_space<vmem>>, %arg5: memref<1x8x512xf32, #tpu.memory_space<vmem>>, %arg6: memref<1x8x512xf32, #tpu.memory_space<vmem>>, %arg7: memref<1x8x256xf32, #tpu.memory_space<vmem>>, %arg8: memref<1x8x256xf32, #tpu.memory_space<vmem>>) attributes {dimension_semantics = [#tpu.dimension_semantics<parallel>, #tpu.dimension_semantics<parallel>], iteration_bounds = array<i64: 2, 1>, scalar_prefetch = 0 : i64, scratch_operands = 0 : i64, tpu.core_type = #tpu.core_type<tc>, window_params = [{pipeline_mode = #tpu.pipeline_mode<synchronous>, transform_indices = @transform_0, window_bounds = array<i64: 256, 128>}, {pipeline_mode = #tpu.pipeline_mode<synchronous>, transform_indices = @transform_1, window_bounds = array<i64: 256, 128>}, {pipeline_mode = #tpu.pipeline_mode<synchronous>, transform_indices = @transform_2, window_bounds = array<i64: 256, 128>}, {transform_indices = @transform_3, window_bounds = array<i64: 1, 8, 512>}, {transform_indices = @transform_4, window_bounds = array<i64: 1, 8, 512>}, {transform_indices = @transform_5, window_bounds = array<i64: 1, 8, 256>}, {transform_indices = @transform_6, window_bounds = array<i64: 1, 8, 256>}]} {
    %c0 = arith.constant 0 : index
    %c0_0 = arith.constant 0 : index
    %c0_1 = arith.constant 0 : index
    %0 = vector.load %arg5[%c0, %c0_0, %c0_1] : memref<1x8x512xf32, #tpu.memory_space<vmem>>, vector<1x8x256xf32>
    %1 = vector.shape_cast %0 : vector<1x8x256xf32> to vector<8x256xf32>
    %c0_2 = arith.constant 0 : index
    %c0_3 = arith.constant 0 : index
    %c0_4 = arith.constant 0 : index
    %2 = vector.load %arg6[%c0_2, %c0_3, %c0_4] : memref<1x8x512xf32, #tpu.memory_space<vmem>>, vector<1x8x256xf32>
    %3 = vector.shape_cast %2 : vector<1x8x256xf32> to vector<8x256xf32>
    %4 = arith.addf %1, %3 : vector<8x256xf32>
    %c0_5 = arith.constant 0 : index
    %c0_6 = arith.constant 0 : index
    %5 = vector.load %arg2[%c0_5, %c0_6] : memref<256x128xf32, #tpu.memory_space<vmem>>, vector<256x128xf32>
    %cst = arith.constant dense<0.000000e+00> : vector<8x128xf32>
    %6 = tpu.matmul %4, %5, %cst {dimension_numbers = #tpu.dot_dimension_numbers<[1], [0], [0], [1], [0, 0, 1, 1], [], []>} : vector<8x256xf32>, vector<256x128xf32>, vector<8x128xf32> -> vector<8x128xf32>
    %c0_7 = arith.constant 0 : index
    %c0_8 = arith.constant 0 : index
    %7 = vector.load %arg3[%c0_7, %c0_8] : memref<256x128xf32, #tpu.memory_space<vmem>>, vector<256x128xf32>
    %cst_9 = arith.constant dense<0.000000e+00> : vector<8x128xf32>
    %8 = tpu.matmul %1, %7, %cst_9 {dimension_numbers = #tpu.dot_dimension_numbers<[1], [0], [0], [1], [0, 0, 1, 1], [], []>} : vector<8x256xf32>, vector<256x128xf32>, vector<8x128xf32> -> vector<8x128xf32>
    %c0_10 = arith.constant 0 : index
    %c0_11 = arith.constant 0 : index
    %9 = vector.load %arg4[%c0_10, %c0_11] : memref<256x128xf32, #tpu.memory_space<vmem>>, vector<256x128xf32>
    %cst_12 = arith.constant dense<0.000000e+00> : vector<8x128xf32>
    %10 = tpu.matmul %3, %9, %cst_12 {dimension_numbers = #tpu.dot_dimension_numbers<[1], [0], [0], [1], [0, 0, 1, 1], [], []>} : vector<8x256xf32>, vector<256x128xf32>, vector<8x128xf32> -> vector<8x128xf32>
    %11 = arith.subf %6, %10 : vector<8x128xf32>
    %c0_13 = arith.constant 0 : index
    %c0_14 = arith.constant 0 : index
    %c0_15 = arith.constant 0 : index
    %12 = vector.load %arg7[%c0_13, %c0_14, %c0_15] : memref<1x8x256xf32, #tpu.memory_space<vmem>>, vector<1x8x128xf32>
    %13 = vector.shape_cast %12 : vector<1x8x128xf32> to vector<8x128xf32>
    %14 = vector.shape_cast %11 : vector<8x128xf32> to vector<1x8x128xf32>
    tpu.vector_store %arg7[%c0_13, %c0_14, %c0_15], %14 {strides = array<i32>} : memref<1x8x256xf32, #tpu.memory_space<vmem>>, vector<1x8x128xf32>,
    %15 = arith.addf %6, %8 : vector<8x128xf32>
    %c0_16 = arith.constant 0 : index
    %c0_17 = arith.constant 0 : index
    %c0_18 = arith.constant 0 : index
    %16 = vector.load %arg8[%c0_16, %c0_17, %c0_18] : memref<1x8x256xf32, #tpu.memory_space<vmem>>, vector<1x8x128xf32>
    %17 = vector.shape_cast %16 : vector<1x8x128xf32> to vector<8x128xf32>
    %18 = vector.shape_cast %15 : vector<8x128xf32> to vector<1x8x128xf32>
    tpu.vector_store %arg8[%c0_16, %c0_17, %c0_18], %18 {strides = array<i32>} : memref<1x8x256xf32, #tpu.memory_space<vmem>>, vector<1x8x128xf32>,
    %c0_19 = arith.constant 0 : index
    %c0_20 = arith.constant 0 : index
    %c256 = arith.constant 256 : index
    %19 = vector.load %arg5[%c0_19, %c0_20, %c256] : memref<1x8x512xf32, #tpu.memory_space<vmem>>, vector<1x8x256xf32>
    %20 = vector.shape_cast %19 : vector<1x8x256xf32> to vector<8x256xf32>
    %c0_21 = arith.constant 0 : index
    %c0_22 = arith.constant 0 : index
    %c256_23 = arith.constant 256 : index
    %21 = vector.load %arg6[%c0_21, %c0_22, %c256_23] : memref<1x8x512xf32, #tpu.memory_space<vmem>>, vector<1x8x256xf32>
    %22 = vector.shape_cast %21 : vector<1x8x256xf32> to vector<8x256xf32>
    %23 = arith.addf %20, %22 : vector<8x256xf32>
    %c0_24 = arith.constant 0 : index
    %c0_25 = arith.constant 0 : index
    %24 = vector.load %arg2[%c0_24, %c0_25] : memref<256x128xf32, #tpu.memory_space<vmem>>, vector<256x128xf32>
    %cst_26 = arith.constant dense<0.000000e+00> : vector<8x128xf32>
    %25 = tpu.matmul %23, %24, %cst_26 {dimension_numbers = #tpu.dot_dimension_numbers<[1], [0], [0], [1], [0, 0, 1, 1], [], []>} : vector<8x256xf32>, vector<256x128xf32>, vector<8x128xf32> -> vector<8x128xf32>
    %c0_27 = arith.constant 0 : index
    %c0_28 = arith.constant 0 : index
    %26 = vector.load %arg3[%c0_27, %c0_28] : memref<256x128xf32, #tpu.memory_space<vmem>>, vector<256x128xf32>
    %cst_29 = arith.constant dense<0.000000e+00> : vector<8x128xf32>
    %27 = tpu.matmul %20, %26, %cst_29 {dimension_numbers = #tpu.dot_dimension_numbers<[1], [0], [0], [1], [0, 0, 1, 1], [], []>} : vector<8x256xf32>, vector<256x128xf32>, vector<8x128xf32> -> vector<8x128xf32>
    %c0_30 = arith.constant 0 : index
    %c0_31 = arith.constant 0 : index
    %28 = vector.load %arg4[%c0_30, %c0_31] : memref<256x128xf32, #tpu.memory_space<vmem>>, vector<256x128xf32>
    %cst_32 = arith.constant dense<0.000000e+00> : vector<8x128xf32>
    %29 = tpu.matmul %22, %28, %cst_32 {dimension_numbers = #tpu.dot_dimension_numbers<[1], [0], [0], [1], [0, 0, 1, 1], [], []>} : vector<8x256xf32>, vector<256x128xf32>, vector<8x128xf32> -> vector<8x128xf32>
    %30 = arith.subf %25, %29 : vector<8x128xf32>
    %c0_33 = arith.constant 0 : index
    %c0_34 = arith.constant 0 : index
    %c128 = arith.constant 128 : index
    %31 = vector.load %arg7[%c0_33, %c0_34, %c128] : memref<1x8x256xf32, #tpu.memory_space<vmem>>, vector<1x8x128xf32>
    %32 = vector.shape_cast %31 : vector<1x8x128xf32> to vector<8x128xf32>
    %33 = vector.shape_cast %30 : vector<8x128xf32> to vector<1x8x128xf32>
    tpu.vector_store %arg7[%c0_33, %c0_34, %c128], %33 {strides = array<i32>} : memref<1x8x256xf32, #tpu.memory_space<vmem>>, vector<1x8x128xf32>,
    %34 = arith.addf %25, %27 : vector<8x128xf32>
    %c0_35 = arith.constant 0 : index
    %c0_36 = arith.constant 0 : index
    %c128_37 = arith.constant 128 : index
    %35 = vector.load %arg8[%c0_35, %c0_36, %c128_37] : memref<1x8x256xf32, #tpu.memory_space<vmem>>, vector<1x8x128xf32>
    %36 = vector.shape_cast %35 : vector<1x8x128xf32> to vector<8x128xf32>
    %37 = vector.shape_cast %34 : vector<8x128xf32> to vector<1x8x128xf32>
    tpu.vector_store %arg8[%c0_35, %c0_36, %c128_37], %37 {strides = array<i32>} : memref<1x8x256xf32, #tpu.memory_space<vmem>>, vector<1x8x128xf32>,
    return
  }
  func.func @transform_0(%arg0: i32, %arg1: i32) -> (i32, i32) {
    %c0_i32 = arith.constant 0 : i32
    %c0_i32_0 = arith.constant 0 : i32
    %c0_i32_1 = arith.constant 0 : i32
    return %c0_i32, %c0_i32_0 : i32, i32
  }
  func.func @transform_1(%arg0: i32, %arg1: i32) -> (i32, i32) {
    %c0_i32 = arith.constant 0 : i32
    %c0_i32_0 = arith.constant 0 : i32
    %c0_i32_1 = arith.constant 0 : i32
    return %c0_i32, %c0_i32_0 : i32, i32
  }
  func.func @transform_2(%arg0: i32, %arg1: i32) -> (i32, i32) {
    %c0_i32 = arith.constant 0 : i32
    %c0_i32_0 = arith.constant 0 : i32
    %c0_i32_1 = arith.constant 0 : i32
    return %c0_i32, %c0_i32_0 : i32, i32
  }
  func.func @transform_3(%arg0: i32, %arg1: i32) -> (i32, i32, i32) {
    %c0_i32 = arith.constant 0 : i32
    %c0_i32_0 = arith.constant 0 : i32
    return %arg0, %arg1, %c0_i32 : i32, i32, i32
  }
  func.func @transform_4(%arg0: i32, %arg1: i32) -> (i32, i32, i32) {
    %c0_i32 = arith.constant 0 : i32
    %c0_i32_0 = arith.constant 0 : i32
    return %arg0, %arg1, %c0_i32 : i32, i32, i32
  }
  func.func @transform_5(%arg0: i32, %arg1: i32) -> (i32, i32, i32) {
    %c0_i32 = arith.constant 0 : i32
    %c0_i32_0 = arith.constant 0 : i32
    return %arg0, %arg1, %c0_i32 : i32, i32, i32
  }
  func.func @transform_6(%arg0: i32, %arg1: i32) -> (i32, i32, i32) {
    %c0_i32 = arith.constant 0 : i32
    %c0_i32_0 = arith.constant 0 : i32
    return %arg0, %arg1, %c0_i32 : i32, i32, i32
  }
}

module attributes {stable_mosaic.version = 11 : i64} {
  func.func @_dbp_step_kernel(%arg0: i32, %arg1: i32, %arg2: memref<256x256xf32, #tpu.memory_space<vmem>>, %arg3: memref<256x256xf32, #tpu.memory_space<vmem>>, %arg4: memref<256x256xf32, #tpu.memory_space<vmem>>, %arg5: memref<512x256xf32, #tpu.memory_space<vmem>>, %arg6: memref<2xf32, #tpu.memory_space<smem>>, %arg7: memref<1x8x512xf32, #tpu.memory_space<vmem>>, %arg8: memref<1x8x512xf32, #tpu.memory_space<vmem>>, %arg9: memref<1x8x256xf32, #tpu.memory_space<vmem>>, %arg10: memref<1x8x256xf32, #tpu.memory_space<vmem>>, %arg11: memref<8x512xf32, #tpu.memory_space<vmem>>, %arg12: memref<8x512xf32, #tpu.memory_space<vmem>>, %arg13: memref<8x512xf32, #tpu.memory_space<vmem>>) attributes {dimension_semantics = [#tpu.dimension_semantics<parallel>, #tpu.dimension_semantics<parallel>], iteration_bounds = array<i64: 2, 1>, scalar_prefetch = 0 : i64, scratch_operands = 3 : i64, tpu.core_type = #tpu.core_type<tc>, window_params = [{pipeline_mode = #tpu.pipeline_mode<synchronous>, transform_indices = @transform_0, window_bounds = array<i64: 256, 256>}, {pipeline_mode = #tpu.pipeline_mode<synchronous>, transform_indices = @transform_1, window_bounds = array<i64: 256, 256>}, {pipeline_mode = #tpu.pipeline_mode<synchronous>, transform_indices = @transform_2, window_bounds = array<i64: 256, 256>}, {pipeline_mode = #tpu.pipeline_mode<synchronous>, transform_indices = @transform_3, window_bounds = array<i64: 512, 256>}, {transform_indices = @transform_4, window_bounds = array<i64: 2>}, {transform_indices = @transform_5, window_bounds = array<i64: 1, 8, 512>}, {transform_indices = @transform_6, window_bounds = array<i64: 1, 8, 512>}, {transform_indices = @transform_7, window_bounds = array<i64: 1, 8, 256>}, {transform_indices = @transform_8, window_bounds = array<i64: 1, 8, 256>}]} {
    %c0 = arith.constant 0 : index
    %c0_0 = arith.constant 0 : index
    %c0_1 = arith.constant 0 : index
    %0 = vector.load %arg7[%c0, %c0_0, %c0_1] : memref<1x8x512xf32, #tpu.memory_space<vmem>>, vector<1x8x256xf32>
    %1 = vector.shape_cast %0 : vector<1x8x256xf32> to vector<8x256xf32>
    %c0_2 = arith.constant 0 : index
    %c0_3 = arith.constant 0 : index
    %c0_4 = arith.constant 0 : index
    %2 = vector.load %arg8[%c0_2, %c0_3, %c0_4] : memref<1x8x512xf32, #tpu.memory_space<vmem>>, vector<1x8x256xf32>
    %3 = vector.shape_cast %2 : vector<1x8x256xf32> to vector<8x256xf32>
    %4 = arith.addf %1, %3 : vector<8x256xf32>
    %c0_5 = arith.constant 0 : index
    %c0_6 = arith.constant 0 : index
    %5 = vector.load %arg2[%c0_5, %c0_6] : memref<256x256xf32, #tpu.memory_space<vmem>>, vector<256x256xf32>
    %cst = arith.constant dense<0.000000e+00> : vector<8x256xf32>
    %6 = tpu.matmul %4, %5, %cst {dimension_numbers = #tpu.dot_dimension_numbers<[1], [0], [0], [1], [0, 0, 1, 1], [], []>} : vector<8x256xf32>, vector<256x256xf32>, vector<8x256xf32> -> vector<8x256xf32>
    %c0_7 = arith.constant 0 : index
    %c0_8 = arith.constant 0 : index
    %7 = vector.load %arg3[%c0_7, %c0_8] : memref<256x256xf32, #tpu.memory_space<vmem>>, vector<256x256xf32>
    %cst_9 = arith.constant dense<0.000000e+00> : vector<8x256xf32>
    %8 = tpu.matmul %1, %7, %cst_9 {dimension_numbers = #tpu.dot_dimension_numbers<[1], [0], [0], [1], [0, 0, 1, 1], [], []>} : vector<8x256xf32>, vector<256x256xf32>, vector<8x256xf32> -> vector<8x256xf32>
    %c0_10 = arith.constant 0 : index
    %c0_11 = arith.constant 0 : index
    %9 = vector.load %arg4[%c0_10, %c0_11] : memref<256x256xf32, #tpu.memory_space<vmem>>, vector<256x256xf32>
    %cst_12 = arith.constant dense<0.000000e+00> : vector<8x256xf32>
    %10 = tpu.matmul %3, %9, %cst_12 {dimension_numbers = #tpu.dot_dimension_numbers<[1], [0], [0], [1], [0, 0, 1, 1], [], []>} : vector<8x256xf32>, vector<256x256xf32>, vector<8x256xf32> -> vector<8x256xf32>
    %11 = arith.subf %6, %10 : vector<8x256xf32>
    %c0_13 = arith.constant 0 : index
    %c0_14 = arith.constant 0 : index
    %12 = vector.load %arg11[%c0_13, %c0_14] : memref<8x512xf32, #tpu.memory_space<vmem>>, vector<8x256xf32>
    tpu.vector_store %arg11[%c0_13, %c0_14], %11 {strides = array<i32>} : memref<8x512xf32, #tpu.memory_space<vmem>>, vector<8x256xf32>,
    %13 = arith.addf %6, %8 : vector<8x256xf32>
    %c0_15 = arith.constant 0 : index
    %c0_16 = arith.constant 0 : index
    %14 = vector.load %arg12[%c0_15, %c0_16] : memref<8x512xf32, #tpu.memory_space<vmem>>, vector<8x256xf32>
    tpu.vector_store %arg12[%c0_15, %c0_16], %13 {strides = array<i32>} : memref<8x512xf32, #tpu.memory_space<vmem>>, vector<8x256xf32>,
    %c0_17 = arith.constant 0 : index
    %c0_18 = arith.constant 0 : index
    %c256 = arith.constant 256 : index
    %15 = vector.load %arg7[%c0_17, %c0_18, %c256] : memref<1x8x512xf32, #tpu.memory_space<vmem>>, vector<1x8x256xf32>
    %16 = vector.shape_cast %15 : vector<1x8x256xf32> to vector<8x256xf32>
    %c0_19 = arith.constant 0 : index
    %c0_20 = arith.constant 0 : index
    %c256_21 = arith.constant 256 : index
    %17 = vector.load %arg8[%c0_19, %c0_20, %c256_21] : memref<1x8x512xf32, #tpu.memory_space<vmem>>, vector<1x8x256xf32>
    %18 = vector.shape_cast %17 : vector<1x8x256xf32> to vector<8x256xf32>
    %19 = arith.addf %16, %18 : vector<8x256xf32>
    %c0_22 = arith.constant 0 : index
    %c0_23 = arith.constant 0 : index
    %20 = vector.load %arg2[%c0_22, %c0_23] : memref<256x256xf32, #tpu.memory_space<vmem>>, vector<256x256xf32>
    %cst_24 = arith.constant dense<0.000000e+00> : vector<8x256xf32>
    %21 = tpu.matmul %19, %20, %cst_24 {dimension_numbers = #tpu.dot_dimension_numbers<[1], [0], [0], [1], [0, 0, 1, 1], [], []>} : vector<8x256xf32>, vector<256x256xf32>, vector<8x256xf32> -> vector<8x256xf32>
    %c0_25 = arith.constant 0 : index
    %c0_26 = arith.constant 0 : index
    %22 = vector.load %arg3[%c0_25, %c0_26] : memref<256x256xf32, #tpu.memory_space<vmem>>, vector<256x256xf32>
    %cst_27 = arith.constant dense<0.000000e+00> : vector<8x256xf32>
    %23 = tpu.matmul %16, %22, %cst_27 {dimension_numbers = #tpu.dot_dimension_numbers<[1], [0], [0], [1], [0, 0, 1, 1], [], []>} : vector<8x256xf32>, vector<256x256xf32>, vector<8x256xf32> -> vector<8x256xf32>
    %c0_28 = arith.constant 0 : index
    %c0_29 = arith.constant 0 : index
    %24 = vector.load %arg4[%c0_28, %c0_29] : memref<256x256xf32, #tpu.memory_space<vmem>>, vector<256x256xf32>
    %cst_30 = arith.constant dense<0.000000e+00> : vector<8x256xf32>
    %25 = tpu.matmul %18, %24, %cst_30 {dimension_numbers = #tpu.dot_dimension_numbers<[1], [0], [0], [1], [0, 0, 1, 1], [], []>} : vector<8x256xf32>, vector<256x256xf32>, vector<8x256xf32> -> vector<8x256xf32>
    %26 = arith.subf %21, %25 : vector<8x256xf32>
    %c0_31 = arith.constant 0 : index
    %c256_32 = arith.constant 256 : index
    %27 = vector.load %arg11[%c0_31, %c256_32] : memref<8x512xf32, #tpu.memory_space<vmem>>, vector<8x256xf32>
    tpu.vector_store %arg11[%c0_31, %c256_32], %26 {strides = array<i32>} : memref<8x512xf32, #tpu.memory_space<vmem>>, vector<8x256xf32>,
    %28 = arith.addf %21, %23 : vector<8x256xf32>
    %c0_33 = arith.constant 0 : index
    %c256_34 = arith.constant 256 : index
    %29 = vector.load %arg12[%c0_33, %c256_34] : memref<8x512xf32, #tpu.memory_space<vmem>>, vector<8x256xf32>
    tpu.vector_store %arg12[%c0_33, %c256_34], %28 {strides = array<i32>} : memref<8x512xf32, #tpu.memory_space<vmem>>, vector<8x256xf32>,
    %c0_35 = arith.constant 0 : index
    %c0_36 = arith.constant 0 : index
    %30 = vector.load %arg11[%c0_35, %c0_36] : memref<8x512xf32, #tpu.memory_space<vmem>>, vector<8x512xf32>
    %c0_37 = arith.constant 0 : index
    %c0_38 = arith.constant 0 : index
    %31 = vector.load %arg11[%c0_37, %c0_38] : memref<8x512xf32, #tpu.memory_space<vmem>>, vector<8x512xf32>
    %32 = arith.mulf %30, %31 : vector<8x512xf32>
    %c0_39 = arith.constant 0 : index
    %c0_40 = arith.constant 0 : index
    %33 = vector.load %arg12[%c0_39, %c0_40] : memref<8x512xf32, #tpu.memory_space<vmem>>, vector<8x512xf32>
    %c0_41 = arith.constant 0 : index
    %c0_42 = arith.constant 0 : index
    %34 = vector.load %arg12[%c0_41, %c0_42] : memref<8x512xf32, #tpu.memory_space<vmem>>, vector<8x512xf32>
    %35 = arith.mulf %33, %34 : vector<8x512xf32>
    %36 = arith.addf %32, %35 : vector<8x512xf32>
    %c0_43 = arith.constant 0 : index
    %c0_44 = arith.constant 0 : index
    %37 = vector.load %arg13[%c0_43, %c0_44] : memref<8x512xf32, #tpu.memory_space<vmem>>, vector<8x512xf32>
    tpu.vector_store %arg13[%c0_43, %c0_44], %36 {strides = array<i32>} : memref<8x512xf32, #tpu.memory_space<vmem>>, vector<8x512xf32>,
    %c0_45 = arith.constant 0 : index
    %c0_46 = arith.constant 0 : index
    %38 = vector.load %arg13[%c0_45, %c0_46] : memref<8x512xf32, #tpu.memory_space<vmem>>, vector<8x512xf32>
    %c0_47 = arith.constant 0 : index
    %c0_48 = arith.constant 0 : index
    %39 = vector.load %arg5[%c0_47, %c0_48] : memref<512x256xf32, #tpu.memory_space<vmem>>, vector<512x256xf32>
    %cst_49 = arith.constant dense<0.000000e+00> : vector<8x256xf32>
    %40 = tpu.matmul %38, %39, %cst_49 {dimension_numbers = #tpu.dot_dimension_numbers<[1], [0], [0], [1], [0, 0, 1, 1], [], []>} : vector<8x512xf32>, vector<512x256xf32>, vector<8x256xf32> -> vector<8x256xf32>
    %41 = arith.index_cast %arg0 : i32 to index
    %42 = memref.load %arg6[%41] : memref<2xf32, #tpu.memory_space<smem>>
    %43 = vector.broadcast %42 : f32 to vector<8x256xf32>
    %44 = arith.mulf %40, %43 : vector<8x256xf32>
    %45 = math.cos %44 : vector<8x256xf32>
    %46 = math.sin %44 : vector<8x256xf32>
    %c0_50 = arith.constant 0 : index
    %c2 = arith.constant 2 : index
    %47 = vector.load %arg11[%c0_50, %c2] : memref<8x512xf32, #tpu.memory_space<vmem>>, vector<8x128xf32>
    %c0_51 = arith.constant 0 : index
    %c2_52 = arith.constant 2 : index
    %48 = vector.load %arg12[%c0_51, %c2_52] : memref<8x512xf32, #tpu.memory_space<vmem>>, vector<8x128xf32>
    %49 = vector.extract_strided_slice %45 {offsets = [0, 0], sizes = [8, 128], strides = [1, 1]} : vector<8x256xf32> to vector<8x128xf32>
    %50 = vector.extract_strided_slice %46 {offsets = [0, 0], sizes = [8, 128], strides = [1, 1]} : vector<8x256xf32> to vector<8x128xf32>
    %51 = arith.mulf %47, %49 : vector<8x128xf32>
    %52 = arith.mulf %48, %50 : vector<8x128xf32>
    %53 = arith.subf %51, %52 : vector<8x128xf32>
    %c0_53 = arith.constant 0 : index
    %c0_54 = arith.constant 0 : index
    %c0_55 = arith.constant 0 : index
    %54 = vector.load %arg9[%c0_53, %c0_54, %c0_55] : memref<1x8x256xf32, #tpu.memory_space<vmem>>, vector<1x8x128xf32>
    %55 = vector.shape_cast %54 : vector<1x8x128xf32> to vector<8x128xf32>
    %56 = vector.shape_cast %53 : vector<8x128xf32> to vector<1x8x128xf32>
    tpu.vector_store %arg9[%c0_53, %c0_54, %c0_55], %56 {strides = array<i32>} : memref<1x8x256xf32, #tpu.memory_space<vmem>>, vector<1x8x128xf32>,
    %57 = arith.mulf %47, %50 : vector<8x128xf32>
    %58 = arith.mulf %48, %49 : vector<8x128xf32>
    %59 = arith.addf %57, %58 : vector<8x128xf32>
    %c0_56 = arith.constant 0 : index
    %c0_57 = arith.constant 0 : index
    %c0_58 = arith.constant 0 : index
    %60 = vector.load %arg10[%c0_56, %c0_57, %c0_58] : memref<1x8x256xf32, #tpu.memory_space<vmem>>, vector<1x8x128xf32>
    %61 = vector.shape_cast %60 : vector<1x8x128xf32> to vector<8x128xf32>
    %62 = vector.shape_cast %59 : vector<8x128xf32> to vector<1x8x128xf32>
    tpu.vector_store %arg10[%c0_56, %c0_57, %c0_58], %62 {strides = array<i32>} : memref<1x8x256xf32, #tpu.memory_space<vmem>>, vector<1x8x128xf32>,
    %c0_59 = arith.constant 0 : index
    %c258 = arith.constant 258 : index
    %63 = vector.load %arg11[%c0_59, %c258] : memref<8x512xf32, #tpu.memory_space<vmem>>, vector<8x128xf32>
    %c0_60 = arith.constant 0 : index
    %c258_61 = arith.constant 258 : index
    %64 = vector.load %arg12[%c0_60, %c258_61] : memref<8x512xf32, #tpu.memory_space<vmem>>, vector<8x128xf32>
    %65 = vector.extract_strided_slice %45 {offsets = [0, 128], sizes = [8, 128], strides = [1, 1]} : vector<8x256xf32> to vector<8x128xf32>
    %66 = vector.extract_strided_slice %46 {offsets = [0, 128], sizes = [8, 128], strides = [1, 1]} : vector<8x256xf32> to vector<8x128xf32>
    %67 = arith.mulf %63, %65 : vector<8x128xf32>
    %68 = arith.mulf %64, %66 : vector<8x128xf32>
    %69 = arith.subf %67, %68 : vector<8x128xf32>
    %c0_62 = arith.constant 0 : index
    %c0_63 = arith.constant 0 : index
    %c128 = arith.constant 128 : index
    %70 = vector.load %arg9[%c0_62, %c0_63, %c128] : memref<1x8x256xf32, #tpu.memory_space<vmem>>, vector<1x8x128xf32>
    %71 = vector.shape_cast %70 : vector<1x8x128xf32> to vector<8x128xf32>
    %72 = vector.shape_cast %69 : vector<8x128xf32> to vector<1x8x128xf32>
    tpu.vector_store %arg9[%c0_62, %c0_63, %c128], %72 {strides = array<i32>} : memref<1x8x256xf32, #tpu.memory_space<vmem>>, vector<1x8x128xf32>,
    %73 = arith.mulf %63, %66 : vector<8x128xf32>
    %74 = arith.mulf %64, %65 : vector<8x128xf32>
    %75 = arith.addf %73, %74 : vector<8x128xf32>
    %c0_64 = arith.constant 0 : index
    %c0_65 = arith.constant 0 : index
    %c128_66 = arith.constant 128 : index
    %76 = vector.load %arg10[%c0_64, %c0_65, %c128_66] : memref<1x8x256xf32, #tpu.memory_space<vmem>>, vector<1x8x128xf32>
    %77 = vector.shape_cast %76 : vector<1x8x128xf32> to vector<8x128xf32>
    %78 = vector.shape_cast %75 : vector<8x128xf32> to vector<1x8x128xf32>
    tpu.vector_store %arg10[%c0_64, %c0_65, %c128_66], %78 {strides = array<i32>} : memref<1x8x256xf32, #tpu.memory_space<vmem>>, vector<1x8x128xf32>,
    return
  }
  func.func @transform_0(%arg0: i32, %arg1: i32) -> (i32, i32) {
    %c0_i32 = arith.constant 0 : i32
    %c0_i32_0 = arith.constant 0 : i32
    %c0_i32_1 = arith.constant 0 : i32
    return %c0_i32, %c0_i32_0 : i32, i32
  }
  func.func @transform_1(%arg0: i32, %arg1: i32) -> (i32, i32) {
    %c0_i32 = arith.constant 0 : i32
    %c0_i32_0 = arith.constant 0 : i32
    %c0_i32_1 = arith.constant 0 : i32
    return %c0_i32, %c0_i32_0 : i32, i32
  }
  func.func @transform_2(%arg0: i32, %arg1: i32) -> (i32, i32) {
    %c0_i32 = arith.constant 0 : i32
    %c0_i32_0 = arith.constant 0 : i32
    %c0_i32_1 = arith.constant 0 : i32
    return %c0_i32, %c0_i32_0 : i32, i32
  }
  func.func @transform_3(%arg0: i32, %arg1: i32) -> (i32, i32) {
    %c0_i32 = arith.constant 0 : i32
    %c0_i32_0 = arith.constant 0 : i32
    %c0_i32_1 = arith.constant 0 : i32
    return %c0_i32, %c0_i32_0 : i32, i32
  }
  func.func @transform_4(%arg0: i32, %arg1: i32) -> i32 {
    %c0_i32 = arith.constant 0 : i32
    %c0_i32_0 = arith.constant 0 : i32
    return %c0_i32 : i32
  }
  func.func @transform_5(%arg0: i32, %arg1: i32) -> (i32, i32, i32) {
    %c0_i32 = arith.constant 0 : i32
    %c0_i32_0 = arith.constant 0 : i32
    return %arg0, %arg1, %c0_i32 : i32, i32, i32
  }
  func.func @transform_6(%arg0: i32, %arg1: i32) -> (i32, i32, i32) {
    %c0_i32 = arith.constant 0 : i32
    %c0_i32_0 = arith.constant 0 : i32
    return %arg0, %arg1, %c0_i32 : i32, i32, i32
  }
  func.func @transform_7(%arg0: i32, %arg1: i32) -> (i32, i32, i32) {
    %c0_i32 = arith.constant 0 : i32
    %c0_i32_0 = arith.constant 0 : i32
    return %arg0, %arg1, %c0_i32 : i32, i32, i32
  }
  func.func @transform_8(%arg0: i32, %arg1: i32) -> (i32, i32, i32) {
    %c0_i32 = arith.constant 0 : i32
    %c0_i32_0 = arith.constant 0 : i32
    return %arg0, %arg1, %c0_i32 : i32, i32, i32
  }
}

</mosaic_0001>

<bundles_post_ra>
// kernel: custom-call
= control target key start
LH: loop header
LB: loop body
LE: loop exit
PB: predicated region body
PF: predicated region fallthrough
CT: control target
= control target key end

     0   :  { %2 = vsyncpa [#allocation0], 0  ;;  %s47_s0 = inlined_call_operand.hbm [shape: c64[2,64,2], index: 0, kind: input, shape index: {}]   ;;  %s48_s1 = inlined_call_operand.vmem [shape: f32[2,64,2], index: 1, kind: output, shape index: {}]  }
   0x1   :  { %s3_s8 = sshll.u32 %s48_s1, 4  ;;  %s4_s8 = int_to_ptr.vmem [resolvable:$true] %s3_s8 }
   0x2   :  { %s17_s9 = scalar_lea.vmem %s4_s8, 64  ;;  %p22_p1 = scmp.lt.s32.totalorder %s4_s8, %s4_s8 }
   0x3   :  { %p18_p0 = scmp.ne.s32.totalorder %s4_s8, %s17_s9  ;;  %p23_p2 = scmp.lt.s32.totalorder %s17_s9, %s17_s9 }
   0x5   :  { %p24_p3 = por %p23_p2, %p22_p1 }
   0x7   :  { %p25_p4 = pnand %p24_p3, %p18_p0 }
   0x9   :  { %28 = shalt.err (!%p25_p4)  }
   0xa   :  { %6 = dma.hbm_to_vmem [thread:$0]  %s47_s0, 64, %s4_s8, [#allocation0] }
   0xb   :  { %29 = dma.done.wait [#allocation0], 64  }
   0xc   :  { %30 = vsyncadd [#allocation0], 4294967232 }
   0xd   :  { %8 = vsyncpa [#allocation0], 1 }

// kernel: custom-call.1
= control target key start
LH: loop header
LB: loop body
LE: loop exit
PB: predicated region body
PF: predicated region fallthrough
CT: control target
= control target key end

     0   :  { %s51_s0 = inlined_call_operand.hbm [shape: c64[2,64,2], index: 0, kind: input, shape index: {}]   ;;  %s52_s1 = inlined_call_operand.vmem [shape: f32[2,64,2], index: 1, kind: output, shape index: {}]  }
   0x1   :  { %s2_s8 = scalar_lea.hbm %s51_s0, 64 }
   0x2   :  { %3 = vsyncpa [#allocation0], 0  ;;  %s4_s11 = sshll.u32 %s52_s1, 4  ;;  %s5_s11 = int_to_ptr.vmem [resolvable:$true] %s4_s11 }
   0x3   :  { %s20_s12 = scalar_lea.vmem %s5_s11, 64  ;;  %p25_p1 = scmp.lt.s32.totalorder %s5_s11, %s5_s11 }
   0x4   :  { %p21_p0 = scmp.ne.s32.totalorder %s5_s11, %s20_s12  ;;  %p26_p2 = scmp.lt.s32.totalorder %s20_s12, %s20_s12 }
   0x6   :  { %p27_p3 = por %p26_p2, %p25_p1 }
   0x8   :  { %p28_p4 = pnand %p27_p3, %p21_p0 }
   0xa   :  { %31 = shalt.err (!%p28_p4)  }
   0xb   :  { %7 = dma.hbm_to_vmem [thread:$0]  %s2_s8, 64, %s5_s11, [#allocation0] }
   0xc   :  { %33 = dma.done.wait [#allocation0], 64  }
   0xd   :  { %34 = vsyncadd [#allocation0], 4294967232 }
   0xe   :  { %9 = vsyncpa [#allocation0], 1 }

// kernel: custom-call.2
= control target key start
LH: loop header
LB: loop body
LE: loop exit
PB: predicated region body
PF: predicated region fallthrough
CT: control target
= control target key end

     0   :  { %s92_s0 = inlined_call_operand.vmem [shape: f32[2,40,2], index: 0, kind: input, shape index: {}]   ;;  %s93_s1 = inlined_call_operand.vmem [shape: f32[2,40,2], index: 1, kind: input, shape index: {}]   ;;  %s94_s2 = inlined_call_operand.hbm [shape: c64[2,40,2], index: 2, kind: output, shape index: {}]  }
   0x1   :  { %s3_s11 = scalar_lea.hbm %s94_s2, 64 }
   0x2   :  { %4 = vsyncpa [#allocation0], 0  ;;  %s5_s14 = sshll.u32 %s92_s0, 4  ;;  %s6_s14 = int_to_ptr.vmem [resolvable:$true] %s5_s14 }
   0x3   :  { %s18_s15 = scalar_lea.vmem %s6_s14, 64  ;;  %p23_p1 = scmp.lt.s32.totalorder %s6_s14, %s6_s14 }
   0x4   :  { %p19_p0 = scmp.ne.s32.totalorder %s6_s14, %s18_s15  ;;  %p24_p2 = scmp.lt.s32.totalorder %s18_s15, %s18_s15 }
   0x6   :  { %p25_p3 = por %p24_p2, %p23_p1 }
   0x8   :  { %p26_p4 = pnand %p25_p3, %p19_p0 }
   0xa   :  { %29 = shalt.err (!%p26_p4)  }
   0xb   :  { %8 = dma.vmem_to_hbm [thread:$0]  %s6_s14, 64, %s94_s2, [#allocation0] }
   0xc   :  { %61 = dma.done.wait [#allocation0], 64  }
   0xd   :  { %62 = vsyncadd [#allocation0], 4294967232 }
   0xe   :  { %10 = vsyncpa [#allocation0], 1 }
   0xf   :  { %11 = vsyncpa [#allocation1], 0  ;;  %s12_s0 = sshll.u32 %s93_s1, 4  ;;  %s13_s0 = int_to_ptr.vmem [resolvable:$true] %s12_s0 }
  0x10   :  { %s38_s20 = scalar_lea.vmem %s13_s0, 64  ;;  %p43_p6 = scmp.lt.s32.totalorder %s13_s0, %s13_s0 }
  0x11   :  { %p39_p5 = scmp.ne.s32.totalorder %s13_s0, %s38_s20  ;;  %p44_p7 = scmp.lt.s32.totalorder %s38_s20, %s38_s20 }
  0x13   :  { %p45_p8 = por %p44_p7, %p43_p6 }
  0x15   :  { %p46_p9 = pnand %p45_p8, %p39_p5 }
  0x17   :  { %49 = shalt.err (!%p46_p9)  }
  0x18   :  { %15 = dma.vmem_to_hbm [thread:$0]  %s13_s0, 64, %s3_s11, [#allocation1] }
  0x19   :  { %63 = dma.done.wait [#allocation1], 64  }
  0x1a   :  { %64 = vsyncadd [#allocation1], 4294967232 }
  0x1b   :  { %17 = vsyncpa [#allocation1], 1 }

// kernel: forward.3
= control target key start
LH: loop header
LB: loop body
LE: loop exit
PB: predicated region body
PF: predicated region fallthrough
CT: control target
= control target key end

     0   :  { %s1455_s21 = smov 0   ;;  %s1457_s22 = smov 0   ;;  %s2212_s0 = inlined_call_operand.vmem [shape: f32[256,128], index: 0, kind: input, shape index: {}]   ;;  %s2213_s1 = inlined_call_operand.vmem [shape: f32[256,128], index: 1, kind: input, shape index: {}]   ;;  %s2214_s2 = inlined_call_operand.vmem [shape: f32[256,128], index: 2, kind: input, shape index: {}]   ;;  %s2215_s3 = inlined_call_operand.vmem [shape: f32[2,8,512], index: 3, kind: input, shape index: {}]   ;;  %s2216_s4 = inlined_call_operand.vmem [shape: f32[2,8,512], index: 4, kind: input, shape index: {}]   ;;  %s2217_s5 = inlined_call_operand.vmem [shape: f32[2,8,256], index: 5, kind: output, shape index: {0}]   ;;  %s2218_s6 = inlined_call_operand.vmem [shape: f32[2,8,256], index: 6, kind: output, shape index: {1}]  }
   0x1   :  { %s1459_s23 = smov 0  }
   0x2 LB: > { %s29_s24 = sadd.s32 1, %s1414_s22  ;;  %p1147_p0 = scmp.ge.s32.totalorder %s1418_s23, 1  ;;  %s1418_s23 = sphi %s1459_s23, %s17_s23   ;;  %s1414_s22 = sphi %s1457_s22, %s2256_s22   ;;  %s1410_s21 = sphi %s1455_s21, %s2255_s21  }
   0x3   : > { %p31_p1 = scmp.ge.s32.totalorder %s29_s24, 2  ;;  %p253_p2 = scmp.lt.s32.totalorder %s1418_s23, 3 }
   0x5   : > { %s2258_s24 = smov (%p31_p1, %s29_s24), 0  ;;  %p254_p3 = pnand %p1147_p0, %p253_p2 }
   0x7   : > { %257 = sbr.rel (%p254_p3) target bundleno = 316 (0x13c), region = 40 }
   0xc   : > { %v1478_v0 = vld [vmem:[%s2212_s0 + $0xf8] sm:$0xff]  ;;  %v1500_v4 = vld [vmem:[%s2212_s0 + $0xf0] sm:$0xff]  ;;  %v1522_v8 = vld [vmem:[%s2212_s0 + $0xe8] sm:$0xff]  ;;  %p309_p4 = scmp.lt.s32.totalorder %s1410_s21, 1 }
   0xd   : > { %v1483_v1 = vld [vmem:[%s2213_s1 + $0xf8] sm:$0xff]  ;;  %1162 = vmatprep.subr.mxu0 %v1478_v0  ;;  %v1505_v5 = vld [vmem:[%s2213_s1 + $0xf0] sm:$0xff]  ;;  %v1529_v9 = vld [vmem:[%s2213_s1 + $0xe8] sm:$0xff] }
   0xe   : > { %v1488_v2 = vld [vmem:[%s2212_s0 + $0x78] sm:$0xff]  ;;  %1197 = vmatprep.subr.mxu1 %v1483_v1  ;;  %v1512_v6 = vld [vmem:[%s2212_s0 + $0x70] sm:$0xff]  ;;  %v1534_v10 = vld [vmem:[%s2212_s0 + $0x68] sm:$0xff]  ;;  %s2260_s21 = smov (!%p309_p4, %s1410_s21), 1 }
   0xf   : > { %v1495_v3 = vld [vmem:[%s2213_s1 + $0x78] sm:$0xff]  ;;  %1163 = vmatpush3.msra.mxu0 %v1488_v2  ;;  %v1517_v7 = vld [vmem:[%s2213_s1 + $0x70] sm:$0xff]  ;;  %v1539_v11 = vld [vmem:[%s2213_s1 + $0x68] sm:$0xff]  ;;  %s1158_s9 = sshll.u32 %s2260_s21, 5 }
  0x10   : > { %1198 = vmatpush3.msra.mxu1 %v1495_v3  ;;  %1164 = vmatprep.subr.mxu0 %v1500_v4  ;;  %v1546_v12 = vld [vmem:[%s2212_s0 + $0xe0] sm:$0xff]  ;;  %v1570_v16 = vld [vmem:[%s2212_s0 + $0xd8] sm:$0xff]  ;;  %v1594_v20 = vld [vmem:[%s2212_s0 + $0xd0] sm:$0xff]  ;;  %s1779_s28 = scalar_lea.vmem %s2215_s3, %s1158_s9  ;;  %s1784_s7 = scalar_lea.vmem %s2216_s4, %s1158_s9 }
  0x11   : > { %1199 = vmatprep.subr.mxu1 %v1505_v5  ;;  %1165 = vmatpush3.msra.mxu0 %v1512_v6  ;;  %v1551_v13 = vld [vmem:[%s2213_s1 + $0xe0] sm:$0xff]  ;;  %v1575_v17 = vld [vmem:[%s2213_s1 + $0xd8] sm:$0xff]  ;;  %v1599_v21 = vld [vmem:[%s2213_s1 + $0xd0] sm:$0xff] }
  0x12   : > { %1200 = vmatpush3.msra.mxu1 %v1517_v7  ;;  %1166 = vmatprep.subr.mxu0 %v1522_v8  ;;  %v1558_v14 = vld [vmem:[%s2212_s0 + $0x60] sm:$0xff]  ;;  %v1582_v18 = vld [vmem:[%s2212_s0 + $0x58] sm:$0xff]  ;;  %v1606_v22 = vld [vmem:[%s2212_s0 + $0x50] sm:$0xff] }
  0x13   : > { %1201 = vmatprep.subr.mxu1 %v1529_v9  ;;  %v1563_v15 = vld [vmem:[%s2213_s1 + $0x60] sm:$0xff]  ;;  %1167 = vmatpush3.msra.mxu0 %v1534_v10  ;;  %v1587_v19 = vld [vmem:[%s2213_s1 + $0x58] sm:$0xff]  ;;  %v1611_v23 = vld [vmem:[%s2213_s1 + $0x50] sm:$0xff] }
  0x14   : > { %1202 = vmatpush3.msra.mxu1 %v1539_v11  ;;  %1168 = vmatprep.subr.mxu0 %v1546_v12  ;;  %v1618_v24 = vld [vmem:[%s2212_s0 + $0xc8] sm:$0xff]  ;;  %v1643_v28 = vld [vmem:[%s2212_s0 + $0xc0] sm:$0xff]  ;;  %v1667_v32 = vld [vmem:[%s2212_s0 + $0xb8] sm:$0xff] }
  0x15   : > { %1203 = vmatprep.subr.mxu1 %v1551_v13  ;;  %1169 = vmatpush3.msra.mxu0 %v1558_v14  ;;  %v1623_v25 = vld [vmem:[%s2213_s1 + $0xc8] sm:$0xff]  ;;  %v1648_v29 = vld [vmem:[%s2213_s1 + $0xc0] sm:$0xff]  ;;  %v1672_v33 = vld [vmem:[%s2213_s1 + $0xb8] sm:$0xff] }
  0x16   : > { %1204 = vmatpush3.msra.mxu1 %v1563_v15  ;;  %1170 = vmatprep.subr.mxu0 %v1570_v16  ;;  %v1630_v26 = vld [vmem:[%s2212_s0 + $0x48] sm:$0xff]  ;;  %v1655_v30 = vld [vmem:[%s2212_s0 + $0x40] sm:$0xff]  ;;  %v1679_v34 = vld [vmem:[%s2212_s0 + $0x38] sm:$0xff] }
  0x17   : > { %1205 = vmatprep.subr.mxu1 %v1575_v17  ;;  %1171 = vmatpush3.msra.mxu0 %v1582_v18  ;;  %v1635_v27 = vld [vmem:[%s2213_s1 + $0x48] sm:$0xff]  ;;  %v1660_v31 = vld [vmem:[%s2213_s1 + $0x40] sm:$0xff]  ;;  %v1684_v35 = vld [vmem:[%s2213_s1 + $0x38] sm:$0xff] }
  0x18   : > { %1206 = vmatpush3.msra.mxu1 %v1587_v19  ;;  %1172 = vmatprep.subr.mxu0 %v1594_v20  ;;  %v1696_v36 = vld [vmem:[%s2212_s0 + $0xb0] sm:$0xff]  ;;  %v1720_v40 = vld [vmem:[%s2212_s0 + $0xa8] sm:$0xff]  ;;  %v1745_v44 = vld [vmem:[%s2212_s0 + $0xa0] sm:$0xff] }
  0x19   : > { %1207 = vmatprep.subr.mxu1 %v1599_v21  ;;  %1173 = vmatpush3.msra.mxu0 %v1606_v22  ;;  %v1701_v37 = vld [vmem:[%s2213_s1 + $0xb0] sm:$0xff]  ;;  %v1725_v41 = vld [vmem:[%s2213_s1 + $0xa8] sm:$0xff]  ;;  %v1750_v45 = vld [vmem:[%s2213_s1 + $0xa0] sm:$0xff] }
  0x1a   : > { %1208 = vmatpush3.msra.mxu1 %v1611_v23  ;;  %1174 = vmatprep.subr.mxu0 %v1618_v24  ;;  %v1708_v38 = vld [vmem:[%s2212_s0 + $0x30] sm:$0xff]  ;;  %v1732_v42 = vld [vmem:[%s2212_s0 + $0x28] sm:$0xff]  ;;  %2231 = vst [vmem:[#allocation2_spill] sm:$0xff] %v1750_v45  ;;  %v1757_v46 = vld [vmem:[%s2212_s0 + $0x20] sm:$0xff] }
  0x1b   : > { %1209 = vmatprep.subr.mxu1 %v1623_v25  ;;  %1175 = vmatpush3.msra.mxu0 %v1630_v26  ;;  %v1713_v39 = vld [vmem:[%s2213_s1 + $0x30] sm:$0xff]  ;;  %v1737_v43 = vld [vmem:[%s2213_s1 + $0x28] sm:$0xff]  ;;  %v1762_v47 = vld [vmem:[%s2213_s1 + $0x20] sm:$0xff] }
  0x1c   : > { %1210 = vmatpush3.msra.mxu1 %v1635_v27  ;;  %1176 = vmatprep.subr.mxu0 %v1643_v28  ;;  %2232 = vst [vmem:[#allocation3_spill] sm:$0xff] %v1762_v47  ;;  %v1769_v48 = vld [vmem:[%s2212_s0 + $0x98] sm:$0xff]  ;;  %v1803_v52 = vld [vmem:[%s2212_s0 + $0x90] sm:$0xff]  ;;  %v346_v56 = vld [vmem:[%s1779_s28 + $0x8] sm:$0xff] }
  0x1d   : > { %1211 = vmatprep.subr.mxu1 %v1648_v29  ;;  %1177 = vmatpush3.msra.mxu0 %v1655_v30  ;;  %v1774_v49 = vld [vmem:[%s2213_s1 + $0x98] sm:$0xff]  ;;  %v1808_v53 = vld [vmem:[%s2213_s1 + $0x90] sm:$0xff]  ;;  %v1824_v57 = vld [vmem:[%s1784_s7 + $0x8] sm:$0xff] }
  0x1e   : > { %1212 = vmatpush3.msra.mxu1 %v1660_v31  ;;  %1178 = vmatprep.subr.mxu0 %v1667_v32  ;;  %2233 = vst [vmem:[#allocation4_spill] sm:$0xff] %v1774_v49  ;;  %v1791_v50 = vld [vmem:[%s2212_s0 + $0x18] sm:$0xff]  ;;  %2235 = vst [vmem:[#allocation6_spill] sm:$0xff] %v1808_v53  ;;  %v1813_v54 = vld [vmem:[%s2212_s0 + $0x10] sm:$0xff] }
  0x1f   : > { %1213 = vmatprep.subr.mxu1 %v1672_v33  ;;  %1179 = vmatpush3.msra.mxu0 %v1679_v34  ;;  %v1796_v51 = vld [vmem:[%s2213_s1 + $0x18] sm:$0xff]  ;;  %v1820_v55 = vld [vmem:[%s2213_s1 + $0x10] sm:$0xff]  ;;  %v1831_v58 = vld [vmem:[%s2212_s0 + $0x88] sm:$0xff] }
  0x20   : > { %1214 = vmatpush3.msra.mxu1 %v1684_v35  ;;  %1180 = vmatprep.subr.mxu0 %v1696_v36  ;;  %2234 = vst [vmem:[#allocation5_spill] sm:$0xff] %v1796_v51  ;;  %2236 = vst [vmem:[#allocation7_spill] sm:$0xff] %v1820_v55  ;;  %v1836_v59 = vld [vmem:[%s2213_s1 + $0x88] sm:$0xff]  ;;  %v345_v62 = vld [vmem:[%s1779_s28] sm:$0xff] }
  0x21   : > { %1215 = vmatprep.subr.mxu1 %v1701_v37  ;;  %1181 = vmatpush3.msra.mxu0 %v1708_v38  ;;  %2237 = vst [vmem:[#allocation8_spill] sm:$0xff] %v1836_v59  ;;  %v1841_v60 = vld [vmem:[%s2212_s0 + $0x8] sm:$0xff]  ;;  %v1852_v63 = vld [vmem:[%s1784_s7] sm:$0xff] }
  0x22   : > { %1216 = vmatpush3.msra.mxu1 %v1713_v39  ;;  %1182 = vmatprep.subr.mxu0 %v1720_v40  ;;  %v1848_v61 = vld [vmem:[%s2213_s1 + $0x8] sm:$0xff] }
  0x23   : > { %1217 = vmatprep.subr.mxu1 %v1725_v41  ;;  %1183 = vmatpush3.msra.mxu0 %v1732_v42  ;;  %2238 = vst [vmem:[#allocation9_spill] sm:$0xff] %v1848_v61 }
  0x24   : > { %1218 = vmatpush3.msra.mxu1 %v1737_v43  ;;  %1184 = vmatprep.subr.mxu0 %v1745_v44 }
  0x25   : > { %1219 = vmatprep.subr.mxu1 %v1750_v45  ;;  %1185 = vmatpush3.msra.mxu0 %v1757_v46  ;;  %v349_v45 = vadd.f32 %v1852_v63, %v345_v62 }
  0x26   : > { %1220 = vmatpush3.msra.mxu1 %v1762_v47  ;;  %1186 = vmatprep.subr.mxu0 %v1769_v48  ;;  %v1879_v47 = vld [vmem:[%s2213_s1] sm:$0xff] }
  0x27   : > { %1221 = vmatprep.subr.mxu1 %v1774_v49  ;;  %1187 = vmatpush3.msra.mxu0 %v1791_v50  ;;  %v350_v49 = vadd.f32 %v1824_v57, %v346_v56  ;;  %2240 = vst [vmem:[#allocation11_spill] sm:$0xff] %v1879_v47 }
  0x28   : > { %1222 = vmatpush3.msra.mxu1 %v1796_v51  ;;  %1188 = vmatprep.subr.mxu0 %v1803_v52  ;;  %v1859_v51 = vld [vmem:[%s2212_s0 + $0x80] sm:$0xff] }
  0x29   : > { %1223 = vmatprep.subr.mxu1 %v1808_v53  ;;  %1189 = vmatpush3.msra.mxu0 %v1813_v54  ;;  %v1864_v53 = vld [vmem:[%s2213_s1 + $0x80] sm:$0xff] }
  0x2a   : > { %1224 = vmatpush3.msra.mxu1 %v1820_v55  ;;  %2239 = vst [vmem:[#allocation10_spill] sm:$0xff] %v1864_v53  ;;  %1190 = vmatprep.subr.mxu0 %v1831_v58  ;;  %v1872_v55 = vld [vmem:[%s2212_s0] sm:$0xff] }
  0x2b   : > { %1225 = vmatprep.subr.mxu1 %v1836_v59  ;;  %1191 = vmatpush3.msra.mxu0 %v1841_v60  ;;  %v1888_v59 = vld [vmem:[%s2214_s2 + $0xf8] sm:$0xff] }
  0x2c   : > { %1226 = vmatpush3.msra.mxu1 %v1848_v61  ;;  %1192 = vmatprep.subr.mxu0 %v1859_v51  ;;  %v1894_v61 = vld [vmem:[%s2214_s2 + $0x78] sm:$0xff] }
  0x2d   : > { %1227 = vmatprep.subr.mxu1 %v1864_v53  ;;  %1193 = vmatpush3.msra.mxu0 %v1872_v55  ;;  %v1899_v53 = vld [vmem:[%s2214_s2 + $0xf0] sm:$0xff] }
  0x2e   : > { %447 = vmatprep.mubr.f32.mxu0 %v350_v49  ;;  %1228 = vmatpush3.msra.mxu1 %v1879_v47  ;;  %v1906_v49 = vld [vmem:[%s2214_s2 + $0x70] sm:$0xff] }
  0x2f   : > { %549 = vmatprep.mubr.f32.mxu1 %v346_v56  ;;  %448 = vmatmul.mubr.f32.vlgmr.msra.gmra.mxu0 %v349_v45  ;;  %v1913_v45 = vld [vmem:[%s2214_s2 + $0xe8] sm:$0xff]  ;;  %v2084_v56 = vld [vmem:[%s1779_s28 + $0x18] sm:$0xff]  ;;  %v2097_v47 = vld [vmem:[%s1779_s28 + $0x10] sm:$0xff]  ;;  %s1160_s28 = sshll.u32 %s2260_s21, 4 }
  0x30   : > { %550 = vmatmul.mubr.f32.vlgmr.msra.gmra.mxu1 %v345_v62  ;;  %1232 = vmatprep.subr.mxu0 %v1888_v59  ;;  %v2087_v62 = vld [vmem:[%s1784_s7 + $0x18] sm:$0xff]  ;;  %s344_s12 = scalar_lea.vmem %s2218_s6, %s1160_s28  ;;  %s335_s14 = scalar_lea.vmem %s2217_s5, %s1160_s28 }
  0x31   : > { %1267 = vmatprep.subr.mxu1 %v1478_v0  ;;  %1233 = vmatpush3.msra.mxu0 %v1894_v61  ;;  %v1920_v0 = vld [vmem:[%s2214_s2 + $0x68] sm:$0xff] }
  0x32   : > { %1268 = vmatpush3.msra.mxu1 %v1488_v2  ;;  %1234 = vmatprep.subr.mxu0 %v1899_v53  ;;  %v1927_v2 = vld [vmem:[%s2214_s2 + $0xe0] sm:$0xff] }
  0x33   : > { %1269 = vmatprep.subr.mxu1 %v1500_v4  ;;  %1235 = vmatpush3.msra.mxu0 %v1906_v49  ;;  %v1934_v4 = vld [vmem:[%s2214_s2 + $0x60] sm:$0xff] }
  0x34   : > { %1270 = vmatpush3.msra.mxu1 %v1512_v6  ;;  %1236 = vmatprep.subr.mxu0 %v1913_v45  ;;  %v1941_v6 = vld [vmem:[%s2214_s2 + $0xd8] sm:$0xff] }
  0x35   : > { %1271 = vmatprep.subr.mxu1 %v1522_v8  ;;  %1237 = vmatpush3.msra.mxu0 %v1920_v0  ;;  %v1948_v8 = vld [vmem:[%s2214_s2 + $0x58] sm:$0xff] }
  0x36   : > { %1272 = vmatpush3.msra.mxu1 %v1534_v10  ;;  %1238 = vmatprep.subr.mxu0 %v1927_v2  ;;  %v1955_v10 = vld [vmem:[%s2214_s2 + $0xd0] sm:$0xff] }
  0x37   : > { %1273 = vmatprep.subr.mxu1 %v1546_v12  ;;  %1239 = vmatpush3.msra.mxu0 %v1934_v4  ;;  %v1962_v12 = vld [vmem:[%s2214_s2 + $0x50] sm:$0xff] }
  0x38   : > { %1274 = vmatpush3.msra.mxu1 %v1558_v14  ;;  %1240 = vmatprep.subr.mxu0 %v1941_v6  ;;  %v1969_v14 = vld [vmem:[%s2214_s2 + $0xc8] sm:$0xff] }
  0x39   : > { %1275 = vmatprep.subr.mxu1 %v1570_v16  ;;  %1241 = vmatpush3.msra.mxu0 %v1948_v8  ;;  %v1976_v16 = vld [vmem:[%s2214_s2 + $0x48] sm:$0xff] }
  0x3a   : > { %1276 = vmatpush3.msra.mxu1 %v1582_v18  ;;  %1242 = vmatprep.subr.mxu0 %v1955_v10  ;;  %v1983_v18 = vld [vmem:[%s2214_s2 + $0xc0] sm:$0xff] }
  0x3b   : > { %1277 = vmatprep.subr.mxu1 %v1594_v20  ;;  %1243 = vmatpush3.msra.mxu0 %v1962_v12  ;;  %v1990_v20 = vld [vmem:[%s2214_s2 + $0x40] sm:$0xff] }
  0x3c   : > { %1278 = vmatpush3.msra.mxu1 %v1606_v22  ;;  %1244 = vmatprep.subr.mxu0 %v1969_v14  ;;  %v1997_v22 = vld [vmem:[%s2214_s2 + $0xb8] sm:$0xff] }
  0x3d   : > { %1279 = vmatprep.subr.mxu1 %v1618_v24  ;;  %1245 = vmatpush3.msra.mxu0 %v1976_v16  ;;  %v2004_v24 = vld [vmem:[%s2214_s2 + $0x38] sm:$0xff] }
  0x3e   : > { %1280 = vmatpush3.msra.mxu1 %v1630_v26  ;;  %1246 = vmatprep.subr.mxu0 %v1983_v18  ;;  %v2011_v26 = vld [vmem:[%s2214_s2 + $0xb0] sm:$0xff] }
  0x3f   : > { %1281 = vmatprep.subr.mxu1 %v1643_v28  ;;  %1247 = vmatpush3.msra.mxu0 %v1990_v20  ;;  %v2018_v28 = vld [vmem:[%s2214_s2 + $0x30] sm:$0xff] }
  0x40   : > { %1282 = vmatpush3.msra.mxu1 %v1655_v30  ;;  %1248 = vmatprep.subr.mxu0 %v1997_v22  ;;  %v2025_v30 = vld [vmem:[%s2214_s2 + $0xa8] sm:$0xff] }
  0x41   : > { %1283 = vmatprep.subr.mxu1 %v1667_v32  ;;  %1249 = vmatpush3.msra.mxu0 %v2004_v24  ;;  %v2032_v32 = vld [vmem:[%s2214_s2 + $0x28] sm:$0xff] }
  0x42   : > { %1284 = vmatpush3.msra.mxu1 %v1679_v34  ;;  %1250 = vmatprep.subr.mxu0 %v2011_v26  ;;  %v2039_v34 = vld [vmem:[%s2214_s2 + $0xa0] sm:$0xff] }
  0x43   : > { %1285 = vmatprep.subr.mxu1 %v1696_v36  ;;  %1251 = vmatpush3.msra.mxu0 %v2018_v28  ;;  %v2046_v36 = vld [vmem:[%s2214_s2 + $0x20] sm:$0xff] }
  0x44   : > { %1286 = vmatpush3.msra.mxu1 %v1708_v38  ;;  %1252 = vmatprep.subr.mxu0 %v2025_v30  ;;  %v2053_v38 = vld [vmem:[%s2214_s2 + $0x98] sm:$0xff] }
  0x45   : > { %1287 = vmatprep.subr.mxu1 %v1720_v40  ;;  %1253 = vmatpush3.msra.mxu0 %v2032_v32  ;;  %v2060_v40 = vld [vmem:[%s2214_s2 + $0x18] sm:$0xff] }
  0x46   : > { %1288 = vmatpush3.msra.mxu1 %v1732_v42  ;;  %1254 = vmatprep.subr.mxu0 %v2039_v34  ;;  %2241 = vst [vmem:[#allocation12_spill] sm:$0xff] %v2060_v40  ;;  %v2067_v42 = vld [vmem:[%s2214_s2 + $0x90] sm:$0xff] }
  0x47   : > { %1289 = vmatprep.subr.mxu1 %v1745_v44  ;;  %1255 = vmatpush3.msra.mxu0 %v2046_v36  ;;  %2242 = vst [vmem:[#allocation13_spill] sm:$0xff] %v2067_v42  ;;  %v2074_v44 = vld [vmem:[%s2214_s2 + $0x10] sm:$0xff] }
  0x48   : > { %1290 = vmatpush3.msra.mxu1 %v1757_v46  ;;  %1256 = vmatprep.subr.mxu0 %v2053_v38  ;;  %v2081_v46 = vld [vmem:[%s2214_s2 + $0x88] sm:$0xff] }
  0x49   : > { %1291 = vmatprep.subr.mxu1 %v1769_v48  ;;  %1257 = vmatpush3.msra.mxu0 %v2060_v40  ;;  %v2094_v48 = vld [vmem:[%s2214_s2 + $0x8] sm:$0xff]  ;;  %v2107_v40 = vld [vmem:[%s2214_s2 + $0x80] sm:$0xff] }
  0x4a   : > { %1292 = vmatpush3.msra.mxu1 %v1791_v50  ;;  %1258 = vmatprep.subr.mxu0 %v2067_v42  ;;  %v2100_v50 = vld [vmem:[%s1784_s7 + $0x10] sm:$0xff]  ;;  %v666_v42 = vadd.f32 %v2087_v62, %v2084_v56 }
  0x4b   : > { %1293 = vmatprep.subr.mxu1 %v1803_v52  ;;  %1259 = vmatpush3.msra.mxu0 %v2074_v44  ;;  %v2114_v52 = vld [vmem:[%s2214_s2] sm:$0xff] }
  0x4c   : > { %1294 = vmatpush3.msra.mxu1 %v1813_v54  ;;  %1260 = vmatprep.subr.mxu0 %v2081_v46  ;;  %v665_v54 = vadd.f32 %v2100_v50, %v2097_v47 }
  0x4d   : > { %1295 = vmatprep.subr.mxu1 %v1831_v58  ;;  %1261 = vmatpush3.msra.mxu0 %v2094_v48 }
  0x4e   : > { %1296 = vmatpush3.msra.mxu1 %v1841_v60  ;;  %1262 = vmatprep.subr.mxu0 %v2107_v40 }
  0x4f   : > { %1297 = vmatprep.subr.mxu1 %v1859_v51  ;;  %1263 = vmatpush3.msra.mxu0 %v2114_v52 }
  0x50   : > { %651 = vmatprep.mubr.f32.mxu0 %v1824_v57  ;;  %1298 = vmatpush3.msra.mxu1 %v1872_v55 }
  0x51   : > { %763 = vmatprep.mubr.f32.mxu1 %v666_v42  ;;  %652 = vmatmul.mubr.f32.vlgmr.msra.gmra.mxu0 %v1852_v63 }
  0x52   : > { %764 = vmatmul.mubr.f32.vlgmr.msra.gmra.mxu1 %v665_v54  ;;  %1302 = vmatprep.subr.mxu0 %v1483_v1  ;;  %v2243_v1 = vld [vmem:[#allocation2_spill] sm:$0xff] }
  0x53   : > { %1337 = vmatprep.subr.mxu1 %v1888_v59  ;;  %1303 = vmatpush3.msra.mxu0 %v1495_v3  ;;  %v2244_v3 = vld [vmem:[#allocation3_spill] sm:$0xff] }
  0x54   : > { %1338 = vmatpush3.msra.mxu1 %v1894_v61  ;;  %1304 = vmatprep.subr.mxu0 %v1505_v5  ;;  %v2245_v5 = vld [vmem:[#allocation4_spill] sm:$0xff] }
  0x55   : > { %1339 = vmatprep.subr.mxu1 %v1899_v53  ;;  %1305 = vmatpush3.msra.mxu0 %v1517_v7  ;;  %v2246_v7 = vld [vmem:[#allocation5_spill] sm:$0xff] }
  0x56   : > { %1340 = vmatpush3.msra.mxu1 %v1906_v49  ;;  %1306 = vmatprep.subr.mxu0 %v1529_v9  ;;  %v2247_v9 = vld [vmem:[#allocation12_spill] sm:$0xff] }
  0x57   : > { %1341 = vmatprep.subr.mxu1 %v1913_v45  ;;  %1307 = vmatpush3.msra.mxu0 %v1539_v11  ;;  %v2248_v11 = vld [vmem:[#allocation6_spill] sm:$0xff] }
  0x58   : > { %1342 = vmatpush3.msra.mxu1 %v1920_v0  ;;  %1308 = vmatprep.subr.mxu0 %v1551_v13  ;;  %v2249_v13 = vld [vmem:[#allocation13_spill] sm:$0xff] }
  0x59   : > { %1343 = vmatprep.subr.mxu1 %v1927_v2  ;;  %1309 = vmatpush3.msra.mxu0 %v1563_v15  ;;  %v2250_v15 = vld [vmem:[#allocation7_spill] sm:$0xff] }
  0x5a   : > { %1344 = vmatpush3.msra.mxu1 %v1934_v4  ;;  %1310 = vmatprep.subr.mxu0 %v1575_v17  ;;  %v2251_v17 = vld [vmem:[#allocation8_spill] sm:$0xff] }
  0x5b   : > { %1345 = vmatprep.subr.mxu1 %v1941_v6  ;;  %1311 = vmatpush3.msra.mxu0 %v1587_v19  ;;  %v2252_v19 = vld [vmem:[#allocation9_spill] sm:$0xff] }
  0x5c   : > { %1346 = vmatpush3.msra.mxu1 %v1948_v8  ;;  %1312 = vmatprep.subr.mxu0 %v1599_v21  ;;  %v2253_v21 = vld [vmem:[#allocation10_spill] sm:$0xff] }
  0x5d   : > { %1347 = vmatprep.subr.mxu1 %v1955_v10  ;;  %1313 = vmatpush3.msra.mxu0 %v1611_v23  ;;  %v2254_v23 = vld [vmem:[#allocation11_spill] sm:$0xff] }
  0x5e   : > { %1348 = vmatpush3.msra.mxu1 %v1962_v12  ;;  %1314 = vmatprep.subr.mxu0 %v1623_v25 }
  0x5f   : > { %1349 = vmatprep.subr.mxu1 %v1969_v14  ;;  %1315 = vmatpush3.msra.mxu0 %v1635_v27 }
  0x60   : > { %1350 = vmatpush3.msra.mxu1 %v1976_v16  ;;  %1316 = vmatprep.subr.mxu0 %v1648_v29 }
  0x61   : > { %1351 = vmatprep.subr.mxu1 %v1983_v18  ;;  %1317 = vmatpush3.msra.mxu0 %v1660_v31 }
  0x62   : > { %1352 = vmatpush3.msra.mxu1 %v1990_v20  ;;  %1318 = vmatprep.subr.mxu0 %v1672_v33 }
  0x63   : > { %1353 = vmatprep.subr.mxu1 %v1997_v22  ;;  %1319 = vmatpush3.msra.mxu0 %v1684_v35 }
  0x64   : > { %1354 = vmatpush3.msra.mxu1 %v2004_v24  ;;  %1320 = vmatprep.subr.mxu0 %v1701_v37 }
  0x65   : > { %1355 = vmatprep.subr.mxu1 %v2011_v26  ;;  %1321 = vmatpush3.msra.mxu0 %v1713_v39 }
  0x66   : > { %1356 = vmatpush3.msra.mxu1 %v2018_v28  ;;  %1322 = vmatprep.subr.mxu0 %v1725_v41 }
  0x67   : > { %1357 = vmatprep.subr.mxu1 %v2025_v30  ;;  %1323 = vmatpush3.msra.mxu0 %v1737_v43 }
  0x68   : > { %1358 = vmatpush3.msra.mxu1 %v2032_v32  ;;  %1324 = vmatprep.subr.mxu0 %v2243_v1 }
  0x69   : > { %1359 = vmatprep.subr.mxu1 %v2039_v34  ;;  %1325 = vmatpush3.msra.mxu0 %v2244_v3 }
  0x6a   : > { %1360 = vmatpush3.msra.mxu1 %v2046_v36  ;;  %1326 = vmatprep.subr.mxu0 %v2245_v5 }
  0x6b   : > { %1361 = vmatprep.subr.mxu1 %v2053_v38  ;;  %1327 = vmatpush3.msra.mxu0 %v2246_v7 }
  0x6c   : > { %1362 = vmatpush3.msra.mxu1 %v2247_v9  ;;  %1328 = vmatprep.subr.mxu0 %v2248_v11 }
  0x6d   : > { %1363 = vmatprep.subr.mxu1 %v2249_v13  ;;  %1329 = vmatpush3.msra.mxu0 %v2250_v15 }
  0x6e   : > { %1364 = vmatpush3.msra.mxu1 %v2074_v44  ;;  %1330 = vmatprep.subr.mxu0 %v2251_v17 }
  0x6f   : > { %1365 = vmatprep.subr.mxu1 %v2081_v46  ;;  %1331 = vmatpush3.msra.mxu0 %v2252_v19 }
  0x70   : > { %1366 = vmatpush3.msra.mxu1 %v2094_v48  ;;  %1332 = vmatprep.subr.mxu0 %v2253_v21 }
  0x71   : > { %1367 = vmatprep.subr.mxu1 %v2107_v40  ;;  %1333 = vmatpush3.msra.mxu0 %v2254_v23 }
  0x72   : > { %865 = vmatprep.mubr.f32.mxu0 %v2084_v56  ;;  %1368 = vmatpush3.msra.mxu1 %v2114_v52 }
  0x73   : > { %967 = vmatprep.mubr.f32.mxu1 %v2087_v62  ;;  %866 = vmatmul.mubr.f32.vlgmr.msra.gmra.mxu0 %v2097_v47 }
  0x74   : > { %968 = vmatmul.mubr.f32.vlgmr.msra.gmra.mxu1 %v2100_v50 }
  0xef   : > { %v1194_v25 = vpop.f32.mrf.mxu0 }
  0xf0   : > { %v1229_v27 = vpop.f32.mrf.mxu1 }
  0xf1   : > { %v1195_v29 = vpop.f32.mrf.mxu0 }
  0xf2   : > { %v1230_v31 = vpop.f32.mrf.mxu1  ;;  %v1196_v33 = vadd.f32 %v1195_v29, %v1194_v25 }
  0xf3   : > { %v1231_v35 = vadd.f32 %v1230_v31, %v1229_v27 }
  0xf5   : > { %v659_v37 = vadd.f32 %v1231_v35, %v1196_v33 }
  0xf7   : > { %660 = vst [vmem:[%s344_s12] sm:$0xff] %v659_v37 }
 0x111   : > { %v1264_v39 = vpop.f32.mrf.mxu0 }
 0x112   : > { %v1299_v51 = vpop.f32.mrf.mxu1 }
 0x113   : > { %v1265_v41 = vpop.f32.mrf.mxu0 }
 0x114   : > { %v1266_v43 = vadd.f32 %v1265_v41, %v1264_v39  ;;  %v1300_v53 = vpop.f32.mrf.mxu1 }
 0x115   : > { %v1301_v60 = vadd.f32 %v1300_v53, %v1299_v51 }
 0x116   : > { %v657_v47 = vsub.f32 %v1196_v33, %v1266_v43 }
 0x118   : > { %658 = vst [vmem:[%s335_s14] sm:$0xff] %v657_v47 }
 0x133   : > { %v1334_v55 = vpop.f32.mrf.mxu0 }
 0x134   : > { %v1369_v57 = vpop.f32.mrf.mxu1 }
 0x135   : > { %v1335_v58 = vpop.f32.mrf.mxu0 }
 0x136   : > { %v1370_v59 = vpop.f32.mrf.mxu1  ;;  %v1336_v61 = vadd.f32 %v1335_v58, %v1334_v55 }
 0x137   : > { %v1371_v63 = vadd.f32 %v1370_v59, %v1369_v57 }
 0x138   : > { %v975_v49 = vadd.f32 %v1336_v61, %v1301_v60 }
 0x139   : > { %v973_v45 = vsub.f32 %v1301_v60, %v1371_v63 }
 0x13a   : > { %976 = vst [vmem:[%s344_s12 + $0x8] sm:$0xff] %v975_v49 }
 0x13b   : > { %974 = vst [vmem:[%s335_s14 + $0x8] sm:$0xff] %v973_v45 }
 0x13c PF: > { %s17_s23 = sadd.s32 1, %s1418_s23   ;;  %s2255_s21 = smov %s1414_s22 }
 0x13d   : > { %p14_p5 = scmp.ge.s32.totalorder %s17_s23, 4   ;;  %s2256_s22 = smov %s2258_s24 }
 0x13f   :  { %16 = sbr.rel (!%p14_p5) target bundleno = 2 (0x2), region = 85 }

// kernel: forward.4
= control target key start
LH: loop header
LB: loop body
LE: loop exit
PB: predicated region body
PF: predicated region fallthrough
CT: control target
= control target key end

     0   :  { %14 = vsyncpa [#allocation6], 0  ;;  %s2424_s27 = smov 0   ;;  %s2426_s28 = smov 0   ;;  %s4313_s0 = inlined_call_operand.vmem [shape: f32[256,256], index: 0, kind: input, shape index: {}]   ;;  %s4314_s1 = inlined_call_operand.vmem [shape: f32[256,256], index: 1, kind: input, shape index: {}]   ;;  %s4315_s2 = inlined_call_operand.vmem [shape: f32[256,256], index: 2, kind: input, shape index: {}]   ;;  %s4316_s3 = inlined_call_operand.vmem [shape: f32[512,256], index: 3, kind: input, shape index: {}]   ;;  %s4317_s4 = inlined_call_operand.vmem [shape: f32[2], index: 4, kind: input, shape index: {}]   ;;  %s4318_s5 = inlined_call_operand.vmem [shape: f32[2,8,512], index: 5, kind: input, shape index: {}]   ;;  %s4319_s6 = inlined_call_operand.vmem [shape: f32[2,8,512], index: 6, kind: input, shape index: {}]   ;;  %s4320_s7 = inlined_call_operand.vmem [shape: f32[2,8,256], index: 7, kind: output, shape index: {0}]   ;;  %s4321_s8 = inlined_call_operand.vmem [shape: f32[2,8,256], index: 8, kind: output, shape index: {1}]  }
   0x1   :  { %s2428_s29 = smov 0  }
   0x2 LB: > { %s2231_s30 = sadd.s32 4294967295, %s2368_s29   ;;  %s32_s9 = sadd.s32 1, %s2364_s28  ;;  %s2368_s29 = sphi %s2428_s29, %s20_s29   ;;  %s2364_s28 = sphi %s2426_s28, %s4393_s28   ;;  %s2360_s27 = sphi %s2424_s27, %s4392_s27  }
   0x3   : > { %p34_p0 = scmp.ge.s32.totalorder %s32_s9, 2  ;;  %p2233_p1 = scmp.ge.s32.totalorder %s2368_s29, 1 }
   0x4   : > { %p254_p2 = scmp.lt.s32.totalorder %s2368_s29, 3  ;;  %p2449_p4 = scmp.eq.s32.totalorder %s2231_s30, 0 }
   0x5   : > { %s4395_s9 = smov (%p34_p0, %s32_s9), 0  ;;  %s279_s14 = sshll.u32 %s4317_s4, 4  ;;  %s280_s14 = int_to_ptr.vmem [resolvable:$true] %s279_s14 }
   0x6   : > { %p2445_p3 = pnand %p2233_p1, %p254_p2  ;;  %s2327_s15 = scalar_lea.vmem %s280_s14, 16 }
   0x7   : > { %p2328_p7 = scmp.ne.s32.totalorder %s280_s14, %s2327_s15  ;;  %p2335_p11 = scmp.lt.s32.totalorder %s280_s14, %s280_s14 }
   0x8   : > { %p2280_p5 = pneg %p2445_p3  ;;  %p2336_p12 = scmp.lt.s32.totalorder %s2327_s15, %s2327_s15 }
   0xa   : > { %p2281_p6 = pnand %p2449_p4, %p2280_p5  ;;  %p2337_p13 = por %p2336_p12, %p2335_p11 }
   0xc   : > { %p2329_p8 = pneg %p2281_p6 }
   0xe   : > { %p2330_p9 = pnand %p2329_p8, %p2328_p7 }
  0x10   : > { %p2331_p10 = pneg %p2330_p9 }
  0x12   : > { %p2338_p0 = pnand %p2337_p13, %p2331_p10 }
  0x14   : > { %2341 = shalt.err (!%p2338_p0)
}
  0x15   : > { %s2370_s16 = smov [#allocation5]   ;;  %316 = sbr.rel (%p2445_p3) target bundleno = 963 (0x3c3), region = 48 }
  0x16   : > { %2283 = dma.vmem_to_smem (!%p2281_p6), %s280_s14, 16, %s2370_s16, [#allocation6]  }
  0x1a   : > { %2355 = dma.done.wait (%p2449_p4), [#allocation6], 16  }
  0x1b   : > { %2357 = vsyncadd (%p2449_p4), [#allocation6], 4294967280 }
  0x1c   : > { %322 = sfence }
  0x1d   : > { %v2469_v0 = vld [vmem:[%s4313_s0 + $0xf8] sm:$0xff]  ;;  %v2477_v2 = vld [vmem:[%s4313_s0 + $0xf0] sm:$0xff]  ;;  %v2486_v4 = vld [vmem:[%s4313_s0 + $0xe8] sm:$0xff]  ;;  %p377_p1 = scmp.lt.s32.totalorder %s2360_s27, 1  ;;  %s1549_s20 = sld [smem:[#allocation5 + %s2360_s27]] }
  0x1e   : > { %v585_v1 = vld [vmem:[%s4314_s1 + $0xf8] sm:$0xff]  ;;  %483 = vmatprep.subr.mxu0 %v2469_v0  ;;  %v584_v3 = vld [vmem:[%s4314_s1 + $0xf0] sm:$0xff]  ;;  %v583_v5 = vld [vmem:[%s4314_s1 + $0xe8] sm:$0xff]  ;;  %s2378_s22 = smov 126  }
  0x1f   : > { %618 = vmatprep.subr.mxu1 %v585_v1  ;;  %484 = vmatpush1.msra.mxu0 %v2477_v2  ;;  %v2495_v6 = vld [vmem:[%s4313_s0 + $0xe0] sm:$0xff]  ;;  %v2503_v8 = vld [vmem:[%s4313_s0 + $0xd8] sm:$0xff]  ;;  %v2512_v10 = vld [vmem:[%s4313_s0 + $0xd0] sm:$0xff]  ;;  %s2917_s19 = scalar_select %p377_p1, %s2360_s27, 1 }
  0x20   : > { %619 = vmatpush1.msra.mxu1 %v584_v3  ;;  %v582_v7 = vld [vmem:[%s4314_s1 + $0xe0] sm:$0xff]  ;;  %485 = vmatprep.subr.mxu0 %v2486_v4  ;;  %v581_v9 = vld [vmem:[%s4314_s1 + $0xd8] sm:$0xff]  ;;  %v580_v11 = vld [vmem:[%s4314_s1 + $0xd0] sm:$0xff]  ;;  %s2377_s27 = smov 2  }
  0x21   : > { %620 = vmatprep.subr.mxu1 %v583_v5  ;;  %486 = vmatpush1.msra.mxu0 %v2495_v6  ;;  %v2521_v12 = vld [vmem:[%s4313_s0 + $0xc8] sm:$0xff]  ;;  %v2530_v14 = vld [vmem:[%s4313_s0 + $0xc0] sm:$0xff]  ;;  %v2539_v16 = vld [vmem:[%s4313_s0 + $0xb8] sm:$0xff]  ;;  %s2264_s18 = sshll.u32 %s2917_s19, 5  ;;  %s2266_s23 = sshll.u32 %s2917_s19, 4 }
  0x22   : > { %621 = vmatpush1.msra.mxu1 %v582_v7  ;;  %v579_v13 = vld [vmem:[%s4314_s1 + $0xc8] sm:$0xff]  ;;  %487 = vmatprep.subr.mxu0 %v2503_v8  ;;  %v578_v15 = vld [vmem:[%s4314_s1 + $0xc0] sm:$0xff]  ;;  %v577_v17 = vld [vmem:[%s4314_s1 + $0xb8] sm:$0xff]  ;;  %s2986_s16 = scalar_lea.vmem %s4318_s5, %s2264_s18  ;;  %s2991_s21 = scalar_lea.vmem %s4319_s6, %s2264_s18 }
  0x23   : > { %622 = vmatprep.subr.mxu1 %v581_v9  ;;  %488 = vmatpush1.msra.mxu0 %v2512_v10  ;;  %v2548_v18 = vld [vmem:[%s4313_s0 + $0xb0] sm:$0xff]  ;;  %v2557_v20 = vld [vmem:[%s4313_s0 + $0xa8] sm:$0xff]  ;;  %v2566_v22 = vld [vmem:[%s4313_s0 + $0xa0] sm:$0xff]  ;;  %s403_s26 = scalar_lea.vmem %s4320_s7, %s2266_s23 }
  0x24   : > { %623 = vmatpush1.msra.mxu1 %v580_v11  ;;  %489 = vmatprep.subr.mxu0 %v2521_v12  ;;  %v576_v19 = vld [vmem:[%s4314_s1 + $0xb0] sm:$0xff]  ;;  %v575_v21 = vld [vmem:[%s4314_s1 + $0xa8] sm:$0xff]  ;;  %v574_v23 = vld [vmem:[%s4314_s1 + $0xa0] sm:$0xff] }
  0x25   : > { %624 = vmatprep.subr.mxu1 %v579_v13  ;;  %490 = vmatpush1.msra.mxu0 %v2530_v14  ;;  %v2575_v24 = vld [vmem:[%s4313_s0 + $0x98] sm:$0xff]  ;;  %v2584_v26 = vld [vmem:[%s4313_s0 + $0x90] sm:$0xff]  ;;  %v2593_v28 = vld [vmem:[%s4313_s0 + $0x88] sm:$0xff] }
  0x26   : > { %625 = vmatpush1.msra.mxu1 %v578_v15  ;;  %491 = vmatprep.subr.mxu0 %v2539_v16  ;;  %v573_v25 = vld [vmem:[%s4314_s1 + $0x98] sm:$0xff]  ;;  %v572_v27 = vld [vmem:[%s4314_s1 + $0x90] sm:$0xff]  ;;  %v571_v29 = vld [vmem:[%s4314_s1 + $0x88] sm:$0xff] }
  0x27   : > { %626 = vmatprep.subr.mxu1 %v577_v17  ;;  %492 = vmatpush1.msra.mxu0 %v2548_v18  ;;  %v2602_v30 = vld [vmem:[%s4313_s0 + $0x80] sm:$0xff]  ;;  %v2611_v32 = vld [vmem:[%s4313_s0 + $0x78] sm:$0xff]  ;;  %v2620_v34 = vld [vmem:[%s4313_s0 + $0x70] sm:$0xff] }
  0x28   : > { %627 = vmatpush1.msra.mxu1 %v576_v19  ;;  %493 = vmatprep.subr.mxu0 %v2557_v20  ;;  %v570_v31 = vld [vmem:[%s4314_s1 + $0x80] sm:$0xff]  ;;  %v569_v33 = vld [vmem:[%s4314_s1 + $0x78] sm:$0xff]  ;;  %v568_v35 = vld [vmem:[%s4314_s1 + $0x70] sm:$0xff] }
  0x29   : > { %628 = vmatprep.subr.mxu1 %v575_v21  ;;  %494 = vmatpush1.msra.mxu0 %v2566_v22  ;;  %v2629_v36 = vld [vmem:[%s4313_s0 + $0x68] sm:$0xff]  ;;  %v2638_v38 = vld [vmem:[%s4313_s0 + $0x60] sm:$0xff]  ;;  %v2647_v40 = vld [vmem:[%s4313_s0 + $0x58] sm:$0xff] }
  0x2a   : > { %629 = vmatpush1.msra.mxu1 %v574_v23  ;;  %495 = vmatprep.subr.mxu0 %v2575_v24  ;;  %v567_v37 = vld [vmem:[%s4314_s1 + $0x68] sm:$0xff]  ;;  %v566_v39 = vld [vmem:[%s4314_s1 + $0x60] sm:$0xff]  ;;  %v565_v41 = vld [vmem:[%s4314_s1 + $0x58] sm:$0xff] }
  0x2b   : > { %630 = vmatprep.subr.mxu1 %v573_v25  ;;  %496 = vmatpush1.msra.mxu0 %v2584_v26  ;;  %v2656_v42 = vld [vmem:[%s4313_s0 + $0x50] sm:$0xff]  ;;  %v2665_v44 = vld [vmem:[%s4313_s0 + $0x48] sm:$0xff]  ;;  %v2674_v46 = vld [vmem:[%s4313_s0 + $0x40] sm:$0xff] }
  0x2c   : > { %631 = vmatpush1.msra.mxu1 %v572_v27  ;;  %497 = vmatprep.subr.mxu0 %v2593_v28  ;;  %v564_v43 = vld [vmem:[%s4314_s1 + $0x50] sm:$0xff]  ;;  %v563_v45 = vld [vmem:[%s4314_s1 + $0x48] sm:$0xff]  ;;  %v562_v47 = vld [vmem:[%s4314_s1 + $0x40] sm:$0xff] }
  0x2d   : > { %632 = vmatprep.subr.mxu1 %v571_v29  ;;  %498 = vmatpush1.msra.mxu0 %v2602_v30  ;;  %v2683_v48 = vld [vmem:[%s4313_s0 + $0x38] sm:$0xff]  ;;  %v2692_v50 = vld [vmem:[%s4313_s0 + $0x30] sm:$0xff]  ;;  %v2701_v52 = vld [vmem:[%s4313_s0 + $0x28] sm:$0xff] }
  0x2e   : > { %633 = vmatpush1.msra.mxu1 %v570_v31  ;;  %499 = vmatprep.subr.mxu0 %v2611_v32  ;;  %v561_v49 = vld [vmem:[%s4314_s1 + $0x38] sm:$0xff]  ;;  %v560_v51 = vld [vmem:[%s4314_s1 + $0x30] sm:$0xff]  ;;  %v559_v53 = vld [vmem:[%s4314_s1 + $0x28] sm:$0xff] }
  0x2f   : > { %634 = vmatprep.subr.mxu1 %v569_v33  ;;  %500 = vmatpush1.msra.mxu0 %v2620_v34  ;;  %v2710_v54 = vld [vmem:[%s4313_s0 + $0x20] sm:$0xff]  ;;  %v2719_v56 = vld [vmem:[%s4313_s0 + $0x18] sm:$0xff]  ;;  %v2728_v58 = vld [vmem:[%s4313_s0 + $0x10] sm:$0xff] }
  0x30   : > { %635 = vmatpush1.msra.mxu1 %v568_v35  ;;  %501 = vmatprep.subr.mxu0 %v2629_v36  ;;  %v558_v55 = vld [vmem:[%s4314_s1 + $0x20] sm:$0xff]  ;;  %v557_v57 = vld [vmem:[%s4314_s1 + $0x18] sm:$0xff]  ;;  %v556_v59 = vld [vmem:[%s4314_s1 + $0x10] sm:$0xff] }
  0x31   : > { %636 = vmatprep.subr.mxu1 %v567_v37  ;;  %502 = vmatpush1.msra.mxu0 %v2638_v38  ;;  %v2737_v60 = vld [vmem:[%s4313_s0 + $0x8] sm:$0xff]  ;;  %v2746_v62 = vld [vmem:[%s4313_s0] sm:$0xff]  ;;  %v2755_v1 = vld [vmem:[%s4313_s0 + $0x1f8] sm:$0xff] }
  0x32   : > { %637 = vmatpush1.msra.mxu1 %v566_v39  ;;  %503 = vmatprep.subr.mxu0 %v2647_v40  ;;  %v555_v61 = vld [vmem:[%s4314_s1 + $0x8] sm:$0xff]  ;;  %v554_v63 = vld [vmem:[%s4314_s1] sm:$0xff]  ;;  %v617_v3 = vld [vmem:[%s4314_s1 + $0x1f8] sm:$0xff] }
  0x33   : > { %638 = vmatprep.subr.mxu1 %v565_v41  ;;  %504 = vmatpush1.msra.mxu0 %v2656_v42  ;;  %v2764_v5 = vld [vmem:[%s4313_s0 + $0x1f0] sm:$0xff]  ;;  %v2773_v9 = vld [vmem:[%s4313_s0 + $0x1e8] sm:$0xff]  ;;  %v2782_v13 = vld [vmem:[%s4313_s0 + $0x1e0] sm:$0xff] }
  0x34   : > { %639 = vmatpush1.msra.mxu1 %v564_v43  ;;  %505 = vmatprep.subr.mxu0 %v2665_v44  ;;  %v616_v7 = vld [vmem:[%s4314_s1 + $0x1f0] sm:$0xff]  ;;  %v615_v11 = vld [vmem:[%s4314_s1 + $0x1e8] sm:$0xff]  ;;  %v614_v15 = vld [vmem:[%s4314_s1 + $0x1e0] sm:$0xff] }
  0x35   : > { %640 = vmatprep.subr.mxu1 %v563_v45  ;;  %506 = vmatpush1.msra.mxu0 %v2674_v46  ;;  %v2791_v17 = vld [vmem:[%s4313_s0 + $0x1d8] sm:$0xff]  ;;  %v2800_v21 = vld [vmem:[%s4313_s0 + $0x1d0] sm:$0xff]  ;;  %v2809_v25 = vld [vmem:[%s4313_s0 + $0x1c8] sm:$0xff] }
  0x36   : > { %641 = vmatpush1.msra.mxu1 %v562_v47  ;;  %507 = vmatprep.subr.mxu0 %v2683_v48  ;;  %v613_v19 = vld [vmem:[%s4314_s1 + $0x1d8] sm:$0xff]  ;;  %v612_v23 = vld [vmem:[%s4314_s1 + $0x1d0] sm:$0xff]  ;;  %v611_v27 = vld [vmem:[%s4314_s1 + $0x1c8] sm:$0xff] }
  0x37   : > { %642 = vmatprep.subr.mxu1 %v561_v49  ;;  %508 = vmatpush1.msra.mxu0 %v2692_v50  ;;  %v2818_v29 = vld [vmem:[%s4313_s0 + $0x1c0] sm:$0xff]  ;;  %v2827_v33 = vld [vmem:[%s4313_s0 + $0x1b8] sm:$0xff]  ;;  %v2836_v37 = vld [vmem:[%s4313_s0 + $0x1b0] sm:$0xff] }
  0x38   : > { %643 = vmatpush1.msra.mxu1 %v560_v51  ;;  %509 = vmatprep.subr.mxu0 %v2701_v52  ;;  %v610_v31 = vld [vmem:[%s4314_s1 + $0x1c0] sm:$0xff]  ;;  %v609_v35 = vld [vmem:[%s4314_s1 + $0x1b8] sm:$0xff]  ;;  %v608_v39 = vld [vmem:[%s4314_s1 + $0x1b0] sm:$0xff] }
  0x39   : > { %644 = vmatprep.subr.mxu1 %v559_v53  ;;  %510 = vmatpush1.msra.mxu0 %v2710_v54  ;;  %v2845_v41 = vld [vmem:[%s4313_s0 + $0x1a8] sm:$0xff]  ;;  %v2854_v45 = vld [vmem:[%s4313_s0 + $0x1a0] sm:$0xff]  ;;  %v2863_v49 = vld [vmem:[%s4313_s0 + $0x198] sm:$0xff] }
  0x3a   : > { %645 = vmatpush1.msra.mxu1 %v558_v55  ;;  %511 = vmatprep.subr.mxu0 %v2719_v56  ;;  %v607_v43 = vld [vmem:[%s4314_s1 + $0x1a8] sm:$0xff]  ;;  %v606_v47 = vld [vmem:[%s4314_s1 + $0x1a0] sm:$0xff]  ;;  %v605_v51 = vld [vmem:[%s4314_s1 + $0x198] sm:$0xff] }
  0x3b   : > { %646 = vmatprep.subr.mxu1 %v557_v57  ;;  %512 = vmatpush1.msra.mxu0 %v2728_v58  ;;  %v2872_v53 = vld [vmem:[%s4313_s0 + $0x190] sm:$0xff]  ;;  %v2882_v57 = vld [vmem:[%s4313_s0 + $0x188] sm:$0xff] }
  0x3c   : > { %647 = vmatpush1.msra.mxu1 %v556_v59  ;;  %513 = vmatprep.subr.mxu0 %v2737_v60  ;;  %v604_v55 = vld [vmem:[%s4314_s1 + $0x190] sm:$0xff]  ;;  %v603_v59 = vld [vmem:[%s4314_s1 + $0x188] sm:$0xff] }
  0x3d   : > { %648 = vmatprep.subr.mxu1 %v555_v61  ;;  %514 = vmatpush1.msra.mxu0 %v2746_v62  ;;  %v2891_v61 = vld [vmem:[%s4313_s0 + $0x180] sm:$0xff] }
  0x3e   : > { %649 = vmatpush1.msra.mxu1 %v554_v63  ;;  %515 = vmatprep.subr.mxu0 %v2755_v1  ;;  %v602_v63 = vld [vmem:[%s4314_s1 + $0x180] sm:$0xff] }
  0x3f   : > { %650 = vmatprep.subr.mxu1 %v617_v3  ;;  %516 = vmatpush2.msra.mxu0 %v2764_v5  ;;  %v2900_v3 = vld [vmem:[%s4313_s0 + $0x178] sm:$0xff] }
  0x40   : > { %651 = vmatpush2.msra.mxu1 %v616_v7  ;;  %517 = vmatprep.subr.mxu0 %v2773_v9  ;;  %v601_v7 = vld [vmem:[%s4314_s1 + $0x178] sm:$0xff] }
  0x41   : > { %652 = vmatprep.subr.mxu1 %v615_v11  ;;  %518 = vmatpush2.msra.mxu0 %v2782_v13  ;;  %v2909_v11 = vld [vmem:[%s4313_s0 + $0x170] sm:$0xff] }
  0x42   : > { %653 = vmatpush2.msra.mxu1 %v614_v15  ;;  %519 = vmatprep.subr.mxu0 %v2791_v17  ;;  %v600_v15 = vld [vmem:[%s4314_s1 + $0x170] sm:$0xff] }
  0x43   : > { %654 = vmatprep.subr.mxu1 %v613_v19  ;;  %520 = vmatpush2.msra.mxu0 %v2800_v21  ;;  %v2923_v19 = vld [vmem:[%s4313_s0 + $0x168] sm:$0xff] }
  0x44   : > { %655 = vmatpush2.msra.mxu1 %v612_v23  ;;  %521 = vmatprep.subr.mxu0 %v2809_v25  ;;  %4346 = vst [vmem:[#allocation8_spill] sm:$0xff] %v2923_v19  ;;  %v599_v23 = vld [vmem:[%s4314_s1 + $0x168] sm:$0xff] }
  0x45   : > { %656 = vmatprep.subr.mxu1 %v611_v27  ;;  %522 = vmatpush2.msra.mxu0 %v2818_v29  ;;  %v2932_v27 = vld [vmem:[%s4313_s0 + $0x160] sm:$0xff] }
  0x46   : > { %657 = vmatpush2.msra.mxu1 %v610_v31  ;;  %523 = vmatprep.subr.mxu0 %v2827_v33  ;;  %4347 = vst [vmem:[#allocation9_spill] sm:$0xff] %v2932_v27  ;;  %v598_v31 = vld [vmem:[%s4314_s1 + $0x160] sm:$0xff] }
  0x47   : > { %658 = vmatprep.subr.mxu1 %v609_v35  ;;  %524 = vmatpush2.msra.mxu0 %v2836_v37  ;;  %v2941_v35 = vld [vmem:[%s4313_s0 + $0x158] sm:$0xff] }
  0x48   : > { %659 = vmatpush2.msra.mxu1 %v608_v39  ;;  %525 = vmatprep.subr.mxu0 %v2845_v41  ;;  %4348 = vst [vmem:[#allocation10_spill] sm:$0xff] %v2941_v35  ;;  %v597_v39 = vld [vmem:[%s4314_s1 + $0x158] sm:$0xff] }
  0x49   : > { %660 = vmatprep.subr.mxu1 %v607_v43  ;;  %526 = vmatpush2.msra.mxu0 %v2854_v45  ;;  %v2950_v43 = vld [vmem:[%s4313_s0 + $0x150] sm:$0xff] }
  0x4a   : > { %661 = vmatpush2.msra.mxu1 %v606_v47  ;;  %527 = vmatprep.subr.mxu0 %v2863_v49  ;;  %4349 = vst [vmem:[#allocation11_spill] sm:$0xff] %v2950_v43  ;;  %v596_v47 = vld [vmem:[%s4314_s1 + $0x150] sm:$0xff] }
  0x4b   : > { %662 = vmatprep.subr.mxu1 %v605_v51  ;;  %528 = vmatpush2.msra.mxu0 %v2872_v53  ;;  %v2960_v51 = vld [vmem:[%s4313_s0 + $0x148] sm:$0xff] }
  0x4c   : > { %663 = vmatpush2.msra.mxu1 %v604_v55  ;;  %529 = vmatprep.subr.mxu0 %v2882_v57  ;;  %4350 = vst [vmem:[#allocation12_spill] sm:$0xff] %v2960_v51  ;;  %v595_v55 = vld [vmem:[%s4314_s1 + $0x148] sm:$0xff] }
  0x4d   : > { %664 = vmatprep.subr.mxu1 %v603_v59  ;;  %530 = vmatpush2.msra.mxu0 %v2891_v61  ;;  %v2969_v59 = vld [vmem:[%s4313_s0 + $0x140] sm:$0xff] }
  0x4e   : > { %665 = vmatpush2.msra.mxu1 %v602_v63  ;;  %531 = vmatprep.subr.mxu0 %v2900_v3  ;;  %4351 = vst [vmem:[#allocation13_spill] sm:$0xff] %v2969_v59  ;;  %v594_v63 = vld [vmem:[%s4314_s1 + $0x140] sm:$0xff] }
  0x4f   : > { %666 = vmatprep.subr.mxu1 %v601_v7  ;;  %532 = vmatpush2.msra.mxu0 %v2909_v11  ;;  %v2978_v7 = vld [vmem:[%s4313_s0 + $0x138] sm:$0xff] }
  0x50   : > { %667 = vmatpush2.msra.mxu1 %v600_v15  ;;  %533 = vmatprep.subr.mxu0 %v2923_v19  ;;  %4352 = vst [vmem:[#allocation14_spill] sm:$0xff] %v2978_v7  ;;  %v593_v15 = vld [vmem:[%s4314_s1 + $0x138] sm:$0xff]  ;;  %v3060_v19 = vld [vmem:[%s4313_s0 + $0x100] sm:$0xff] }
  0x51   : > { %668 = vmatprep.subr.mxu1 %v599_v23  ;;  %534 = vmatpush2.msra.mxu0 %v2932_v27  ;;  %v2997_v23 = vld [vmem:[%s4313_s0 + $0x130] sm:$0xff]  ;;  %v3050_v27 = vld [vmem:[%s4313_s0 + $0x108] sm:$0xff] }
  0x52   : > { %669 = vmatpush2.msra.mxu1 %v598_v31  ;;  %535 = vmatprep.subr.mxu0 %v2941_v35  ;;  %4353 = vst [vmem:[#allocation15_spill] sm:$0xff] %v2997_v23  ;;  %v592_v31 = vld [vmem:[%s4314_s1 + $0x130] sm:$0xff]  ;;  %v3044_v35 = vld [vmem:[%s2991_s21] sm:$0xff] }
  0x53   : > { %670 = vmatprep.subr.mxu1 %v597_v39  ;;  %536 = vmatpush2.msra.mxu0 %v2950_v43  ;;  %v3006_v39 = vld [vmem:[%s4313_s0 + $0x128] sm:$0xff]  ;;  %v3028_v43 = vld [vmem:[%s4313_s0 + $0x118] sm:$0xff] }
  0x54   : > { %671 = vmatpush2.msra.mxu1 %v596_v47  ;;  %537 = vmatprep.subr.mxu0 %v2960_v51  ;;  %4354 = vst [vmem:[#allocation16_spill] sm:$0xff] %v3006_v39  ;;  %v591_v47 = vld [vmem:[%s4314_s1 + $0x128] sm:$0xff] }
  0x55   : > { %672 = vmatprep.subr.mxu1 %v595_v55  ;;  %538 = vmatpush2.msra.mxu0 %v2969_v59  ;;  %v3014_v55 = vld [vmem:[%s4313_s0 + $0x120] sm:$0xff]  ;;  %v414_v59 = vld [vmem:[%s2986_s16 + $0x8] sm:$0xff] }
  0x56   : > { %673 = vmatpush2.msra.mxu1 %v594_v63  ;;  %4355 = vst [vmem:[#allocation17_spill] sm:$0xff] %v3014_v55  ;;  %539 = vmatprep.subr.mxu0 %v2978_v7  ;;  %v590_v63 = vld [vmem:[%s4314_s1 + $0x120] sm:$0xff]  ;;  %v3022_v51 = vld [vmem:[%s2991_s21 + $0x8] sm:$0xff]  ;;  %v589_v7 = vld [vmem:[%s4314_s1 + $0x118] sm:$0xff] }
  0x57   : > { %674 = vmatprep.subr.mxu1 %v593_v15  ;;  %540 = vmatpush2.msra.mxu0 %v2997_v23  ;;  %v3036_v15 = vld [vmem:[%s4313_s0 + $0x110] sm:$0xff]  ;;  %v413_v23 = vld [vmem:[%s2986_s16] sm:$0xff] }
  0x58   : > { %675 = vmatpush2.msra.mxu1 %v592_v31  ;;  %541 = vmatprep.subr.mxu0 %v3006_v39  ;;  %v588_v31 = vld [vmem:[%s4314_s1 + $0x110] sm:$0xff]  ;;  %v587_v39 = vld [vmem:[%s4314_s1 + $0x108] sm:$0xff] }
  0x59   : > { %676 = vmatprep.subr.mxu1 %v591_v47  ;;  %542 = vmatpush2.msra.mxu0 %v3014_v55  ;;  %v418_v47 = vadd.f32 %v3022_v51, %v414_v59  ;;  %v417_v55 = vadd.f32 %v3044_v35, %v413_v23 }
  0x5a   : > { %677 = vmatpush2.msra.mxu1 %v590_v63  ;;  %543 = vmatprep.subr.mxu0 %v3028_v43  ;;  %v586_v63 = vld [vmem:[%s4314_s1 + $0x100] sm:$0xff] }
  0x5b   : > { %678 = vmatprep.subr.mxu1 %v589_v7  ;;  %544 = vmatpush2.msra.mxu0 %v3036_v15  ;;  %v3072_v7 = vld [vmem:[%s4315_s2 + $0xf8] sm:$0xff] }
  0x5c   : > { %679 = vmatpush2.msra.mxu1 %v588_v31  ;;  %545 = vmatprep.subr.mxu0 %v3050_v27  ;;  %v3077_v31 = vld [vmem:[%s4315_s2 + $0xf0] sm:$0xff] }
  0x5d   : > { %680 = vmatprep.subr.mxu1 %v587_v39  ;;  %546 = vmatpush2.msra.mxu0 %v3060_v19  ;;  %v3082_v39 = vld [vmem:[%s4315_s2 + $0xe8] sm:$0xff] }
  0x5e   : > { %547 = vmatprep.mubr.f32.mxu0 %v418_v47  ;;  %681 = vmatpush2.msra.mxu1 %v586_v63  ;;  %v4364_v47 = vld [vmem:[#allocation9_spill] sm:$0xff]  ;;  %v4366_v63 = vld [vmem:[#allocation10_spill] sm:$0xff] }
  0x5f   : > { %682 = vmatprep.mubr.f32.mxu1 %v414_v59  ;;  %548 = vmatmul.mubr.f32.vlgmr.msra.gmra.mxu0 %v417_v55  ;;  %v3089_v59 = vld [vmem:[%s4315_s2 + $0xe0] sm:$0xff] }
  0x60   : > { %683 = vmatmul.mubr.f32.vlgmr.msra.gmra.mxu1 %v413_v23  ;;  %753 = vmatprep.subr.mxu0 %v3072_v7  ;;  %v3096_v23 = vld [vmem:[%s4315_s2 + $0xd8] sm:$0xff]  ;;  %v4362_v55 = vld [vmem:[#allocation8_spill] sm:$0xff] }
  0x61   : > { %902 = vmatprep.subr.mxu1 %v2469_v0  ;;  %754 = vmatpush1.msra.mxu0 %v3077_v31  ;;  %v3103_v0 = vld [vmem:[%s4315_s2 + $0xd0] sm:$0xff] }
  0x62   : > { %903 = vmatpush1.msra.mxu1 %v2477_v2  ;;  %755 = vmatprep.subr.mxu0 %v3082_v39  ;;  %v3110_v2 = vld [vmem:[%s4315_s2 + $0xc8] sm:$0xff] }
  0x63   : > { %904 = vmatprep.subr.mxu1 %v2486_v4  ;;  %756 = vmatpush1.msra.mxu0 %v3089_v59  ;;  %v3117_v4 = vld [vmem:[%s4315_s2 + $0xc0] sm:$0xff] }
  0x64   : > { %905 = vmatpush1.msra.mxu1 %v2495_v6  ;;  %757 = vmatprep.subr.mxu0 %v3096_v23  ;;  %v3124_v6 = vld [vmem:[%s4315_s2 + $0xb8] sm:$0xff] }
  0x65   : > { %906 = vmatprep.subr.mxu1 %v2503_v8  ;;  %758 = vmatpush1.msra.mxu0 %v3103_v0  ;;  %v3131_v8 = vld [vmem:[%s4315_s2 + $0xb0] sm:$0xff] }
  0x66   : > { %907 = vmatpush1.msra.mxu1 %v2512_v10  ;;  %759 = vmatprep.subr.mxu0 %v3110_v2  ;;  %v3138_v10 = vld [vmem:[%s4315_s2 + $0xa8] sm:$0xff] }
  0x67   : > { %908 = vmatprep.subr.mxu1 %v2521_v12  ;;  %760 = vmatpush1.msra.mxu0 %v3117_v4  ;;  %v3145_v12 = vld [vmem:[%s4315_s2 + $0xa0] sm:$0xff] }
  0x68   : > { %909 = vmatpush1.msra.mxu1 %v2530_v14  ;;  %761 = vmatprep.subr.mxu0 %v3124_v6  ;;  %v3152_v14 = vld [vmem:[%s4315_s2 + $0x98] sm:$0xff] }
  0x69   : > { %910 = vmatprep.subr.mxu1 %v2539_v16  ;;  %762 = vmatpush1.msra.mxu0 %v3131_v8  ;;  %v3159_v16 = vld [vmem:[%s4315_s2 + $0x90] sm:$0xff] }
  0x6a   : > { %911 = vmatpush1.msra.mxu1 %v2548_v18  ;;  %763 = vmatprep.subr.mxu0 %v3138_v10  ;;  %v3166_v18 = vld [vmem:[%s4315_s2 + $0x88] sm:$0xff] }
  0x6b   : > { %912 = vmatprep.subr.mxu1 %v2557_v20  ;;  %764 = vmatpush1.msra.mxu0 %v3145_v12  ;;  %v3173_v20 = vld [vmem:[%s4315_s2 + $0x80] sm:$0xff] }
  0x6c   : > { %913 = vmatpush1.msra.mxu1 %v2566_v22  ;;  %765 = vmatprep.subr.mxu0 %v3152_v14  ;;  %v3180_v22 = vld [vmem:[%s4315_s2 + $0x78] sm:$0xff] }
  0x6d   : > { %914 = vmatprep.subr.mxu1 %v2575_v24  ;;  %766 = vmatpush1.msra.mxu0 %v3159_v16  ;;  %v3187_v24 = vld [vmem:[%s4315_s2 + $0x70] sm:$0xff] }
  0x6e   : > { %915 = vmatpush1.msra.mxu1 %v2584_v26  ;;  %767 = vmatprep.subr.mxu0 %v3166_v18  ;;  %v3194_v26 = vld [vmem:[%s4315_s2 + $0x68] sm:$0xff] }
  0x6f   : > { %916 = vmatprep.subr.mxu1 %v2593_v28  ;;  %768 = vmatpush1.msra.mxu0 %v3173_v20  ;;  %v3201_v28 = vld [vmem:[%s4315_s2 + $0x60] sm:$0xff] }
  0x70   : > { %917 = vmatpush1.msra.mxu1 %v2602_v30  ;;  %769 = vmatprep.subr.mxu0 %v3180_v22  ;;  %v3208_v30 = vld [vmem:[%s4315_s2 + $0x58] sm:$0xff] }
  0x71   : > { %918 = vmatprep.subr.mxu1 %v2611_v32  ;;  %770 = vmatpush1.msra.mxu0 %v3187_v24  ;;  %v3215_v32 = vld [vmem:[%s4315_s2 + $0x50] sm:$0xff] }
  0x72   : > { %919 = vmatpush1.msra.mxu1 %v2620_v34  ;;  %771 = vmatprep.subr.mxu0 %v3194_v26  ;;  %v3222_v34 = vld [vmem:[%s4315_s2 + $0x48] sm:$0xff] }
  0x73   : > { %920 = vmatprep.subr.mxu1 %v2629_v36  ;;  %772 = vmatpush1.msra.mxu0 %v3201_v28  ;;  %v3229_v36 = vld [vmem:[%s4315_s2 + $0x40] sm:$0xff] }
  0x74   : > { %921 = vmatpush1.msra.mxu1 %v2638_v38  ;;  %773 = vmatprep.subr.mxu0 %v3208_v30  ;;  %v3236_v38 = vld [vmem:[%s4315_s2 + $0x38] sm:$0xff] }
  0x75   : > { %922 = vmatprep.subr.mxu1 %v2647_v40  ;;  %774 = vmatpush1.msra.mxu0 %v3215_v32  ;;  %v3243_v40 = vld [vmem:[%s4315_s2 + $0x30] sm:$0xff] }
  0x76   : > { %923 = vmatpush1.msra.mxu1 %v2656_v42  ;;  %775 = vmatprep.subr.mxu0 %v3222_v34  ;;  %v3250_v42 = vld [vmem:[%s4315_s2 + $0x28] sm:$0xff] }
  0x77   : > { %924 = vmatprep.subr.mxu1 %v2665_v44  ;;  %776 = vmatpush1.msra.mxu0 %v3229_v36  ;;  %v3257_v44 = vld [vmem:[%s4315_s2 + $0x20] sm:$0xff] }
  0x78   : > { %925 = vmatpush1.msra.mxu1 %v2674_v46  ;;  %777 = vmatprep.subr.mxu0 %v3236_v38  ;;  %v3264_v46 = vld [vmem:[%s4315_s2 + $0x18] sm:$0xff] }
  0x79   : > { %926 = vmatprep.subr.mxu1 %v2683_v48  ;;  %778 = vmatpush1.msra.mxu0 %v3243_v40  ;;  %v3271_v48 = vld [vmem:[%s4315_s2 + $0x10] sm:$0xff] }
  0x7a   : > { %927 = vmatpush1.msra.mxu1 %v2692_v50  ;;  %779 = vmatprep.subr.mxu0 %v3250_v42  ;;  %v3278_v50 = vld [vmem:[%s4315_s2 + $0x8] sm:$0xff] }
  0x7b   : > { %928 = vmatprep.subr.mxu1 %v2701_v52  ;;  %780 = vmatpush1.msra.mxu0 %v3257_v44  ;;  %v3285_v52 = vld [vmem:[%s4315_s2] sm:$0xff] }
  0x7c   : > { %929 = vmatpush1.msra.mxu1 %v2710_v54  ;;  %781 = vmatprep.subr.mxu0 %v3264_v46  ;;  %v3292_v54 = vld [vmem:[%s4315_s2 + $0x1f8] sm:$0xff] }
  0x7d   : > { %930 = vmatprep.subr.mxu1 %v2719_v56  ;;  %782 = vmatpush1.msra.mxu0 %v3271_v48  ;;  %v3299_v56 = vld [vmem:[%s4315_s2 + $0x1f0] sm:$0xff] }
  0x7e   : > { %931 = vmatpush1.msra.mxu1 %v2728_v58  ;;  %783 = vmatprep.subr.mxu0 %v3278_v50  ;;  %v3306_v58 = vld [vmem:[%s4315_s2 + $0x1e8] sm:$0xff] }
  0x7f   : > { %932 = vmatprep.subr.mxu1 %v2737_v60  ;;  %784 = vmatpush1.msra.mxu0 %v3285_v52  ;;  %v3313_v60 = vld [vmem:[%s4315_s2 + $0x1e0] sm:$0xff] }
  0x80   : > { %933 = vmatpush1.msra.mxu1 %v2746_v62  ;;  %785 = vmatprep.subr.mxu0 %v3292_v54  ;;  %v3320_v62 = vld [vmem:[%s4315_s2 + $0x1d8] sm:$0xff] }
  0x81   : > { %934 = vmatprep.subr.mxu1 %v2755_v1  ;;  %786 = vmatpush2.msra.mxu0 %v3299_v56  ;;  %v3327_v1 = vld [vmem:[%s4315_s2 + $0x1d0] sm:$0xff] }
  0x82   : > { %935 = vmatpush2.msra.mxu1 %v2764_v5  ;;  %787 = vmatprep.subr.mxu0 %v3306_v58  ;;  %v3334_v5 = vld [vmem:[%s4315_s2 + $0x1c8] sm:$0xff] }
  0x83   : > { %936 = vmatprep.subr.mxu1 %v2773_v9  ;;  %788 = vmatpush2.msra.mxu0 %v3313_v60  ;;  %v3341_v9 = vld [vmem:[%s4315_s2 + $0x1c0] sm:$0xff] }
  0x84   : > { %937 = vmatpush2.msra.mxu1 %v2782_v13  ;;  %789 = vmatprep.subr.mxu0 %v3320_v62  ;;  %v3348_v13 = vld [vmem:[%s4315_s2 + $0x1b8] sm:$0xff] }
  0x85   : > { %938 = vmatprep.subr.mxu1 %v2791_v17  ;;  %790 = vmatpush2.msra.mxu0 %v3327_v1  ;;  %v3355_v17 = vld [vmem:[%s4315_s2 + $0x1b0] sm:$0xff] }
  0x86   : > { %939 = vmatpush2.msra.mxu1 %v2800_v21  ;;  %791 = vmatprep.subr.mxu0 %v3334_v5  ;;  %v3362_v21 = vld [vmem:[%s4315_s2 + $0x1a8] sm:$0xff] }
  0x87   : > { %940 = vmatprep.subr.mxu1 %v2809_v25  ;;  %792 = vmatpush2.msra.mxu0 %v3341_v9  ;;  %v3369_v25 = vld [vmem:[%s4315_s2 + $0x1a0] sm:$0xff] }
  0x88   : > { %941 = vmatpush2.msra.mxu1 %v2818_v29  ;;  %793 = vmatprep.subr.mxu0 %v3348_v13  ;;  %v3376_v29 = vld [vmem:[%s4315_s2 + $0x198] sm:$0xff] }
  0x89   : > { %942 = vmatprep.subr.mxu1 %v2827_v33  ;;  %794 = vmatpush2.msra.mxu0 %v3355_v17  ;;  %v3383_v33 = vld [vmem:[%s4315_s2 + $0x190] sm:$0xff] }
  0x8a   : > { %943 = vmatpush2.msra.mxu1 %v2836_v37  ;;  %795 = vmatprep.subr.mxu0 %v3362_v21  ;;  %v3390_v37 = vld [vmem:[%s4315_s2 + $0x188] sm:$0xff] }
  0x8b   : > { %944 = vmatprep.subr.mxu1 %v2845_v41  ;;  %796 = vmatpush2.msra.mxu0 %v3369_v25  ;;  %v3397_v41 = vld [vmem:[%s4315_s2 + $0x180] sm:$0xff] }
  0x8c   : > { %945 = vmatpush2.msra.mxu1 %v2854_v45  ;;  %797 = vmatprep.subr.mxu0 %v3376_v29  ;;  %4356 = vst [vmem:[#allocation18_spill] sm:$0xff] %v3397_v41  ;;  %v3404_v45 = vld [vmem:[%s4315_s2 + $0x178] sm:$0xff] }
  0x8d   : > { %946 = vmatprep.subr.mxu1 %v2863_v49  ;;  %798 = vmatpush2.msra.mxu0 %v3383_v33  ;;  %4357 = vst [vmem:[#allocation19_spill] sm:$0xff] %v3404_v45  ;;  %v3411_v49 = vld [vmem:[%s4315_s2 + $0x170] sm:$0xff] }
  0x8e   : > { %947 = vmatpush2.msra.mxu1 %v2872_v53  ;;  %799 = vmatprep.subr.mxu0 %v3390_v37  ;;  %4358 = vst [vmem:[#allocation20_spill] sm:$0xff] %v3411_v49  ;;  %v3418_v53 = vld [vmem:[%s4315_s2 + $0x168] sm:$0xff] }
  0x8f   : > { %948 = vmatprep.subr.mxu1 %v2882_v57  ;;  %800 = vmatpush2.msra.mxu0 %v3397_v41  ;;  %4359 = vst [vmem:[#allocation21_spill] sm:$0xff] %v3418_v53  ;;  %v3425_v57 = vld [vmem:[%s4315_s2 + $0x160] sm:$0xff]  ;;  %v3514_v41 = vld [vmem:[%s4315_s2 + $0x108] sm:$0xff] }
  0x90   : > { %949 = vmatpush2.msra.mxu1 %v2891_v61  ;;  %801 = vmatprep.subr.mxu0 %v3404_v45  ;;  %4360 = vst [vmem:[#allocation22_spill] sm:$0xff] %v3425_v57  ;;  %v3432_v61 = vld [vmem:[%s4315_s2 + $0x158] sm:$0xff]  ;;  %v4377_v45 = vld [vmem:[#allocation17_spill] sm:$0xff] }
  0x91   : > { %950 = vmatprep.subr.mxu1 %v2900_v3  ;;  %802 = vmatpush2.msra.mxu0 %v3411_v49  ;;  %4361 = vst [vmem:[#allocation23_spill] sm:$0xff] %v3432_v61  ;;  %v3439_v3 = vld [vmem:[%s4315_s2 + $0x150] sm:$0xff]  ;;  %v3494_v49 = vld [vmem:[%s2991_s21 + $0x18] sm:$0xff] }
  0x92   : > { %951 = vmatpush2.msra.mxu1 %v2909_v11  ;;  %803 = vmatprep.subr.mxu0 %v3418_v53  ;;  %4363 = vst [vmem:[#allocation8_spill] sm:$0xff] %v3439_v3  ;;  %v3446_v11 = vld [vmem:[%s4315_s2 + $0x148] sm:$0xff]  ;;  %v4375_v53 = vld [vmem:[#allocation15_spill] sm:$0xff] }
  0x93   : > { %952 = vmatprep.subr.mxu1 %v4362_v55  ;;  %804 = vmatpush2.msra.mxu0 %v3425_v57  ;;  %4365 = vst [vmem:[#allocation9_spill] sm:$0xff] %v3446_v11  ;;  %v3453_v55 = vld [vmem:[%s4315_s2 + $0x140] sm:$0xff]  ;;  %v4368_v57 = vld [vmem:[#allocation11_spill] sm:$0xff] }
  0x94   : > { %953 = vmatpush2.msra.mxu1 %v4364_v47  ;;  %805 = vmatprep.subr.mxu0 %v3432_v61  ;;  %4367 = vst [vmem:[#allocation10_spill] sm:$0xff] %v3453_v55  ;;  %v3460_v47 = vld [vmem:[%s4315_s2 + $0x138] sm:$0xff]  ;;  %v4370_v61 = vld [vmem:[#allocation12_spill] sm:$0xff] }
  0x95   : > { %954 = vmatprep.subr.mxu1 %v4366_v63  ;;  %806 = vmatpush2.msra.mxu0 %v3439_v3  ;;  %4369 = vst [vmem:[#allocation11_spill] sm:$0xff] %v3460_v47  ;;  %v3467_v63 = vld [vmem:[%s4315_s2 + $0x130] sm:$0xff]  ;;  %v4372_v3 = vld [vmem:[#allocation13_spill] sm:$0xff] }
  0x96   : > { %955 = vmatpush2.msra.mxu1 %v4368_v57  ;;  %807 = vmatprep.subr.mxu0 %v3446_v11  ;;  %4371 = vst [vmem:[#allocation12_spill] sm:$0xff] %v3467_v63  ;;  %v3474_v57 = vld [vmem:[%s4315_s2 + $0x128] sm:$0xff]  ;;  %v4374_v11 = vld [vmem:[#allocation14_spill] sm:$0xff] }
  0x97   : > { %956 = vmatprep.subr.mxu1 %v4370_v61  ;;  %808 = vmatpush2.msra.mxu0 %v3453_v55  ;;  %4373 = vst [vmem:[#allocation13_spill] sm:$0xff] %v3474_v57  ;;  %v3481_v61 = vld [vmem:[%s4315_s2 + $0x120] sm:$0xff]  ;;  %v3491_v55 = vld [vmem:[%s2986_s16 + $0x18] sm:$0xff] }
  0x98   : > { %957 = vmatpush2.msra.mxu1 %v4372_v3  ;;  %809 = vmatprep.subr.mxu0 %v3460_v47  ;;  %v3488_v3 = vld [vmem:[%s4315_s2 + $0x118] sm:$0xff]  ;;  %v3501_v47 = vld [vmem:[%s4315_s2 + $0x110] sm:$0xff] }
  0x99   : > { %958 = vmatprep.subr.mxu1 %v4374_v11  ;;  %810 = vmatpush2.msra.mxu0 %v3467_v63  ;;  %v4376_v11 = vld [vmem:[#allocation16_spill] sm:$0xff]  ;;  %v3504_v63 = vld [vmem:[%s2986_s16 + $0x10] sm:$0xff] }
  0x9a   : > { %959 = vmatpush2.msra.mxu1 %v4375_v53  ;;  %811 = vmatprep.subr.mxu0 %v3474_v57  ;;  %v3507_v53 = vld [vmem:[%s2991_s21 + $0x10] sm:$0xff]  ;;  %v837_v57 = vadd.f32 %v3494_v49, %v3491_v55  ;;  %s412_s21 = scalar_lea.vmem %s4321_s8, %s2266_s23 }
  0x9b   : > { %960 = vmatprep.subr.mxu1 %v4376_v11  ;;  %812 = vmatpush2.msra.mxu0 %v3481_v61  ;;  %v3521_v11 = vld [vmem:[%s4315_s2 + $0x100] sm:$0xff] }
  0x9c   : > { %961 = vmatpush2.msra.mxu1 %v4377_v45  ;;  %813 = vmatprep.subr.mxu0 %v3488_v3  ;;  %v836_v45 = vadd.f32 %v3507_v53, %v3504_v63 }
  0x9d   : > { %962 = vmatprep.subr.mxu1 %v3028_v43  ;;  %814 = vmatpush2.msra.mxu0 %v3501_v47  ;;  %v1004_v43 = vld [vmem:[%s4314_s1 + $0xf8] sm:$0xff] }
  0x9e   : > { %963 = vmatpush2.msra.mxu1 %v3036_v15  ;;  %815 = vmatprep.subr.mxu0 %v3514_v41  ;;  %v1003_v15 = vld [vmem:[%s4314_s1 + $0xf0] sm:$0xff] }
  0x9f   : > { %964 = vmatprep.subr.mxu1 %v3050_v27  ;;  %816 = vmatpush2.msra.mxu0 %v3521_v11  ;;  %v1002_v27 = vld [vmem:[%s4314_s1 + $0xe8] sm:$0xff] }
  0xa0   : > { %817 = vmatprep.mubr.f32.mxu0 %v3022_v51  ;;  %965 = vmatpush2.msra.mxu1 %v3060_v19  ;;  %v1001_v51 = vld [vmem:[%s4314_s1 + $0xe0] sm:$0xff]  ;;  %v1000_v19 = vld [vmem:[%s4314_s1 + $0xd8] sm:$0xff] }
  0xa1   : > { %966 = vmatprep.mubr.f32.mxu1 %v837_v57  ;;  %818 = vmatmul.mubr.f32.vlgmr.msra.gmra.mxu0 %v3044_v35  ;;  %v999_v35 = vld [vmem:[%s4314_s1 + $0xd0] sm:$0xff]  ;;  %v1018_v57 = vld [vmem:[%s4314_s1 + $0x168] sm:$0xff] }
  0xa2   : > { %967 = vmatmul.mubr.f32.vlgmr.msra.gmra.mxu1 %v836_v45  ;;  %1037 = vmatprep.subr.mxu0 %v1004_v43  ;;  %v1017_v45 = vld [vmem:[%s4314_s1 + $0x160] sm:$0xff]  ;;  %v1016_v43 = vld [vmem:[%s4314_s1 + $0x158] sm:$0xff] }
  0xa3   : > { %1172 = vmatprep.subr.mxu1 %v3072_v7  ;;  %1038 = vmatpush1.msra.mxu0 %v1003_v15  ;;  %v998_v7 = vld [vmem:[%s4314_s1 + $0xc8] sm:$0xff] }
  0xa4   : > { %1173 = vmatpush1.msra.mxu1 %v3077_v31  ;;  %1039 = vmatprep.subr.mxu0 %v1002_v27  ;;  %v997_v31 = vld [vmem:[%s4314_s1 + $0xc0] sm:$0xff]  ;;  %v4381_v15 = vld [vmem:[#allocation21_spill] sm:$0xff]  ;;  %v1015_v27 = vld [vmem:[%s4314_s1 + $0x150] sm:$0xff] }
  0xa5   : > { %1174 = vmatprep.subr.mxu1 %v3082_v39  ;;  %1040 = vmatpush1.msra.mxu0 %v1001_v51  ;;  %v996_v39 = vld [vmem:[%s4314_s1 + $0xb8] sm:$0xff]  ;;  %v4382_v51 = vld [vmem:[#allocation22_spill] sm:$0xff] }
  0xa6   : > { %1175 = vmatpush1.msra.mxu1 %v3089_v59  ;;  %1041 = vmatprep.subr.mxu0 %v1000_v19  ;;  %v995_v59 = vld [vmem:[%s4314_s1 + $0xb0] sm:$0xff]  ;;  %v1014_v19 = vld [vmem:[%s4314_s1 + $0x148] sm:$0xff] }
  0xa7   : > { %1176 = vmatprep.subr.mxu1 %v3096_v23  ;;  %1042 = vmatpush1.msra.mxu0 %v999_v35  ;;  %v994_v23 = vld [vmem:[%s4314_s1 + $0xa8] sm:$0xff]  ;;  %v4383_v35 = vld [vmem:[#allocation23_spill] sm:$0xff] }
  0xa8   : > { %1177 = vmatpush1.msra.mxu1 %v3103_v0  ;;  %1043 = vmatprep.subr.mxu0 %v998_v7  ;;  %v993_v0 = vld [vmem:[%s4314_s1 + $0xa0] sm:$0xff] }
  0xa9   : > { %1178 = vmatprep.subr.mxu1 %v3110_v2  ;;  %1044 = vmatpush1.msra.mxu0 %v997_v31  ;;  %v992_v2 = vld [vmem:[%s4314_s1 + $0x98] sm:$0xff]  ;;  %v1013_v7 = vld [vmem:[%s4314_s1 + $0x140] sm:$0xff] }
  0xaa   : > { %1179 = vmatpush1.msra.mxu1 %v3117_v4  ;;  %1045 = vmatprep.subr.mxu0 %v996_v39  ;;  %v991_v4 = vld [vmem:[%s4314_s1 + $0x90] sm:$0xff]  ;;  %v4384_v31 = vld [vmem:[#allocation8_spill] sm:$0xff]  ;;  %v1012_v39 = vld [vmem:[%s4314_s1 + $0x138] sm:$0xff] }
  0xab   : > { %1180 = vmatprep.subr.mxu1 %v3124_v6  ;;  %1046 = vmatpush1.msra.mxu0 %v995_v59  ;;  %v990_v6 = vld [vmem:[%s4314_s1 + $0x88] sm:$0xff] }
  0xac   : > { %1181 = vmatpush1.msra.mxu1 %v3131_v8  ;;  %1047 = vmatprep.subr.mxu0 %v994_v23  ;;  %v989_v8 = vld [vmem:[%s4314_s1 + $0x80] sm:$0xff]  ;;  %v4385_v59 = vld [vmem:[#allocation9_spill] sm:$0xff]  ;;  %v1011_v23 = vld [vmem:[%s4314_s1 + $0x130] sm:$0xff] }
  0xad   : > { %1182 = vmatprep.subr.mxu1 %v3138_v10  ;;  %1048 = vmatpush1.msra.mxu0 %v993_v0  ;;  %v988_v10 = vld [vmem:[%s4314_s1 + $0x78] sm:$0xff]  ;;  %v4386_v0 = vld [vmem:[#allocation10_spill] sm:$0xff] }
  0xae   : > { %1183 = vmatpush1.msra.mxu1 %v3145_v12  ;;  %1049 = vmatprep.subr.mxu0 %v992_v2  ;;  %v987_v12 = vld [vmem:[%s4314_s1 + $0x70] sm:$0xff]  ;;  %v1010_v2 = vld [vmem:[%s4314_s1 + $0x128] sm:$0xff] }
  0xaf   : > { %1184 = vmatprep.subr.mxu1 %v3152_v14  ;;  %1050 = vmatpush1.msra.mxu0 %v991_v4  ;;  %v986_v14 = vld [vmem:[%s4314_s1 + $0x68] sm:$0xff]  ;;  %v4387_v4 = vld [vmem:[#allocation11_spill] sm:$0xff] }
  0xb0   : > { %1185 = vmatpush1.msra.mxu1 %v3159_v16  ;;  %1051 = vmatprep.subr.mxu0 %v990_v6  ;;  %v985_v16 = vld [vmem:[%s4314_s1 + $0x60] sm:$0xff] }
  0xb1   : > { %1186 = vmatprep.subr.mxu1 %v3166_v18  ;;  %1052 = vmatpush1.msra.mxu0 %v989_v8  ;;  %v984_v18 = vld [vmem:[%s4314_s1 + $0x58] sm:$0xff]  ;;  %v1009_v6 = vld [vmem:[%s4314_s1 + $0x120] sm:$0xff] }
  0xb2   : > { %1187 = vmatpush1.msra.mxu1 %v3173_v20  ;;  %1053 = vmatprep.subr.mxu0 %v988_v10  ;;  %v983_v20 = vld [vmem:[%s4314_s1 + $0x50] sm:$0xff]  ;;  %v4388_v8 = vld [vmem:[#allocation12_spill] sm:$0xff]  ;;  %v1008_v10 = vld [vmem:[%s4314_s1 + $0x118] sm:$0xff] }
  0xb3   : > { %1188 = vmatprep.subr.mxu1 %v3180_v22  ;;  %1054 = vmatpush1.msra.mxu0 %v987_v12  ;;  %v982_v22 = vld [vmem:[%s4314_s1 + $0x48] sm:$0xff] }
  0xb4   : > { %1189 = vmatpush1.msra.mxu1 %v3187_v24  ;;  %1055 = vmatprep.subr.mxu0 %v986_v14  ;;  %v981_v24 = vld [vmem:[%s4314_s1 + $0x40] sm:$0xff]  ;;  %v4389_v12 = vld [vmem:[#allocation13_spill] sm:$0xff]  ;;  %v1007_v14 = vld [vmem:[%s4314_s1 + $0x110] sm:$0xff] }
  0xb5   : > { %1190 = vmatprep.subr.mxu1 %v3194_v26  ;;  %1056 = vmatpush1.msra.mxu0 %v985_v16  ;;  %v980_v26 = vld [vmem:[%s4314_s1 + $0x38] sm:$0xff]  ;;  %v1006_v16 = vld [vmem:[%s4314_s1 + $0x108] sm:$0xff] }
  0xb6   : > { %1191 = vmatpush1.msra.mxu1 %v3201_v28  ;;  %1057 = vmatprep.subr.mxu0 %v984_v18  ;;  %v979_v28 = vld [vmem:[%s4314_s1 + $0x30] sm:$0xff]  ;;  %v1005_v18 = vld [vmem:[%s4314_s1 + $0x100] sm:$0xff] }
  0xb7   : > { %1192 = vmatprep.subr.mxu1 %v3208_v30  ;;  %1058 = vmatpush1.msra.mxu0 %v983_v20  ;;  %v978_v30 = vld [vmem:[%s4314_s1 + $0x28] sm:$0xff]  ;;  %v1301_v20 = vld [vmem:[%s4316_s3 + $0xb0] sm:$0xff] }
  0xb8   : > { %1193 = vmatpush1.msra.mxu1 %v3215_v32  ;;  %1059 = vmatprep.subr.mxu0 %v982_v22  ;;  %v977_v32 = vld [vmem:[%s4314_s1 + $0x20] sm:$0xff]  ;;  %v1300_v22 = vld [vmem:[%s4316_s3 + $0xa8] sm:$0xff] }
  0xb9   : > { %1194 = vmatprep.subr.mxu1 %v3222_v34  ;;  %1060 = vmatpush1.msra.mxu0 %v981_v24  ;;  %v976_v34 = vld [vmem:[%s4314_s1 + $0x18] sm:$0xff] }
  0xba   : > { %1195 = vmatpush1.msra.mxu1 %v3229_v36  ;;  %1061 = vmatprep.subr.mxu0 %v980_v26  ;;  %v975_v36 = vld [vmem:[%s4314_s1 + $0x10] sm:$0xff]  ;;  %v1374_v24 = vld [vmem:[%s4316_s3 + $0x2f8] sm:$0xff] }
  0xbb   : > { %1196 = vmatprep.subr.mxu1 %v3236_v38  ;;  %1062 = vmatpush1.msra.mxu0 %v979_v28  ;;  %v974_v38 = vld [vmem:[%s4314_s1 + $0x8] sm:$0xff]  ;;  %v1373_v26 = vld [vmem:[%s4316_s3 + $0x2f0] sm:$0xff] }
  0xbc   : > { %1197 = vmatpush1.msra.mxu1 %v3243_v40  ;;  %1063 = vmatprep.subr.mxu0 %v978_v30  ;;  %v973_v40 = vld [vmem:[%s4314_s1] sm:$0xff]  ;;  %v1372_v28 = vld [vmem:[%s4316_s3 + $0x2e8] sm:$0xff] }
  0xbd   : > { %1198 = vmatprep.subr.mxu1 %v3250_v42  ;;  %1064 = vmatpush1.msra.mxu0 %v977_v32  ;;  %v1036_v42 = vld [vmem:[%s4314_s1 + $0x1f8] sm:$0xff]  ;;  %v1299_v30 = vld [vmem:[%s4316_s3 + $0xa0] sm:$0xff] }
  0xbe   : > { %1199 = vmatpush1.msra.mxu1 %v3257_v44  ;;  %1065 = vmatprep.subr.mxu0 %v976_v34  ;;  %v1035_v44 = vld [vmem:[%s4314_s1 + $0x1f0] sm:$0xff]  ;;  %v1371_v32 = vld [vmem:[%s4316_s3 + $0x2e0] sm:$0xff]  ;;  %v1298_v34 = vld [vmem:[%s4316_s3 + $0x98] sm:$0xff] }
  0xbf   : > { %1200 = vmatprep.subr.mxu1 %v3264_v46  ;;  %1066 = vmatpush1.msra.mxu0 %v975_v36  ;;  %v1034_v46 = vld [vmem:[%s4314_s1 + $0x1e8] sm:$0xff]  ;;  %v1370_v36 = vld [vmem:[%s4316_s3 + $0x2d8] sm:$0xff] }
  0xc0   : > { %1201 = vmatpush1.msra.mxu1 %v3271_v48  ;;  %1067 = vmatprep.subr.mxu0 %v974_v38  ;;  %v1033_v48 = vld [vmem:[%s4314_s1 + $0x1e0] sm:$0xff]  ;;  %v1297_v38 = vld [vmem:[%s4316_s3 + $0x90] sm:$0xff] }
  0xc1   : > { %1202 = vmatprep.subr.mxu1 %v3278_v50  ;;  %1068 = vmatpush1.msra.mxu0 %v973_v40  ;;  %v1032_v50 = vld [vmem:[%s4314_s1 + $0x1d8] sm:$0xff]  ;;  %v1369_v40 = vld [vmem:[%s4316_s3 + $0x2d0] sm:$0xff] }
  0xc2   : > { %1203 = vmatpush1.msra.mxu1 %v3285_v52  ;;  %1069 = vmatprep.subr.mxu0 %v1036_v42  ;;  %v1031_v52 = vld [vmem:[%s4314_s1 + $0x1d0] sm:$0xff]  ;;  %v1296_v42 = vld [vmem:[%s4316_s3 + $0x88] sm:$0xff] }
  0xc3   : > { %1204 = vmatprep.subr.mxu1 %v3292_v54  ;;  %1070 = vmatpush2.msra.mxu0 %v1035_v44  ;;  %v1030_v54 = vld [vmem:[%s4314_s1 + $0x1c8] sm:$0xff] }
  0xc4   : > { %1205 = vmatpush2.msra.mxu1 %v3299_v56  ;;  %1071 = vmatprep.subr.mxu0 %v1034_v46  ;;  %v1029_v56 = vld [vmem:[%s4314_s1 + $0x1c0] sm:$0xff]  ;;  %v1368_v44 = vld [vmem:[%s4316_s3 + $0x2c8] sm:$0xff] }
  0xc5   : > { %1206 = vmatprep.subr.mxu1 %v3306_v58  ;;  %1072 = vmatpush2.msra.mxu0 %v1033_v48  ;;  %v1028_v58 = vld [vmem:[%s4314_s1 + $0x1b8] sm:$0xff]  ;;  %v1295_v46 = vld [vmem:[%s4316_s3 + $0x80] sm:$0xff] }
  0xc6   : > { %1207 = vmatpush2.msra.mxu1 %v3313_v60  ;;  %1073 = vmatprep.subr.mxu0 %v1032_v50  ;;  %v1027_v60 = vld [vmem:[%s4314_s1 + $0x1b0] sm:$0xff]  ;;  %v1367_v48 = vld [vmem:[%s4316_s3 + $0x2c0] sm:$0xff]  ;;  %v1294_v50 = vld [vmem:[%s4316_s3 + $0x78] sm:$0xff] }
  0xc7   : > { %1208 = vmatprep.subr.mxu1 %v3320_v62  ;;  %1074 = vmatpush2.msra.mxu0 %v1031_v52  ;;  %v1026_v62 = vld [vmem:[%s4314_s1 + $0x1a8] sm:$0xff]  ;;  %v1366_v52 = vld [vmem:[%s4316_s3 + $0x2b8] sm:$0xff] }
  0xc8   : > { %1209 = vmatpush2.msra.mxu1 %v3327_v1  ;;  %1075 = vmatprep.subr.mxu0 %v1030_v54  ;;  %v1025_v1 = vld [vmem:[%s4314_s1 + $0x1a0] sm:$0xff]  ;;  %v1293_v54 = vld [vmem:[%s4316_s3 + $0x70] sm:$0xff] }
  0xc9   : > { %1210 = vmatprep.subr.mxu1 %v3334_v5  ;;  %1076 = vmatpush2.msra.mxu0 %v1029_v56  ;;  %v1024_v5 = vld [vmem:[%s4314_s1 + $0x198] sm:$0xff]  ;;  %v1365_v56 = vld [vmem:[%s4316_s3 + $0x2b0] sm:$0xff] }
  0xca   : > { %1211 = vmatpush2.msra.mxu1 %v3341_v9  ;;  %1077 = vmatprep.subr.mxu0 %v1028_v58  ;;  %v1023_v9 = vld [vmem:[%s4314_s1 + $0x190] sm:$0xff]  ;;  %v1292_v58 = vld [vmem:[%s4316_s3 + $0x68] sm:$0xff] }
  0xcb   : > { %1212 = vmatprep.subr.mxu1 %v3348_v13  ;;  %1078 = vmatpush2.msra.mxu0 %v1027_v60  ;;  %v1022_v13 = vld [vmem:[%s4314_s1 + $0x188] sm:$0xff] }
  0xcc   : > { %1213 = vmatpush2.msra.mxu1 %v3355_v17  ;;  %1079 = vmatprep.subr.mxu0 %v1026_v62  ;;  %v1021_v17 = vld [vmem:[%s4314_s1 + $0x180] sm:$0xff]  ;;  %v1364_v60 = vld [vmem:[%s4316_s3 + $0x2a8] sm:$0xff] }
  0xcd   : > { %1214 = vmatprep.subr.mxu1 %v3362_v21  ;;  %1080 = vmatpush2.msra.mxu0 %v1025_v1  ;;  %v1020_v21 = vld [vmem:[%s4314_s1 + $0x178] sm:$0xff]  ;;  %v1291_v62 = vld [vmem:[%s4316_s3 + $0x60] sm:$0xff] }
  0xce   : > { %1215 = vmatpush2.msra.mxu1 %v3369_v25  ;;  %1081 = vmatprep.subr.mxu0 %v1024_v5  ;;  %v1019_v25 = vld [vmem:[%s4314_s1 + $0x170] sm:$0xff]  ;;  %v1363_v1 = vld [vmem:[%s4316_s3 + $0x2a0] sm:$0xff]  ;;  %v1290_v5 = vld [vmem:[%s4316_s3 + $0x58] sm:$0xff] }
  0xcf   : > { %1216 = vmatprep.subr.mxu1 %v3376_v29  ;;  %1082 = vmatpush2.msra.mxu0 %v1023_v9  ;;  %v4378_v29 = vld [vmem:[#allocation18_spill] sm:$0xff]  ;;  %v1362_v9 = vld [vmem:[%s4316_s3 + $0x298] sm:$0xff] }
  0xd0   : > { %1217 = vmatpush2.msra.mxu1 %v3383_v33  ;;  %1083 = vmatprep.subr.mxu0 %v1022_v13  ;;  %v4379_v33 = vld [vmem:[#allocation19_spill] sm:$0xff]  ;;  %v1289_v13 = vld [vmem:[%s4316_s3 + $0x50] sm:$0xff] }
  0xd1   : > { %1218 = vmatprep.subr.mxu1 %v3390_v37  ;;  %1084 = vmatpush2.msra.mxu0 %v1021_v17  ;;  %v4380_v37 = vld [vmem:[#allocation20_spill] sm:$0xff]  ;;  %v1361_v17 = vld [vmem:[%s4316_s3 + $0x290] sm:$0xff] }
  0xd2   : > { %1219 = vmatpush2.msra.mxu1 %v4378_v29  ;;  %1085 = vmatprep.subr.mxu0 %v1020_v21  ;;  %v1288_v21 = vld [vmem:[%s4316_s3 + $0x48] sm:$0xff]  ;;  %v1287_v29 = vld [vmem:[%s4316_s3 + $0x40] sm:$0xff] }
  0xd3   : > { %1220 = vmatprep.subr.mxu1 %v4379_v33  ;;  %1086 = vmatpush2.msra.mxu0 %v1019_v25  ;;  %v1360_v25 = vld [vmem:[%s4316_s3 + $0x288] sm:$0xff]  ;;  %v1286_v33 = vld [vmem:[%s4316_s3 + $0x38] sm:$0xff] }
  0xd4   : > { %1221 = vmatpush2.msra.mxu1 %v4380_v37  ;;  %1087 = vmatprep.subr.mxu0 %v1018_v57  ;;  %v1359_v57 = vld [vmem:[%s4316_s3 + $0x280] sm:$0xff]  ;;  %v1285_v37 = vld [vmem:[%s4316_s3 + $0x30] sm:$0xff] }
  0xd5   : > { %1222 = vmatprep.subr.mxu1 %v4381_v15  ;;  %1088 = vmatpush2.msra.mxu0 %v1017_v45  ;;  %v1358_v45 = vld [vmem:[%s4316_s3 + $0x278] sm:$0xff]  ;;  %v1284_v15 = vld [vmem:[%s4316_s3 + $0x28] sm:$0xff] }
  0xd6   : > { %1223 = vmatpush2.msra.mxu1 %v4382_v51  ;;  %1089 = vmatprep.subr.mxu0 %v1016_v43  ;;  %v1357_v43 = vld [vmem:[%s4316_s3 + $0x270] sm:$0xff]  ;;  %v1283_v51 = vld [vmem:[%s4316_s3 + $0x20] sm:$0xff] }
  0xd7   : > { %1224 = vmatprep.subr.mxu1 %v4383_v35  ;;  %1090 = vmatpush2.msra.mxu0 %v1015_v27  ;;  %v1356_v27 = vld [vmem:[%s4316_s3 + $0x268] sm:$0xff]  ;;  %v1282_v35 = vld [vmem:[%s4316_s3 + $0x18] sm:$0xff] }
  0xd8   : > { %1225 = vmatpush2.msra.mxu1 %v4384_v31  ;;  %1091 = vmatprep.subr.mxu0 %v1014_v19  ;;  %v1355_v19 = vld [vmem:[%s4316_s3 + $0x260] sm:$0xff]  ;;  %v1281_v31 = vld [vmem:[%s4316_s3 + $0x10] sm:$0xff] }
  0xd9   : > { %1226 = vmatprep.subr.mxu1 %v4385_v59  ;;  %1092 = vmatpush2.msra.mxu0 %v1013_v7  ;;  %v1354_v7 = vld [vmem:[%s4316_s3 + $0x258] sm:$0xff]  ;;  %v1280_v59 = vld [vmem:[%s4316_s3 + $0x8] sm:$0xff] }
  0xda   : > { %1227 = vmatpush2.msra.mxu1 %v4386_v0  ;;  %1093 = vmatprep.subr.mxu0 %v1012_v39  ;;  %v1353_v39 = vld [vmem:[%s4316_s3 + $0x250] sm:$0xff]  ;;  %v1279_v0 = vld [vmem:[%s4316_s3] sm:$0xff] }
  0xdb   : > { %1228 = vmatprep.subr.mxu1 %v4387_v4  ;;  %1094 = vmatpush2.msra.mxu0 %v1011_v23  ;;  %v1352_v23 = vld [vmem:[%s4316_s3 + $0x248] sm:$0xff]  ;;  %v1342_v4 = vld [vmem:[%s4316_s3 + $0x1f8] sm:$0xff] }
  0xdc   : > { %1229 = vmatpush2.msra.mxu1 %v4388_v8  ;;  %1095 = vmatprep.subr.mxu0 %v1010_v2  ;;  %v1351_v2 = vld [vmem:[%s4316_s3 + $0x240] sm:$0xff]  ;;  %v1341_v8 = vld [vmem:[%s4316_s3 + $0x1f0] sm:$0xff] }
  0xdd   : > { %1230 = vmatprep.subr.mxu1 %v4389_v12  ;;  %1096 = vmatpush2.msra.mxu0 %v1009_v6  ;;  %v1350_v6 = vld [vmem:[%s4316_s3 + $0x238] sm:$0xff]  ;;  %v1340_v12 = vld [vmem:[%s4316_s3 + $0x1e8] sm:$0xff] }
  0xde   : > { %1231 = vmatpush2.msra.mxu1 %v3481_v61  ;;  %1097 = vmatprep.subr.mxu0 %v1008_v10  ;;  %v1310_v61 = vld [vmem:[%s4316_s3 + $0xf8] sm:$0xff]  ;;  %v1349_v10 = vld [vmem:[%s4316_s3 + $0x230] sm:$0xff] }
  0xdf   : > { %1232 = vmatprep.subr.mxu1 %v3488_v3  ;;  %1098 = vmatpush2.msra.mxu0 %v1007_v14  ;;  %v1309_v3 = vld [vmem:[%s4316_s3 + $0xf0] sm:$0xff]  ;;  %v1348_v14 = vld [vmem:[%s4316_s3 + $0x228] sm:$0xff] }
  0xe0   : > { %1233 = vmatpush2.msra.mxu1 %v3501_v47  ;;  %1099 = vmatprep.subr.mxu0 %v1006_v16  ;;  %v1305_v47 = vld [vmem:[%s4316_s3 + $0xd0] sm:$0xff]  ;;  %v1339_v16 = vld [vmem:[%s4316_s3 + $0x1e0] sm:$0xff] }
  0xe1   : > { %1234 = vmatprep.subr.mxu1 %v3514_v41  ;;  %1100 = vmatpush2.msra.mxu0 %v1005_v18  ;;  %v1308_v41 = vld [vmem:[%s4316_s3 + $0xe8] sm:$0xff]  ;;  %v1347_v18 = vld [vmem:[%s4316_s3 + $0x220] sm:$0xff] }
  0xe2   : > { %1101 = vmatprep.mubr.f32.mxu0 %v3491_v55  ;;  %1235 = vmatpush2.msra.mxu1 %v3521_v11  ;;  %v1307_v55 = vld [vmem:[%s4316_s3 + $0xe0] sm:$0xff]  ;;  %v1302_v11 = vld [vmem:[%s4316_s3 + $0xb8] sm:$0xff] }
  0xe3   : > { %1236 = vmatprep.mubr.f32.mxu1 %v3494_v49  ;;  %1102 = vmatmul.mubr.f32.vlgmr.msra.gmra.mxu0 %v3504_v63  ;;  %v1306_v49 = vld [vmem:[%s4316_s3 + $0xd8] sm:$0xff]  ;;  %v1304_v63 = vld [vmem:[%s4316_s3 + $0xc8] sm:$0xff] }
  0xe4   : > { %1237 = vmatmul.mubr.f32.vlgmr.msra.gmra.mxu1 %v3507_v53  ;;  %1407 = vmatprep.subr.mxu0 %v1310_v61  ;;  %v1303_v53 = vld [vmem:[%s4316_s3 + $0xc0] sm:$0xff]  ;;  %v1338_v61 = vld [vmem:[%s4316_s3 + $0x1d8] sm:$0xff] }
  0xe5   : > { %1408 = vmatpush1.msra.mxu0 %v1309_v3  ;;  %1478 = vmatprep.subr.mxu1 %v1374_v24  ;;  %v1346_v3 = vld [vmem:[%s4316_s3 + $0x218] sm:$0xff]  ;;  %v1405_v24 = vld [vmem:[%s4316_s3 + $0x3f0] sm:$0xff] }
  0xe6   : > { %1409 = vmatprep.subr.mxu0 %v1308_v41  ;;  %1479 = vmatpush1.msra.mxu1 %v1373_v26  ;;  %v1337_v41 = vld [vmem:[%s4316_s3 + $0x1d0] sm:$0xff]  ;;  %v1332_v26 = vld [vmem:[%s4316_s3 + $0x1a8] sm:$0xff] }
  0xe7   : > { %1410 = vmatpush1.msra.mxu0 %v1307_v55  ;;  %1480 = vmatprep.subr.mxu1 %v1372_v28  ;;  %v1345_v55 = vld [vmem:[%s4316_s3 + $0x210] sm:$0xff]  ;;  %v1404_v28 = vld [vmem:[%s4316_s3 + $0x3e8] sm:$0xff] }
  0xe8   : > { %1411 = vmatprep.subr.mxu0 %v1306_v49  ;;  %1481 = vmatpush1.msra.mxu1 %v1371_v32  ;;  %v1336_v49 = vld [vmem:[%s4316_s3 + $0x1c8] sm:$0xff]  ;;  %v1403_v32 = vld [vmem:[%s4316_s3 + $0x3e0] sm:$0xff] }
  0xe9   : > { %1412 = vmatpush1.msra.mxu0 %v1305_v47  ;;  %1482 = vmatprep.subr.mxu1 %v1370_v36  ;;  %v1344_v47 = vld [vmem:[%s4316_s3 + $0x208] sm:$0xff]  ;;  %v1402_v36 = vld [vmem:[%s4316_s3 + $0x3d8] sm:$0xff] }
  0xea   : > { %1413 = vmatprep.subr.mxu0 %v1304_v63  ;;  %1483 = vmatpush1.msra.mxu1 %v1369_v40  ;;  %v1335_v63 = vld [vmem:[%s4316_s3 + $0x1c0] sm:$0xff]  ;;  %v1401_v40 = vld [vmem:[%s4316_s3 + $0x3d0] sm:$0xff] }
  0xeb   : > { %1414 = vmatpush1.msra.mxu0 %v1303_v53  ;;  %1484 = vmatprep.subr.mxu1 %v1368_v44  ;;  %v1343_v53 = vld [vmem:[%s4316_s3 + $0x200] sm:$0xff]  ;;  %v1400_v44 = vld [vmem:[%s4316_s3 + $0x3c8] sm:$0xff] }
  0xec   : > { %1415 = vmatprep.subr.mxu0 %v1302_v11  ;;  %1485 = vmatpush1.msra.mxu1 %v1367_v48  ;;  %v1334_v11 = vld [vmem:[%s4316_s3 + $0x1b8] sm:$0xff]  ;;  %v1399_v48 = vld [vmem:[%s4316_s3 + $0x3c0] sm:$0xff] }
  0xed   : > { %1416 = vmatpush1.msra.mxu0 %v1301_v20  ;;  %1486 = vmatprep.subr.mxu1 %v1366_v52  ;;  %v1406_v20 = vld [vmem:[%s4316_s3 + $0x3f8] sm:$0xff] }
  0xee   : > { %1417 = vmatprep.subr.mxu0 %v1300_v22  ;;  %1487 = vmatpush1.msra.mxu1 %v1365_v56  ;;  %v1333_v22 = vld [vmem:[%s4316_s3 + $0x1b0] sm:$0xff]  ;;  %v1398_v52 = vld [vmem:[%s4316_s3 + $0x3b8] sm:$0xff] }
  0xef   : > { %1418 = vmatpush1.msra.mxu0 %v1299_v30  ;;  %1488 = vmatprep.subr.mxu1 %v1364_v60  ;;  %v1331_v30 = vld [vmem:[%s4316_s3 + $0x1a0] sm:$0xff]  ;;  %v1397_v56 = vld [vmem:[%s4316_s3 + $0x3b0] sm:$0xff]  ;;  %v1396_v60 = vld [vmem:[%s4316_s3 + $0x3a8] sm:$0xff] }
  0xf0   : > { %1419 = vmatprep.subr.mxu0 %v1298_v34  ;;  %1489 = vmatpush1.msra.mxu1 %v1363_v1  ;;  %v1330_v34 = vld [vmem:[%s4316_s3 + $0x198] sm:$0xff]  ;;  %v1395_v1 = vld [vmem:[%s4316_s3 + $0x3a0] sm:$0xff] }
  0xf1   : > { %1420 = vmatpush1.msra.mxu0 %v1297_v38  ;;  %1490 = vmatprep.subr.mxu1 %v1362_v9  ;;  %v1329_v38 = vld [vmem:[%s4316_s3 + $0x190] sm:$0xff]  ;;  %v1394_v9 = vld [vmem:[%s4316_s3 + $0x398] sm:$0xff] }
  0xf2   : > { %1421 = vmatprep.subr.mxu0 %v1296_v42  ;;  %1491 = vmatpush1.msra.mxu1 %v1361_v17  ;;  %v1328_v42 = vld [vmem:[%s4316_s3 + $0x188] sm:$0xff]  ;;  %v1393_v17 = vld [vmem:[%s4316_s3 + $0x390] sm:$0xff] }
  0xf3   : > { %1422 = vmatpush1.msra.mxu0 %v1295_v46  ;;  %1492 = vmatprep.subr.mxu1 %v1360_v25  ;;  %v1327_v46 = vld [vmem:[%s4316_s3 + $0x180] sm:$0xff]  ;;  %v1392_v25 = vld [vmem:[%s4316_s3 + $0x388] sm:$0xff] }
  0xf4   : > { %1423 = vmatprep.subr.mxu0 %v1294_v50  ;;  %1493 = vmatpush1.msra.mxu1 %v1359_v57  ;;  %v1326_v50 = vld [vmem:[%s4316_s3 + $0x178] sm:$0xff]  ;;  %v1391_v57 = vld [vmem:[%s4316_s3 + $0x380] sm:$0xff] }
  0xf5   : > { %1424 = vmatpush1.msra.mxu0 %v1293_v54  ;;  %1494 = vmatprep.subr.mxu1 %v1358_v45  ;;  %v1325_v54 = vld [vmem:[%s4316_s3 + $0x170] sm:$0xff]  ;;  %v1390_v45 = vld [vmem:[%s4316_s3 + $0x378] sm:$0xff] }
  0xf6   : > { %1425 = vmatprep.subr.mxu0 %v1292_v58  ;;  %1495 = vmatpush1.msra.mxu1 %v1357_v43  ;;  %v1324_v58 = vld [vmem:[%s4316_s3 + $0x168] sm:$0xff]  ;;  %v1389_v43 = vld [vmem:[%s4316_s3 + $0x370] sm:$0xff] }
  0xf7   : > { %1426 = vmatpush1.msra.mxu0 %v1291_v62  ;;  %1496 = vmatprep.subr.mxu1 %v1356_v27  ;;  %v1323_v62 = vld [vmem:[%s4316_s3 + $0x160] sm:$0xff]  ;;  %v1388_v27 = vld [vmem:[%s4316_s3 + $0x368] sm:$0xff] }
  0xf8   : > { %1427 = vmatprep.subr.mxu0 %v1290_v5  ;;  %1497 = vmatpush1.msra.mxu1 %v1355_v19  ;;  %v1322_v5 = vld [vmem:[%s4316_s3 + $0x158] sm:$0xff]  ;;  %v1387_v19 = vld [vmem:[%s4316_s3 + $0x360] sm:$0xff] }
  0xf9   : > { %1428 = vmatpush1.msra.mxu0 %v1289_v13  ;;  %1498 = vmatprep.subr.mxu1 %v1354_v7  ;;  %v1321_v13 = vld [vmem:[%s4316_s3 + $0x150] sm:$0xff]  ;;  %v1386_v7 = vld [vmem:[%s4316_s3 + $0x358] sm:$0xff] }
  0xfa   : > { %1429 = vmatprep.subr.mxu0 %v1288_v21  ;;  %1499 = vmatpush1.msra.mxu1 %v1353_v39  ;;  %v1320_v21 = vld [vmem:[%s4316_s3 + $0x148] sm:$0xff]  ;;  %v1385_v39 = vld [vmem:[%s4316_s3 + $0x350] sm:$0xff] }
  0xfb   : > { %1430 = vmatpush1.msra.mxu0 %v1287_v29  ;;  %1500 = vmatprep.subr.mxu1 %v1352_v23  ;;  %v1319_v29 = vld [vmem:[%s4316_s3 + $0x140] sm:$0xff] }
  0xfc   : > { %1431 = vmatprep.subr.mxu0 %v1286_v33  ;;  %1501 = vmatpush1.msra.mxu1 %v1351_v2  ;;  %v1318_v33 = vld [vmem:[%s4316_s3 + $0x138] sm:$0xff]  ;;  %v1311_v23 = vld [vmem:[%s4316_s3 + $0x100] sm:$0xff] }
  0xfd   : > { %1432 = vmatpush1.msra.mxu0 %v1285_v37  ;;  %1502 = vmatprep.subr.mxu1 %v1350_v6  ;;  %v1317_v37 = vld [vmem:[%s4316_s3 + $0x130] sm:$0xff]  ;;  %v1383_v2 = vld [vmem:[%s4316_s3 + $0x340] sm:$0xff] }
  0xfe   : > { %1433 = vmatprep.subr.mxu0 %v1284_v15  ;;  %1503 = vmatpush1.msra.mxu1 %v1349_v10  ;;  %v1316_v15 = vld [vmem:[%s4316_s3 + $0x128] sm:$0xff]  ;;  %v1381_v6 = vld [vmem:[%s4316_s3 + $0x330] sm:$0xff]  ;;  %v1379_v10 = vld [vmem:[%s4316_s3 + $0x320] sm:$0xff] }
  0xff   : > { %1434 = vmatpush1.msra.mxu0 %v1283_v51  ;;  %1504 = vmatprep.subr.mxu1 %v1348_v14  ;;  %v1315_v51 = vld [vmem:[%s4316_s3 + $0x120] sm:$0xff]  ;;  %v1377_v14 = vld [vmem:[%s4316_s3 + $0x310] sm:$0xff] }
 0x100   : > { %1435 = vmatprep.subr.mxu0 %v1282_v35  ;;  %1505 = vmatpush1.msra.mxu1 %v1347_v18  ;;  %v1314_v35 = vld [vmem:[%s4316_s3 + $0x118] sm:$0xff]  ;;  %v1375_v18 = vld [vmem:[%s4316_s3 + $0x300] sm:$0xff] }
 0x101   : > { %1436 = vmatpush1.msra.mxu0 %v1281_v31  ;;  %1506 = vmatprep.subr.mxu1 %v1346_v3  ;;  %v1313_v31 = vld [vmem:[%s4316_s3 + $0x110] sm:$0xff] }
 0x102   : > { %1437 = vmatprep.subr.mxu0 %v1280_v59  ;;  %1507 = vmatpush1.msra.mxu1 %v1345_v55  ;;  %v1312_v59 = vld [vmem:[%s4316_s3 + $0x108] sm:$0xff] }
 0x103   : > { %1438 = vmatpush1.msra.mxu0 %v1279_v0  ;;  %1508 = vmatprep.subr.mxu1 %v1344_v47  ;;  %v1384_v0 = vld [vmem:[%s4316_s3 + $0x348] sm:$0xff] }
 0x104   : > { %1439 = vmatprep.subr.mxu0 %v1342_v4  ;;  %1509 = vmatpush1.msra.mxu1 %v1343_v53  ;;  %v1382_v4 = vld [vmem:[%s4316_s3 + $0x338] sm:$0xff] }
 0x105   : > { %1440 = vmatpush2.msra.mxu0 %v1341_v8  ;;  %1510 = vmatprep.subr.mxu1 %v1406_v20  ;;  %v1380_v8 = vld [vmem:[%s4316_s3 + $0x328] sm:$0xff] }
 0x106   : > { %1441 = vmatprep.subr.mxu0 %v1340_v12  ;;  %1511 = vmatpush2.msra.mxu1 %v1405_v24  ;;  %v1378_v12 = vld [vmem:[%s4316_s3 + $0x318] sm:$0xff] }
 0x107   : > { %1442 = vmatpush2.msra.mxu0 %v1339_v16  ;;  %1512 = vmatprep.subr.mxu1 %v1404_v28  ;;  %v1376_v16 = vld [vmem:[%s4316_s3 + $0x308] sm:$0xff] }
 0x108   : > { %1443 = vmatprep.subr.mxu0 %v1338_v61  ;;  %1513 = vmatpush2.msra.mxu1 %v1403_v32 }
 0x109   : > { %1444 = vmatpush2.msra.mxu0 %v1337_v41  ;;  %1514 = vmatprep.subr.mxu1 %v1402_v36 }
 0x10a   : > { %1445 = vmatprep.subr.mxu0 %v1336_v49  ;;  %1515 = vmatpush2.msra.mxu1 %v1401_v40 }
 0x10b   : > { %1446 = vmatpush2.msra.mxu0 %v1335_v63  ;;  %1516 = vmatprep.subr.mxu1 %v1400_v44 }
 0x10c   : > { %1447 = vmatprep.subr.mxu0 %v1334_v11  ;;  %1517 = vmatpush2.msra.mxu1 %v1399_v48 }
 0x10d   : > { %1448 = vmatpush2.msra.mxu0 %v1333_v22  ;;  %1518 = vmatprep.subr.mxu1 %v1398_v52 }
 0x10e   : > { %1449 = vmatprep.subr.mxu0 %v1332_v26  ;;  %1519 = vmatpush2.msra.mxu1 %v1397_v56 }
 0x10f   : > { %1450 = vmatpush2.msra.mxu0 %v1331_v30  ;;  %1520 = vmatprep.subr.mxu1 %v1396_v60 }
 0x110   : > { %1451 = vmatprep.subr.mxu0 %v1330_v34  ;;  %1521 = vmatpush2.msra.mxu1 %v1395_v1 }
 0x111   : > { %1452 = vmatpush2.msra.mxu0 %v1329_v38  ;;  %1522 = vmatprep.subr.mxu1 %v1394_v9 }
 0x112   : > { %1453 = vmatprep.subr.mxu0 %v1328_v42  ;;  %1523 = vmatpush2.msra.mxu1 %v1393_v17 }
 0x113   : > { %1454 = vmatpush2.msra.mxu0 %v1327_v46  ;;  %1524 = vmatprep.subr.mxu1 %v1392_v25 }
 0x114   : > { %1455 = vmatprep.subr.mxu0 %v1326_v50  ;;  %1525 = vmatpush2.msra.mxu1 %v1391_v57 }
 0x115   : > { %1456 = vmatpush2.msra.mxu0 %v1325_v54  ;;  %1526 = vmatprep.subr.mxu1 %v1390_v45 }
 0x116   : > { %1457 = vmatprep.subr.mxu0 %v1324_v58  ;;  %1527 = vmatpush2.msra.mxu1 %v1389_v43 }
 0x117   : > { %1458 = vmatpush2.msra.mxu0 %v1323_v62  ;;  %1528 = vmatprep.subr.mxu1 %v1388_v27 }
 0x118   : > { %1459 = vmatprep.subr.mxu0 %v1322_v5  ;;  %1529 = vmatpush2.msra.mxu1 %v1387_v19 }
 0x119   : > { %1460 = vmatpush2.msra.mxu0 %v1321_v13  ;;  %1530 = vmatprep.subr.mxu1 %v1386_v7  ;;  %v1550_v13 = vstv %s1549_s20 }
 0x11a   : > { %1461 = vmatprep.subr.mxu0 %v1320_v21  ;;  %1531 = vmatpush2.msra.mxu1 %v1385_v39 }
 0x11b   : > { %1462 = vmatpush2.msra.mxu0 %v1319_v29  ;;  %1532 = vmatprep.subr.mxu1 %v1384_v0 }
 0x11c   : > { %1463 = vmatprep.subr.mxu0 %v1318_v33  ;;  %1533 = vmatpush2.msra.mxu1 %v1383_v2 }
 0x11d   : > { %1464 = vmatpush2.msra.mxu0 %v1317_v37  ;;  %1534 = vmatprep.subr.mxu1 %v1382_v4 }
 0x11e   : > { %1465 = vmatprep.subr.mxu0 %v1316_v15  ;;  %1535 = vmatpush2.msra.mxu1 %v1381_v6 }
 0x11f   : > { %1466 = vmatpush2.msra.mxu0 %v1315_v51  ;;  %1536 = vmatprep.subr.mxu1 %v1380_v8  ;;  %v549_v61 = vpop.f32.mrf.mxu0 }
 0x120   : > { %1467 = vmatprep.subr.mxu0 %v1314_v35  ;;  %1537 = vmatpush2.msra.mxu1 %v1379_v10  ;;  %v684_v3 = vpop.f32.mrf.mxu1 }
 0x121   : > { %1468 = vmatpush2.msra.mxu0 %v1313_v31  ;;  %1538 = vmatprep.subr.mxu1 %v1378_v12  ;;  %v551_v41 = vpop.f32.mrf.mxu0  ;;  %v4183_v53 = vadd.f32 %v684_v3, %v549_v61  ;;  %v2373_v3 = vmov 2131351028  }
 0x122   : > { %1469 = vmatprep.subr.mxu0 %v1312_v59  ;;  %1539 = vmatpush2.msra.mxu1 %v1377_v14  ;;  %v686_v55 = vpop.f32.mrf.mxu1  ;;  %v2371_v14 = vmov 683565275  }
 0x123   : > { %1470 = vmatpush2.msra.mxu0 %v1311_v23  ;;  %1540 = vmatprep.subr.mxu1 %v1376_v16  ;;  %v4179_v47 = vadd.f32 %v686_v55, %v551_v41  ;;  %v1263_v28 = vmul.f32 %v4183_v53, %v4183_v53 }
 0x124   : > { %1541 = vmatpush2.msra.mxu1 %v1375_v18  ;;  %v2372_v18 = vmov 2475754826  }
 0x125   : > { %v1264_v24 = vmul.f32 %v4179_v47, %v4179_v47 }
 0x161   : > { %v819_v49 = vpop.f32.mrf.mxu0 }
 0x162   : > { %v4181_v63 = vsub.f32 %v549_v61, %v819_v49  ;;  %v968_v34 = vpop.f32.mrf.mxu1 }
 0x163   : > { %v821_v11 = vpop.f32.mrf.mxu0 }
 0x164   : > { %v4185_v20 = vsub.f32 %v551_v41, %v821_v11  ;;  %v1255_v22 = vmul.f32 %v4181_v63, %v4181_v63  ;;  %v970_v36 = vpop.f32.mrf.mxu1 }
 0x166   : > { %v1256_v26 = vmul.f32 %v4185_v20, %v4185_v20  ;;  %v1267_v32 = vadd.f32 %v1263_v28, %v1255_v22  ;;  %v2374_v22 = vmov 2102212464  }
 0x168   : > { %v1268_v30 = vadd.f32 %v1264_v24, %v1256_v26  ;;  %v2375_v26 = vmov 920167782  }
 0x16a   : > { %1471 = vmatprep.mubr.f32.mxu0 %v1268_v30 }
 0x16b   : > { %1472 = vmatmul.mubr.f32.vlgmr.msra.gmra.mxu0 %v1267_v32 }
 0x1a3   : > { %v1103_v38 = vpop.f32.mrf.mxu0 }
 0x1a4   : > { %v1238_v40 = vpop.f32.mrf.mxu1  ;;  %v4195_v42 = vadd.f32 %v1103_v38, %v968_v34 }
 0x1a5   : > { %v4197_v44 = vsub.f32 %v968_v34, %v1238_v40  ;;  %v1105_v46 = vpop.f32.mrf.mxu0 }
 0x1a6   : > { %v1240_v48 = vpop.f32.mrf.mxu1  ;;  %v4199_v50 = vadd.f32 %v1105_v46, %v970_v36  ;;  %v1265_v54 = vmul.f32 %v4195_v42, %v4195_v42 }
 0x1a7   : > { %v4201_v52 = vsub.f32 %v970_v36, %v1240_v48  ;;  %v1257_v56 = vmul.f32 %v4197_v44, %v4197_v44  ;;  %v2376_v36 = vmov 1326507024  }
 0x1a8   : > { %v1266_v58 = vmul.f32 %v4199_v50, %v4199_v50 }
 0x1a9   : > { %v1258_v60 = vmul.f32 %v4201_v52, %v4201_v52  ;;  %v1269_v1 = vadd.f32 %v1265_v54, %v1257_v56 }
 0x1ab   : > { %v1270_v62 = vadd.f32 %v1266_v58, %v1258_v60 }
 0x1ad   : > { %1542 = vmatprep.mubr.f32.mxu1 %v1270_v62 }
 0x1ae   : > { %1543 = vmatmul.mubr.f32.vlgmr.msra.gmra.mxu1 %v1269_v1 }
 0x22b   : > { %v1473_v5 = vpop.f32.mrf.mxu0 }
 0x22d   : > { %v1475_v21 = vpop.f32.mrf.mxu0 }
 0x26e   : > { %v1544_v9 = vpop.f32.mrf.mxu1 }
 0x26f   : > { %v1545_v17 = vadd.f32 %v1544_v9, %v1473_v5 }
 0x270   : > { %v1546_v25 = vpop.f32.mrf.mxu1 }
 0x271   : > { %v4212_v29 = vmul.f32 %v1550_v13, %v1545_v17  ;;  %v1547_v57 = vadd.f32 %v1546_v25, %v1475_v21 }
 0x273   : > { %v1556_v33 = vand.u32 2139095040, %v4212_v29  ;;  %v4215_v45 = vmul.f32 %v1550_v13, %v1547_v57  ;;  %v1553_v37 = vand.u32 2147483647, %v4212_v29  ;;  %vm1555_vm14 = vcmp.lt.s32.totalorder %v4212_v29, 0 }
 0x275   : > { %v1557_v43 = vshrl.u32 %v1556_v33, 23  ;;  %v1659_v15 = vand.u32 2139095040, %v4215_v45  ;;  %v1560_v19 = vand.u32 8388607, %v1553_v37  ;;  %v1656_v35 = vand.u32 2147483647, %v4215_v45 }
 0x276   : > { %vm1554_vm15 = vcmp.le.f32.partialorder %v1553_v37, 0.7853982 }
 0x277   : > { %v2246_v27 = vadd.s32 4294967169, %v1557_v43  ;;  %v1660_v51 = vshrl.u32 %v1659_v15, 23  ;;  %v1561_v59 = vor.u32 8388608, %v1560_v19  ;;  %v1663_v0 = vand.u32 8388607, %v1656_v35 }
 0x279   : > { %v1563_v7 = vadd.s32 1, %v2246_v27  ;;  %v2250_v31 = vadd.s32 4294967169, %v1660_v51  ;;  %v4224_v12 = vshll.u32 %v1561_v59, 8  ;;  %v1664_v55 = vor.u32 8388608, %v1663_v0 }
 0x27b   : > { %vm1564_vm0 = vcmp.gt.s32.totalorder %v1563_v7, 0  ;;  %v1666_v39 = vadd.s32 1, %v2250_v31  ;;  %v1704_v27 = vshll.u32 %v1664_v55, 8 }
 0x27c   : > { %v1565_v23 = vsel %vm1564_vm0, %v1563_v7, 0  ;;  %vm1658_vm0 = vcmp.lt.s32.totalorder %v4215_v45, 0 }
 0x27d   : > { %v1567_v2 = vand.u32 31, %v1565_v23  ;;  %vm1667_vm1 = vcmp.gt.s32.totalorder %v1666_v39, 0  ;;  %v1566_v6 = vshrl.u32 %v1565_v23, 5 }
 0x27e   : > { %v1668_v4 = vsel %vm1667_vm1, %v1666_v39, 0  ;;  %vm4266_vm1 = vcmp.le.f32.partialorder %v1656_v35, 0.7853982 }
 0x27f   : > { %v1568_v8 = vsub.s32 32, %v1567_v2  ;;  %v1670_v10 = vand.u32 31, %v1668_v4  ;;  %v1570_v16 = vshll.u32 %v2371_v14, %v1567_v2  ;;  %v1573_v61 = vshll.u32 %v2372_v18, %v1567_v2 }
 0x280   : > { %v1576_v41 = vshll.u32 %v2373_v3, %v1567_v2  ;;  %v1579_v24 = vshll.u32 %v2374_v22, %v1567_v2  ;;  %v1582_v28 = vshll.u32 %v2375_v26, %v1567_v2  ;;  %vm1585_vm2 = vcmp.lt.s32.totalorder %v1566_v6, 1 }
 0x281   : > { %v1571_v49 = vshrl.u32 %v2372_v18, %v1568_v8  ;;  %v1574_v11 = vshrl.u32 %v2373_v3, %v1568_v8  ;;  %v1671_v30 = vsub.s32 32, %v1670_v10  ;;  %v1577_v32 = vshrl.u32 %v2374_v22, %v1568_v8 }
 0x282   : > { %v1580_v34 = vshrl.u32 %v2375_v26, %v1568_v8  ;;  %v1583_v38 = vshrl.u32 %v2376_v36, %v1568_v8  ;;  %v1569_v40 = vshrl.u32 %v2371_v14, %v1568_v8  ;;  %vm1586_vm3 = vcmp.lt.s32.totalorder %v1566_v6, 2 }
 0x283   : > { %v1572_v46 = vor.u32 %v1571_v49, %v1570_v16  ;;  %v1575_v48 = vor.u32 %v1574_v11, %v1573_v61  ;;  %v1578_v54 = vor.u32 %v1577_v32, %v1576_v41  ;;  %vm1587_vm4 = vcmp.lt.s32.totalorder %v1566_v6, 3 }
 0x284   : > { %v1581_v56 = vor.u32 %v1580_v34, %v1579_v24  ;;  %v1584_v58 = vor.u32 %v1583_v38, %v1582_v28  ;;  %vm1588_vm5 = vcmp.lt.s32.totalorder %v1566_v6, 4  ;;  %v1674_v57 = vshrl.u32 %v2372_v18, %v1671_v30 }
 0x285   : > { %v1589_v60 = vsel %vm1585_vm2, %v1569_v40, %v1572_v46  ;;  %v1593_v62 = vsel %vm1585_vm2, %v1572_v46, %v1575_v48  ;;  %v1590_v1 = vsel %vm1588_vm5, %v1578_v54, 2102212464  ;;  %v1597_v9 = vsel %vm1585_vm2, %v1575_v48, %v1578_v54 }
 0x286   : > { %v1594_v5 = vsel %vm1588_vm5, %v1581_v56, 920167782  ;;  %v1598_v13 = vsel %vm1588_vm5, %v1584_v58, 1326507024  ;;  %v1591_v17 = vsel %vm1587_vm4, %v1575_v48, %v1590_v1  ;;  %v1673_v15 = vshll.u32 %v2371_v14, %v1670_v10 }
 0x287   : > { %v1595_v21 = vsel %vm1587_vm4, %v1578_v54, %v1594_v5  ;;  %v1599_v25 = vsel %vm1587_vm4, %v1581_v56, %v1598_v13  ;;  %v1669_v39 = vshrl.u32 %v1668_v4, 5  ;;  %v1592_v59 = vsel %vm1586_vm3, %v1589_v60, %v1591_v17 }
 0x288   : > { %v1596_v33 = vsel %vm1586_vm3, %v1593_v62, %v1595_v21  ;;  %v1600_v43 = vsel %vm1586_vm3, %v1597_v9, %v1599_v25  ;;  %v1676_v23 = vshll.u32 %v2372_v18, %v1670_v10  ;;  %v1677_v0 = vshrl.u32 %v2373_v3, %v1671_v30 }
 0x289   : > { %v4232_v51 = vmul.u32.u64.low %v4224_v12, %v1600_v43  ;;  %v4233_v19 = vmul.u32.u64.high %v4224_v12, %v1600_v43, %v4232_v51  ;;  %v4236_v7 = vmul.u32.u64.low %v4224_v12, %v1596_v33  ;;  %v4237_v31 = vmul.u32.u64.high %v4224_v12, %v1596_v33, %v4236_v7 }
 0x28a   : > { %v1675_v2 = vor.u32 %v1674_v57, %v1673_v15  ;;  %v1679_v8 = vshll.u32 %v2373_v3, %v1670_v10  ;;  %v1680_v16 = vshrl.u32 %v2374_v22, %v1671_v30  ;;  %v1683_v61 = vshrl.u32 %v2375_v26, %v1671_v30 }
 0x28b   : > { %v1678_v41 = vor.u32 %v1677_v0, %v1676_v23  ;;  %v1682_v55 = vshll.u32 %v2374_v22, %v1670_v10  ;;  %v1685_v49 = vshll.u32 %v2375_v26, %v1670_v10  ;;  %v1686_v11 = vshrl.u32 %v2376_v36, %v1671_v30 }
 0x28c   : > { %v1608_v24 = vmul.u32 %v4224_v12, %v1592_v59  ;;  %vm1610_vm6 = vc.u32 %v4233_v19, %v4236_v7  ;;  %v1611_v28 = vadd.s32 1, %v4237_v31  ;;  %v1681_v4 = vor.u32 %v1680_v16, %v1679_v8 }
 0x28d   : > { %v1684_v6 = vor.u32 %v1683_v61, %v1682_v55  ;;  %v1687_v32 = vor.u32 %v1686_v11, %v1685_v49  ;;  %vm1688_vm7 = vcmp.lt.s32.totalorder %v1669_v39, 1  ;;  %vm1691_vm8 = vcmp.lt.s32.totalorder %v1669_v39, 4 }
 0x28e   : > { %v1612_v18 = vsel %vm1610_vm6, %v1611_v28, %v4237_v31  ;;  %v1672_v3 = vshrl.u32 %v2371_v14, %v1671_v30  ;;  %v1693_v34 = vsel %vm1691_vm8, %v1681_v4, 2102212464  ;;  %v1696_v22 = vsel %vm1688_vm7, %v1675_v2, %v1678_v41 }
 0x28f   : > { %v1613_v10 = vadd.s32 %v1612_v18, %v1608_v24  ;;  %vm1690_vm9 = vcmp.lt.s32.totalorder %v1669_v39, 3  ;;  %v1697_v26 = vsel %vm1691_vm8, %v1684_v6, 920167782  ;;  %v1700_v12 = vsel %vm1688_vm7, %v1678_v41, %v1681_v4 }
 0x290   : > { %vm1689_vm10 = vcmp.lt.s32.totalorder %v1669_v39, 2  ;;  %v1692_v36 = vsel %vm1688_vm7, %v1672_v3, %v1675_v2  ;;  %v1698_v38 = vsel %vm1690_vm9, %v1681_v4, %v1697_v26  ;;  %v1701_v40 = vsel %vm1691_vm8, %v1687_v32, 1326507024 }
 0x291   : > { %v1614_v46 = vadd.s32 536870912, %v1613_v10  ;;  %v1694_v48 = vsel %vm1690_vm9, %v1678_v41, %v1693_v34  ;;  %v1699_v54 = vsel %vm1689_vm10, %v1696_v22, %v1698_v38  ;;  %v1702_v56 = vsel %vm1690_vm9, %v1684_v6, %v1701_v40 }
 0x292   : > { %v1703_v58 = vsel %vm1689_vm10, %v1700_v12, %v1702_v56  ;;  %v4247_v60 = vmul.u32.u64.low %v1704_v27, %v1699_v54  ;;  %v4248_v62 = vmul.u32.u64.high %v1704_v27, %v1699_v54, %v4247_v60  ;;  %v1695_v5 = vsel %vm1689_vm10, %v1692_v36, %v1694_v48 }
 0x293   : > { %v1615_v1 = vshrl.u32 %v1614_v46, 30  ;;  %v4250_v14 = vmul.u32.u64.low %v1704_v27, %v1703_v58  ;;  %v4251_v30 = vmul.u32.u64.high %v1704_v27, %v1703_v58, %v4250_v14  ;;  %v1711_v21 = vmul.u32 %v1704_v27, %v1695_v5 }
 0x294   : > { %v1714_v13 = vadd.s32 1, %v4248_v62  ;;  %v1609_v2 = vadd.s32 %v4236_v7, %v4233_v19  ;;  %vm1645_vm7 = vweird.f32 %v4212_v29 }
 0x295   : > { %v1616_v9 = vshll.u32 %v1615_v1, 30  ;;  %vm1713_vm11 = vc.u32 %v4251_v30, %v4247_v60  ;;  %v1712_v22 = vadd.s32 %v4247_v60, %v4251_v30  ;;  %v1639_v40 = vsub.s32 4, %v1615_v1 }
 0x296   : > { %v1715_v25 = vsel %vm1713_vm11, %v1714_v13, %v4248_v62 }
 0x297   : > { %v1617_v17 = vsub.s32 %v1613_v10, %v1616_v9  ;;  %v1716_v33 = vadd.s32 %v1715_v25, %v1711_v21  ;;  %v1640_v58 = vsel %vm1555_vm14, %v1639_v40, %v1615_v1 }
 0x298   : > { %v1642_v14 = vsel %vm1554_vm15, 0, %v1640_v58 }
 0x299   : > { %v1619_v57 = vsub.s32 0, %v1617_v17  ;;  %v1717_v15 = vadd.s32 536870912, %v1716_v33  ;;  %v1852_v9 = vadd.s32 3, %v1642_v14  ;;  %v1646_v21 = vand.u32 3, %v1642_v14 }
 0x29b   : > { %v2247_v43 = vmin.u32 %v1619_v57, %v1617_v17  ;;  %v1718_v31 = vshrl.u32 %v1717_v15, 30  ;;  %v1853_v25 = vand.u32 3, %v1852_v9  ;;  %vm1648_vm2 = vcmp.eq.s32.totalorder %v1646_v21, 0 }
 0x29c   : > { %vm1651_vm3 = vcmp.eq.s32.totalorder %v1646_v21, 2  ;;  %vm1647_vm6 = vcmp.lt.s32.totalorder %v1646_v21, 2 }
 0x29d   : > { %v1621_v51 = vclz %v2247_v43  ;;  %v1719_v59 = vshll.u32 %v1718_v31, 30  ;;  %vm1855_vm4 = vcmp.eq.s32.totalorder %v1853_v25, 0  ;;  %vm1858_vm5 = vcmp.eq.s32.totalorder %v1853_v25, 2 }
 0x29e   : > { %vm1854_vm8 = vcmp.lt.s32.totalorder %v1853_v25, 2 }
 0x29f   : > { %v2248_v39 = vadd.s32 4294967294, %v1621_v51  ;;  %v1720_v0 = vsub.s32 %v1716_v33, %v1719_v59 }
 0x2a1   : > { %vm2249_vm12 = vcmp.lt.s32.totalorder %v2248_v39, 0  ;;  %v1722_v16 = vsub.s32 0, %v1720_v0 }
 0x2a2   : > { %v1624_v23 = vsel %vm2249_vm12, 0, %v2248_v39 }
 0x2a3   : > { %v1625_v8 = vsub.s32 32, %v1624_v23  ;;  %v1629_v27 = vsub.s32 4294967266, %v1624_v23  ;;  %v1626_v61 = vshll.u32 %v1617_v17, %v1624_v23  ;;  %v2251_v49 = vmin.u32 %v1722_v16, %v1720_v0 }
 0x2a4   : > { %v1742_v17 = vsub.s32 4, %v1718_v31 }
 0x2a5   : > { %v1627_v41 = vshrl.u32 %v1609_v2, %v1625_v8  ;;  %v1630_v55 = vadd.s32 127, %v1629_v27  ;;  %v1724_v28 = vclz %v2251_v49 }
 0x2a6   : > { %v1743_v33 = vsel %vm1658_vm0, %v1742_v17, %v1718_v31 }
 0x2a7   : > { %v1628_v11 = vor.u32 %v1627_v41, %v1626_v61  ;;  %v1631_v24 = vshll.u32 %v1630_v55, 23  ;;  %v2252_v6 = vadd.s32 4294967294, %v1724_v28  ;;  %v1745_v39 = vsel %vm4266_vm1, 0, %v1743_v33 }
 0x2a8   : > { %v1956_v31 = vadd.s32 3, %v1745_v39  ;;  %v1749_v16 = vand.u32 3, %v1745_v39 }
 0x2a9   : > { %v1632_v4 = vor.u32 4788187, %v1631_v24  ;;  %v1635_v18 = vcvt.s32.f32 %v1628_v11  ;;  %vm2253_vm13 = vcmp.lt.s32.totalorder %v2252_v6, 0 }
 0x2aa   : > { %v1727_v34 = vsel %vm2253_vm13, 0, %v2252_v6  ;;  %v1957_v41 = vand.u32 3, %v1956_v31  ;;  %vm1754_vm9 = vcmp.eq.s32.totalorder %v1749_v16, 2  ;;  %vm1751_vm10 = vcmp.eq.s32.totalorder %v1749_v16, 0 }
 0x2ab   : > { %v1633_v32 = vand.u32 2147483647, %v1632_v4  ;;  %v1728_v19 = vsub.s32 32, %v1727_v34  ;;  %v1732_v7 = vsub.s32 4294967266, %v1727_v34  ;;  %v1729_v26 = vshll.u32 %v1720_v0, %v1727_v34 }
 0x2ac   : > { %vm1959_vm11 = vcmp.eq.s32.totalorder %v1957_v41, 0  ;;  %vm1962_vm12 = vcmp.eq.s32.totalorder %v1957_v41, 2  ;;  %vm1750_vm13 = vcmp.lt.s32.totalorder %v1749_v16, 2 }
 0x2ad   : > { %v1636_v3 = vmul.f32 %v1635_v18, %v1633_v32  ;;  %v1730_v12 = vshrl.u32 %v1712_v22, %v1728_v19  ;;  %v1733_v36 = vadd.s32 127, %v1732_v7 }
 0x2af   : > { %v1637_v10 = vxor.u32 2147483648, %v1636_v3  ;;  %v1731_v48 = vor.u32 %v1730_v12, %v1729_v26  ;;  %v1734_v54 = vshll.u32 %v1733_v36, 23 }
 0x2b1   : > { %v1638_v38 = vsel %vm1555_vm14, %v1637_v10, %v1636_v3  ;;  %v1735_v56 = vor.u32 4788187, %v1734_v54  ;;  %v1738_v62 = vcvt.s32.f32 %v1731_v48  ;;  %vm1748_vm14 = vweird.f32 %v4215_v45 }
 0x2b2   : > { %v1641_v46 = vsel %vm1554_vm15, %v4212_v29, %v1638_v38  ;;  %vm1958_vm15 = vcmp.lt.s32.totalorder %v1957_v41, 2 }
 0x2b3   : > { %2319 = vcosq.f32 %v1641_v46  ;;  %v1736_v60 = vand.u32 2147483647, %v1735_v56 }
 0x2b4   : > { %2321 = vsinq.f32 %v1641_v46 }
 0x2b5   : > { %v1739_v30 = vmul.f32 %v1738_v62, %v1736_v60 }
 0x2b7   : > { %v1740_v5 = vxor.u32 2147483648, %v1739_v30 }
 0x2b9   : > { %v1741_v13 = vsel %vm1658_vm0, %v1740_v5, %v1739_v30  ;;  %vm1991_vm0 = vcmask 1031168  }
 0x2ba   : > { %v1744_v1 = vsel %vm4266_vm1, %v4215_v45, %v1741_v13 }
 0x2bb   : > { %2323 = vcosq.f32 %v1744_v1 }
 0x2bc   : > { %2325 = vsinq.f32 %v1744_v1 }
 0x2c0   : > { %v2320_v57 = vpop.eup %2319 }
 0x2c1   : > { %v2322_v43 = vpop.eup %2321  ;;  %v1652_v15 = vxor.u32 2147483648, %v2320_v57 }
 0x2c2   : > { %v1649_v51 = vxor.u32 2147483648, %v2322_v43 }
 0x2c3   : > { %v1653_v35 = vsel %vm1651_vm3, %v1652_v15, %v2322_v43  ;;  %v1860_v0 = vsel %vm1858_vm5, %v1652_v15, %v2322_v43 }
 0x2c4   : > { %v1650_v59 = vsel %vm1648_vm2, %v2320_v57, %v1649_v51  ;;  %v1857_v23 = vsel %vm1855_vm4, %v2320_v57, %v1649_v51 }
 0x2c5   : > { %v1654_v2 = vsel %vm1647_vm6, %v1650_v59, %v1653_v35  ;;  %v1861_v27 = vsel %vm1854_vm8, %v1857_v23, %v1860_v0 }
 0x2c6   : > { %v1655_v8 = vsel %vm1645_vm7, nan, %v1654_v2  ;;  %v1862_v61 = vsel %vm1645_vm7, nan, %v1861_v27 }
 0x2c7   : > { %1972 = vrot.lane.b32.xlu0 %v1655_v8, %s2377_s27 }
 0x2c8   : > { %v2324_v55 = vpop.eup %2323 }
 0x2c9   : > { %v2326_v49 = vpop.eup %2325  ;;  %v1755_v11 = vxor.u32 2147483648, %v2324_v55 }
 0x2ca   : > { %v1752_v24 = vxor.u32 2147483648, %v2326_v49 }
 0x2cb   : > { %1978 = vrot.lane.b32.xlu0 %v1862_v61, %s2377_s27  ;;  %v1756_v28 = vsel %vm1754_vm9, %v1755_v11, %v2326_v49  ;;  %v1964_v6 = vsel %vm1962_vm12, %v1755_v11, %v2326_v49 }
 0x2cc   : > { %v1753_v29 = vsel %vm1751_vm10, %v2324_v55, %v1752_v24  ;;  %v1961_v4 = vsel %vm1959_vm11, %v2324_v55, %v1752_v24 }
 0x2cd   : > { %v1757_v32 = vsel %vm1750_vm13, %v1753_v29, %v1756_v28  ;;  %v1965_v3 = vsel %vm1958_vm15, %v1961_v4, %v1964_v6 }
 0x2ce   : > { %v1758_v18 = vsel %vm1748_vm14, nan, %v1757_v32  ;;  %v1966_v34 = vsel %vm1748_vm14, nan, %v1965_v3 }
 0x2cf   : > { %2015 = vrot.lane.b32.xlu1 %v1758_v18, %s2377_s27 }
 0x2d3   : > { %2021 = vrot.lane.b32.xlu1 %v1966_v34, %s2377_s27 }
 0x339   : > { %v1973_v22 = vpop.permute.xlu0 %1972 }
 0x33a   : > { %v1975_v7 = vmul.f32 %v1973_v22, %v4181_v63  ;;  %v1976_v10 = vmul.f32 %v1973_v22, %v4185_v20  ;;  %v1997_v46 = vmul.f32 %v1973_v22, %v4183_v53  ;;  %v1998_v48 = vmul.f32 %v1973_v22, %v4179_v47 }
 0x33d   : > { %v1979_v19 = vpop.permute.xlu0 %1978 }
 0x33e   : > { %v1981_v26 = vmul.f32 %v1979_v19, %v4183_v53  ;;  %v1982_v12 = vmul.f32 %v1979_v19, %v4179_v47  ;;  %v1995_v36 = vmul.f32 %v1979_v19, %v4181_v63  ;;  %v1996_v45 = vmul.f32 %v1979_v19, %v4185_v20 }
 0x340   : > { %v1983_v38 = vsub.f32 %v1975_v7, %v1981_v26  ;;  %v1984_v40 = vsub.f32 %v1976_v10, %v1982_v12  ;;  %v1999_v56 = vadd.f32 %v1997_v46, %v1995_v36  ;;  %v2000_v58 = vadd.f32 %v1998_v48, %v1996_v45 }
 0x341   : > { %v2016_v54 = vpop.permute.xlu1 %2015 }
 0x342   : > { %1987 = vrot.lane.b32.xlu0 %v1983_v38, %s2378_s22  ;;  %1989 = vrot.lane.b32.xlu1 %v1984_v40, %s2378_s22  ;;  %v2018_v62 = vmul.f32 %v2016_v54, %v4197_v44  ;;  %v2019_v63 = vmul.f32 %v2016_v54, %v4201_v52  ;;  %v2039_v9 = vmul.f32 %v2016_v54, %v4195_v42 }
 0x343   : > { %v2040_v37 = vmul.f32 %v2016_v54, %v4199_v50 }
 0x345   : > { %v2022_v60 = vpop.permute.xlu1 %2021 }
 0x346   : > { %2003 = vrot.lane.b32.xlu0 %v1999_v56, %s2378_s22  ;;  %2005 = vrot.lane.b32.xlu1 %v2000_v58, %s2378_s22  ;;  %v2024_v20 = vmul.f32 %v2022_v60, %v4195_v42  ;;  %v2025_v53 = vmul.f32 %v2022_v60, %v4199_v50  ;;  %v2037_v47 = vmul.f32 %v2022_v60, %v4197_v44 }
 0x347   : > { %v2038_v14 = vmul.f32 %v2022_v60, %v4201_v52 }
 0x348   : > { %v2027_v30 = vsub.f32 %v2019_v63, %v2025_v53  ;;  %v2026_v5 = vsub.f32 %v2018_v62, %v2024_v20  ;;  %v2041_v17 = vadd.f32 %v2039_v9, %v2037_v47 }
 0x349   : > { %v2042_v13 = vadd.f32 %v2040_v37, %v2038_v14 }
 0x34a   : > { %2032 = vrot.lane.b32.xlu1 %v2027_v30, %s2378_s22  ;;  %2030 = vrot.lane.b32.xlu0 %v2026_v5, %s2378_s22 }
 0x34e   : > { %2047 = vrot.lane.b32.xlu1 %v2042_v13, %s2378_s22  ;;  %2045 = vrot.lane.b32.xlu0 %v2041_v17, %s2378_s22 }
 0x3b4   : > { %v1988_v44 = vpop.permute.xlu0 %1987  ;;  %v1990_v52 = vpop.permute.xlu1 %1989 }
 0x3b5   : > { %v1992_v1 = vsel %vm1991_vm0, %v1988_v44, %v1990_v52 }
 0x3b6   : > { %1994 = vst [vmem:[%s403_s26] sm:$0xff] %v1992_v1 }
 0x3b8   : > { %v2004_v42 = vpop.permute.xlu0 %2003  ;;  %v2006_v50 = vpop.permute.xlu1 %2005 }
 0x3b9   : > { %v2007_v21 = vsel %vm1991_vm0, %v2004_v42, %v2006_v50 }
 0x3ba   : > { %2009 = vst [vmem:[%s412_s21] sm:$0xff] %v2007_v21 }
 0x3bc   : > { %v2031_v25 = vpop.permute.xlu0 %2030  ;;  %v2033_v57 = vpop.permute.xlu1 %2032 }
 0x3bd   : > { %v2034_v33 = vsel %vm1991_vm0, %v2031_v25, %v2033_v57 }
 0x3be   : > { %2036 = vst [vmem:[%s403_s26 + $0x8] sm:$0xff] %v2034_v33 }
 0x3c0   : > { %v2046_v43 = vpop.permute.xlu0 %2045  ;;  %v2048_v15 = vpop.permute.xlu1 %2047 }
 0x3c1   : > { %v2049_v51 = vsel %vm1991_vm0, %v2046_v43, %v2048_v15 }
 0x3c2   : > { %2051 = vst [vmem:[%s412_s21 + $0x8] sm:$0xff] %v2049_v51 }
 0x3c3 PF: > { %s20_s29 = sadd.s32 1, %s2368_s29   ;;  %s4392_s27 = smov %s2364_s28 }
 0x3c4   : > { %p17_p2 = scmp.ge.s32.totalorder %s20_s29, 4   ;;  %s4393_s28 = smov %s4395_s9 }
 0x3c6   :  { %19 = sbr.rel (!%p17_p2) target bundleno = 2 (0x2), region = 98 }
 0x3cb   :  { %2105 = vsyncpa [#allocation6], 1 }
 0x3cc   :  { %2107 = vsyncpa [#allocation6 + $0x1], 1 }

</bundles_post_ra>
